<compile_context>
chip_gen: v5e
topology: v5e:2x2
jax: 0.10.0
libtpu: 0.0.40
codegen_flags: <defaults>
</compile_context>

<pallas_src>
import math

import jax
import jax.numpy as jnp
from jax import lax
from jax.experimental import pallas as pl
from jax.experimental.pallas import tpu as pltpu

HIGHEST = jax.lax.Precision.HIGHEST
NUM_ACTIONS = 6
HIDDEN = 256
TK_HEAD = 512      # K tile for streaming the concatenated FC1 weight
TM_CONV = 512      # row tile for the im2col GEMMs
A_PAD = 128        # lane-dense head output width (>= num_actions)


def _round_up(x, m):
    return -(-x // m) * m


# ----------------------------------------------------------------------------
# Pallas kernels
# ----------------------------------------------------------------------------
def _conv_mm_kernel(p_ref, w_ref, b_ref, o_ref):
    """One M-tile of  o = relu(patches @ w + b); bf16 in, f32 acc, bf16 out."""
    acc = jnp.dot(p_ref[...], w_ref[...], preferred_element_type=jnp.float32)
    o_ref[...] = jnp.maximum(acc + b_ref[...], 0.0).astype(o_ref.dtype)


def _dueling_head_kernel(f_ref, w1_ref, b1_ref, w2_ref, b2_ref, o_ref, acc_ref):
    """K-streamed fused dueling head.

    Grid axis 0 walks K tiles of the concatenated FC1 weight [w1v | w1a].
    acc accumulates (B, 2*HIDDEN) in f32; on the last K step the hidden layer is
    activated and multiplied by W2, into which the value broadcast and the
    advantage mean-centering were folded at init time, so o_ref holds q directly
    (zero-padded to 128 lanes for an unmasked store).
    """
    k = pl.program_id(0)

    @pl.when(k == 0)
    def _init():
        acc_ref[...] = jnp.zeros_like(acc_ref)

    acc_ref[...] += jnp.dot(f_ref[...], w1_ref[...],
                            preferred_element_type=jnp.float32)

    @pl.when(k == pl.num_programs(0) - 1)
    def _finish():
        h = jnp.maximum(acc_ref[...] + b1_ref[...], 0.0).astype(jnp.bfloat16)
        o_ref[...] = (jnp.dot(h, w2_ref[...], preferred_element_type=jnp.float32)
                      + b2_ref[...])


# ----------------------------------------------------------------------------
# Wrappers
# ----------------------------------------------------------------------------
def conv2d_relu_pallas(x, w_mat, b_row, ksz, stride, tm=TM_CONV):
    """x: (B, H, W, Cin) bf16 NHWC; w_mat: (Kpad, Cout) bf16; b_row: (1, Cout) f32."""
    B, H, W, Cin = x.shape
    Kp, Cout = w_mat.shape
    Ho = (H - ksz) // stride + 1
    Wo = (W - ksz) // stride + 1

    # im2col as XLA window slices, column order (ki, kj, ci) == flattened HWIO weight.
    # TODO(synk): the strided window gather has no clean in-kernel Pallas equivalent
    # here, so the patch matrix is still materialized by XLA (NHWC, no transposes).
    cols = [x[:, i:i + stride * Ho:stride, j:j + stride * Wo:stride, :]
            for i in range(ksz) for j in range(ksz)]
    patches = jnp.stack(cols, axis=3).reshape(B * Ho * Wo, ksz * ksz * Cin)
    if patches.shape[1] < Kp:                         # lane-align K (e.g. 288 -> 384)
        patches = jnp.pad(patches, ((0, 0), (0, Kp - patches.shape[1])))

    M = B * Ho * Wo
    nsteps = -(-M // tm)
    tm_eff = _round_up(-(-M // nsteps), 8)
    m_pad = tm_eff * nsteps
    if m_pad > M:
        patches = jnp.pad(patches, ((0, m_pad - M), (0, 0)))

    out = pl.pallas_call(
        _conv_mm_kernel,
        out_shape=jax.ShapeDtypeStruct((m_pad, Cout), jnp.bfloat16),
        grid=(nsteps,),
        in_specs=[pl.BlockSpec((tm_eff, Kp), lambda i: (i, 0)),
                  pl.BlockSpec((Kp, Cout), lambda i: (0, 0)),    # resident weight
                  pl.BlockSpec((1, Cout), lambda i: (0, 0))],
        out_specs=pl.BlockSpec((tm_eff, Cout), lambda i: (i, 0)),
        compiler_params=pltpu.CompilerParams(
            dimension_semantics=("parallel",)),
    )(patches, w_mat, b_row)
    return out[:M].reshape(B, Ho, Wo, Cout)


def dueling_head_pallas(feat, w1, b1, w2, b2, num_actions, tk=TK_HEAD):
    B, Kp = feat.shape
    Hcat = w1.shape[1]
    Ap = w2.shape[1]          # lane-padded action width (128)
    assert Kp % tk == 0, (Kp, tk)
    q_pad = pl.pallas_call(
        _dueling_head_kernel,
        out_shape=jax.ShapeDtypeStruct((B, Ap), jnp.float32),
        grid=(Kp // tk,),
        in_specs=[pl.BlockSpec((B, tk), lambda k: (0, k)),
                  pl.BlockSpec((tk, Hcat), lambda k: (k, 0)),
                  pl.BlockSpec((1, Hcat), lambda k: (0, 0)),
                  pl.BlockSpec((w2.shape[0], Ap), lambda k: (0, 0)),
                  pl.BlockSpec((1, Ap), lambda k: (0, 0))],
        out_specs=pl.BlockSpec((B, Ap), lambda k: (0, 0)),
        scratch_shapes=[pltpu.VMEM((B, Hcat), jnp.float32)],
        compiler_params=pltpu.CompilerParams(
            dimension_semantics=("arbitrary",)),
    )(feat, w1, b1, w2, b2)
    return q_pad[:, :num_actions]


def dqn_atari_critic(obs, p):
    """obs: (B, 4, 84, 84) f32 NCHW  ->  (B, NUM_ACTIONS) f32 q-values."""
    x = jnp.transpose(obs, (0, 2, 3, 1)).astype(jnp.bfloat16)      # NHWC bf16
    for (w_mat, b_row, ksz, stride) in p["convs"]:
        x = conv2d_relu_pallas(x, w_mat, b_row, ksz, stride)
    B = x.shape[0]
    feat = x.reshape(B, -1)          # NHWC flatten; FC1 rows were permuted to match
    if feat.shape[1] < p["k_head"]:
        feat = jnp.pad(feat, ((0, 0), (0, p["k_head"] - feat.shape[1])))
    return dueling_head_pallas(feat, p["w1"], p["b1"], p["w2"], p["b2"],
                               p["num_actions"])


# ----------------------------------------------------------------------------
# Parameter init (PyTorch layouts) and one-time kernel-layout preparation
# ----------------------------------------------------------------------------
def init_params(key, num_channels=4, num_actions=NUM_ACTIONS, hidden=HIDDEN):
    def linear(k, fan_in, fan_out):
        kw, kb = jax.random.split(k)
        bound = 1.0 / math.sqrt(fan_in)
        w = jax.random.uniform(kw, (fan_in, fan_out), jnp.float32, -bound, bound)
        b = jax.random.uniform(kb, (fan_out,), jnp.float32, -bound, bound)
        return w, b

    def conv(k, cin, cout, ksz):
        kw, kb = jax.random.split(k)
        bound = 1.0 / math.sqrt(cin * ksz * ksz)
        w = jax.random.uniform(kw, (cout, cin, ksz, ksz), jnp.float32, -bound, bound)
        b = jax.random.uniform(kb, (cout,), jnp.float32, -bound, bound)
        return w, b

    k = jax.random.split(key, 7)
    c1w, c1b = conv(k[0], num_channels, 16, 8)
    c2w, c2b = conv(k[1], 16, 32, 4)
    c3w, c3b = conv(k[2], 32, 64, 3)
    v1w, v1b = linear(k[3], 3136, hidden)
    v2w, v2b = linear(k[4], hidden, 1)
    a1w, a1b = linear(k[5], 3136, hidden)
    a2w, a2b = linear(k[6], hidden, num_actions)
    return {
        "convs": [(c1w, c1b, 4), (c2w, c2b, 2), (c3w, c3b, 1)],
        "value": (v1w, v1b, v2w, v2b),
        "advantage": (a1w, a1b, a2w, a2b),
    }


def prepare_params(params):
    """One-time transform of PyTorch-layout weights into kernel layouts."""
    convs = []
    for (w, b, stride) in params["convs"]:
        cout, cin, kh, kw = w.shape
        # OIHW -> (KH*KW*Cin, Cout), row order (ki, kj, ci) matching the im2col cols.
        w_mat = jnp.transpose(w, (2, 3, 1, 0)).reshape(kh * kw * cin, cout)
        k_pad = _round_up(w_mat.shape[0], 128)
        if k_pad > w_mat.shape[0]:
            w_mat = jnp.pad(w_mat, ((0, k_pad - w_mat.shape[0]), (0, 0)))
        convs.append((w_mat.astype(jnp.bfloat16),
                      b.reshape(1, -1).astype(jnp.float32), kh, stride))

    w1v, b1v, w2v, b2v = params["value"]
    w1a, b1a, w2a, b2a = params["advantage"]
    A = w2a.shape[1]

    # Conv3 output is (7, 7, 64) NHWC here, while PyTorch flattens NCHW:
    # permute FC1 rows once so feat_nhwc @ w1 == feat_nchw @ w1_orig.
    def nhwc_rows(w):
        return jnp.transpose(w.reshape(64, 7, 7, -1), (1, 2, 0, 3)).reshape(3136, -1)

    w1 = jnp.concatenate([nhwc_rows(w1v), nhwc_rows(w1a)], axis=1)     # (3136, 512)
    b1 = jnp.concatenate([b1v, b1a]).reshape(1, -1)
    k_head = _round_up(w1.shape[0], TK_HEAD)                            # 3136 -> 3584
    w1 = jnp.pad(w1, ((0, k_head - w1.shape[0]), (0, 0)))

    # Fold  q = value + (adv - mean(adv))  into a single (2*HIDDEN, A) weight,
    # then zero-pad its columns to 128 lanes so the kernel's final store is
    # a full unmasked 128-lane vst.
    center = jnp.eye(A, dtype=jnp.float32) - 1.0 / A
    w2 = jnp.concatenate([w2v @ jnp.ones((1, A), jnp.float32), w2a @ center], axis=0)
    b2 = (b2v + b2a @ center).reshape(1, -1)
    w2 = jnp.pad(w2, ((0, 0), (0, A_PAD - A)))
    b2 = jnp.pad(b2, ((0, 0), (0, A_PAD - A)))

    return {"convs": convs,
            "w1": w1.astype(jnp.bfloat16), "b1": b1.astype(jnp.float32),
            "w2": w2.astype(jnp.bfloat16), "b2": b2.astype(jnp.float32),
            "k_head": k_head, "num_actions": A}


# ----------------------------------------------------------------------------
# Pure-JAX f32 reference (mirrors the PyTorch forward exactly)
# ----------------------------------------------------------------------------
def reference_forward(obs, params):
    x = obs
    for (w, b, stride) in params["convs"]:
        x = lax.conv_general_dilated(
            x, w, window_strides=(stride, stride), padding="VALID",
            dimension_numbers=("NCHW", "OIHW", "NCHW"), precision=HIGHEST)
        x = jnp.maximum(x + b[None, :, None, None], 0.0)
    f = x.reshape(x.shape[0], -1)

    w1v, b1v, w2v, b2v = params["value"]
    w1a, b1a, w2a, b2a = params["advantage"]
    hv = jnp.maximum(jnp.dot(f, w1v, precision=HIGHEST) + b1v, 0.0)
    value = jnp.dot(hv, w2v, precision=HIGHEST) + b2v
    ha = jnp.maximum(jnp.dot(f, w1a, precision=HIGHEST) + b1a, 0.0)
    adv = jnp.dot(ha, w2a, precision=HIGHEST) + b2a
    adv = adv - jnp.mean(adv, axis=-1, keepdims=True)
    return value + adv


if __name__ == "__main__":
    key = jax.random.PRNGKey(0)
    pkey, okey = jax.random.split(key)

    params = init_params(pkey)
    prepped = prepare_params(params)
    # image_shape must be (84, 84) and num_channels 4 per the module asserts.
    obs = jax.random.normal(okey, (2, 4, 84, 84), jnp.float32)

    fwd = jax.jit(lambda o: dqn_atari_critic(o, prepped))
    q = jax.block_until_ready(fwd(obs))

    q_ref = jax.block_until_ready(reference_forward(obs, params))
    assert q.shape == (2, NUM_ACTIONS), q.shape
    # bf16 MXU math vs f32 HIGHEST reference: expected max |diff| is a few 1e-3.
    assert jnp.allclose(q, q_ref, rtol=1e-2, atol=1e-2), \
        f"max abs diff {jnp.max(jnp.abs(q - q_ref))}"

    print("KERNEL_OK")
</pallas_src>

<mosaic_0001>
module attributes {stable_mosaic.version = 11 : i64} {
  func.func @_conv_mm_kernel(%arg0: i32, %arg1: memref<400x256xbf16, #tpu.memory_space<vmem>>, %arg2: memref<256x16xbf16, #tpu.memory_space<vmem>>, %arg3: memref<1x16xf32, #tpu.memory_space<vmem>>, %arg4: memref<400x16xbf16, #tpu.memory_space<vmem>>) attributes {dimension_semantics = [#tpu.dimension_semantics<parallel>], iteration_bounds = array<i64: 2>, scalar_prefetch = 0 : i64, scratch_operands = 0 : i64, tpu.core_type = #tpu.core_type<tc>, window_params = [{transform_indices = @transform_0, window_bounds = array<i64: 400, 256>}, {pipeline_mode = #tpu.pipeline_mode<synchronous>, transform_indices = @transform_1, window_bounds = array<i64: 256, 16>}, {pipeline_mode = #tpu.pipeline_mode<synchronous>, transform_indices = @transform_2, window_bounds = array<i64: 1, 16>}, {transform_indices = @transform_3, window_bounds = array<i64: 400, 16>}]} {
    %c0 = arith.constant 0 : index
    %c0_0 = arith.constant 0 : index
    %0 = vector.load %arg1[%c0, %c0_0] : memref<400x256xbf16, #tpu.memory_space<vmem>>, vector<400x256xbf16>
    %c0_1 = arith.constant 0 : index
    %c0_2 = arith.constant 0 : index
    %1 = vector.load %arg2[%c0_1, %c0_2] : memref<256x16xbf16, #tpu.memory_space<vmem>>, vector<256x16xbf16>
    %cst = arith.constant dense<0.000000e+00> : vector<400x16xf32>
    %2 = tpu.matmul %0, %1, %cst {dimension_numbers = #tpu.dot_dimension_numbers<[1], [0], [0], [1], [0, 0, 1, 1], [], []>} : vector<400x256xbf16>, vector<256x16xbf16>, vector<400x16xf32> -> vector<400x16xf32>
    %c0_3 = arith.constant 0 : index
    %c0_4 = arith.constant 0 : index
    %3 = vector.load %arg3[%c0_3, %c0_4] : memref<1x16xf32, #tpu.memory_space<vmem>>, vector<1x16xf32>
    %4 = vector.broadcast %3 : vector<1x16xf32> to vector<400x16xf32>
    %5 = arith.addf %2, %4 : vector<400x16xf32>
    %cst_5 = arith.constant 0.000000e+00 : f32
    %6 = vector.broadcast %cst_5 : f32 to vector<400x16xf32>
    %7 = arith.maximumf %5, %6 : vector<400x16xf32>
    %8 = arith.truncf %7 : vector<400x16xf32> to vector<400x16xbf16>
    %c0_6 = arith.constant 0 : index
    %c0_7 = arith.constant 0 : index
    %9 = vector.load %arg4[%c0_6, %c0_7] : memref<400x16xbf16, #tpu.memory_space<vmem>>, vector<400x16xbf16>
    tpu.vector_store %arg4[%c0_6, %c0_7], %8 {strides = array<i32>} : memref<400x16xbf16, #tpu.memory_space<vmem>>, vector<400x16xbf16>,
    return
  }
  func.func @transform_0(%arg0: i32) -> (i32, i32) {
    %c0_i32 = arith.constant 0 : i32
    %c0_i32_0 = arith.constant 0 : i32
    return %arg0, %c0_i32 : i32, i32
  }
  func.func @transform_1(%arg0: i32) -> (i32, i32) {
    %c0_i32 = arith.constant 0 : i32
    %c0_i32_0 = arith.constant 0 : i32
    %c0_i32_1 = arith.constant 0 : i32
    return %c0_i32, %c0_i32_0 : i32, i32
  }
  func.func @transform_2(%arg0: i32) -> (i32, i32) {
    %c0_i32 = arith.constant 0 : i32
    %c0_i32_0 = arith.constant 0 : i32
    %c0_i32_1 = arith.constant 0 : i32
    return %c0_i32, %c0_i32_0 : i32, i32
  }
  func.func @transform_3(%arg0: i32) -> (i32, i32) {
    %c0_i32 = arith.constant 0 : i32
    %c0_i32_0 = arith.constant 0 : i32
    return %arg0, %c0_i32 : i32, i32
  }
}

module attributes {stable_mosaic.version = 11 : i64} {
  func.func @_conv_mm_kernel(%arg0: i32, %arg1: memref<168x256xbf16, #tpu.memory_space<vmem>>, %arg2: memref<256x32xbf16, #tpu.memory_space<vmem>>, %arg3: memref<1x32xf32, #tpu.memory_space<vmem>>, %arg4: memref<168x32xbf16, #tpu.memory_space<vmem>>) attributes {dimension_semantics = [#tpu.dimension_semantics<parallel>], iteration_bounds = array<i64: 1>, scalar_prefetch = 0 : i64, scratch_operands = 0 : i64, tpu.core_type = #tpu.core_type<tc>, window_params = [{transform_indices = @transform_0, window_bounds = array<i64: 168, 256>}, {pipeline_mode = #tpu.pipeline_mode<synchronous>, transform_indices = @transform_1, window_bounds = array<i64: 256, 32>}, {pipeline_mode = #tpu.pipeline_mode<synchronous>, transform_indices = @transform_2, window_bounds = array<i64: 1, 32>}, {transform_indices = @transform_3, window_bounds = array<i64: 168, 32>}]} {
    %c0 = arith.constant 0 : index
    %c0_0 = arith.constant 0 : index
    %0 = vector.load %arg1[%c0, %c0_0] : memref<168x256xbf16, #tpu.memory_space<vmem>>, vector<168x256xbf16>
    %c0_1 = arith.constant 0 : index
    %c0_2 = arith.constant 0 : index
    %1 = vector.load %arg2[%c0_1, %c0_2] : memref<256x32xbf16, #tpu.memory_space<vmem>>, vector<256x32xbf16>
    %cst = arith.constant dense<0.000000e+00> : vector<168x32xf32>
    %2 = tpu.matmul %0, %1, %cst {dimension_numbers = #tpu.dot_dimension_numbers<[1], [0], [0], [1], [0, 0, 1, 1], [], []>} : vector<168x256xbf16>, vector<256x32xbf16>, vector<168x32xf32> -> vector<168x32xf32>
    %c0_3 = arith.constant 0 : index
    %c0_4 = arith.constant 0 : index
    %3 = vector.load %arg3[%c0_3, %c0_4] : memref<1x32xf32, #tpu.memory_space<vmem>>, vector<1x32xf32>
    %4 = vector.broadcast %3 : vector<1x32xf32> to vector<168x32xf32>
    %5 = arith.addf %2, %4 : vector<168x32xf32>
    %cst_5 = arith.constant 0.000000e+00 : f32
    %6 = vector.broadcast %cst_5 : f32 to vector<168x32xf32>
    %7 = arith.maximumf %5, %6 : vector<168x32xf32>
    %8 = arith.truncf %7 : vector<168x32xf32> to vector<168x32xbf16>
    %c0_6 = arith.constant 0 : index
    %c0_7 = arith.constant 0 : index
    %9 = vector.load %arg4[%c0_6, %c0_7] : memref<168x32xbf16, #tpu.memory_space<vmem>>, vector<168x32xbf16>
    tpu.vector_store %arg4[%c0_6, %c0_7], %8 {strides = array<i32>} : memref<168x32xbf16, #tpu.memory_space<vmem>>, vector<168x32xbf16>,
    return
  }
  func.func @transform_0(%arg0: i32) -> (i32, i32) {
    %c0_i32 = arith.constant 0 : i32
    %c0_i32_0 = arith.constant 0 : i32
    return %arg0, %c0_i32 : i32, i32
  }
  func.func @transform_1(%arg0: i32) -> (i32, i32) {
    %c0_i32 = arith.constant 0 : i32
    %c0_i32_0 = arith.constant 0 : i32
    %c0_i32_1 = arith.constant 0 : i32
    return %c0_i32, %c0_i32_0 : i32, i32
  }
  func.func @transform_2(%arg0: i32) -> (i32, i32) {
    %c0_i32 = arith.constant 0 : i32
    %c0_i32_0 = arith.constant 0 : i32
    %c0_i32_1 = arith.constant 0 : i32
    return %c0_i32, %c0_i32_0 : i32, i32
  }
  func.func @transform_3(%arg0: i32) -> (i32, i32) {
    %c0_i32 = arith.constant 0 : i32
    %c0_i32_0 = arith.constant 0 : i32
    return %arg0, %c0_i32 : i32, i32
  }
}

module attributes {stable_mosaic.version = 11 : i64} {
  func.func @_conv_mm_kernel(%arg0: i32, %arg1: memref<104x384xbf16, #tpu.memory_space<vmem>>, %arg2: memref<384x64xbf16, #tpu.memory_space<vmem>>, %arg3: memref<1x64xf32, #tpu.memory_space<vmem>>, %arg4: memref<104x64xbf16, #tpu.memory_space<vmem>>) attributes {dimension_semantics = [#tpu.dimension_semantics<parallel>], iteration_bounds = array<i64: 1>, scalar_prefetch = 0 : i64, scratch_operands = 0 : i64, tpu.core_type = #tpu.core_type<tc>, window_params = [{transform_indices = @transform_0, window_bounds = array<i64: 104, 384>}, {pipeline_mode = #tpu.pipeline_mode<synchronous>, transform_indices = @transform_1, window_bounds = array<i64: 384, 64>}, {pipeline_mode = #tpu.pipeline_mode<synchronous>, transform_indices = @transform_2, window_bounds = array<i64: 1, 64>}, {transform_indices = @transform_3, window_bounds = array<i64: 104, 64>}]} {
    %c0 = arith.constant 0 : index
    %c0_0 = arith.constant 0 : index
    %0 = vector.load %arg1[%c0, %c0_0] : memref<104x384xbf16, #tpu.memory_space<vmem>>, vector<104x384xbf16>
    %c0_1 = arith.constant 0 : index
    %c0_2 = arith.constant 0 : index
    %1 = vector.load %arg2[%c0_1, %c0_2] : memref<384x64xbf16, #tpu.memory_space<vmem>>, vector<384x64xbf16>
    %cst = arith.constant dense<0.000000e+00> : vector<104x64xf32>
    %2 = tpu.matmul %0, %1, %cst {dimension_numbers = #tpu.dot_dimension_numbers<[1], [0], [0], [1], [0, 0, 1, 1], [], []>} : vector<104x384xbf16>, vector<384x64xbf16>, vector<104x64xf32> -> vector<104x64xf32>
    %c0_3 = arith.constant 0 : index
    %c0_4 = arith.constant 0 : index
    %3 = vector.load %arg3[%c0_3, %c0_4] : memref<1x64xf32, #tpu.memory_space<vmem>>, vector<1x64xf32>
    %4 = vector.broadcast %3 : vector<1x64xf32> to vector<104x64xf32>
    %5 = arith.addf %2, %4 : vector<104x64xf32>
    %cst_5 = arith.constant 0.000000e+00 : f32
    %6 = vector.broadcast %cst_5 : f32 to vector<104x64xf32>
    %7 = arith.maximumf %5, %6 : vector<104x64xf32>
    %8 = arith.truncf %7 : vector<104x64xf32> to vector<104x64xbf16>
    %c0_6 = arith.constant 0 : index
    %c0_7 = arith.constant 0 : index
    %9 = vector.load %arg4[%c0_6, %c0_7] : memref<104x64xbf16, #tpu.memory_space<vmem>>, vector<104x64xbf16>
    tpu.vector_store %arg4[%c0_6, %c0_7], %8 {strides = array<i32>} : memref<104x64xbf16, #tpu.memory_space<vmem>>, vector<104x64xbf16>,
    return
  }
  func.func @transform_0(%arg0: i32) -> (i32, i32) {
    %c0_i32 = arith.constant 0 : i32
    %c0_i32_0 = arith.constant 0 : i32
    return %arg0, %c0_i32 : i32, i32
  }
  func.func @transform_1(%arg0: i32) -> (i32, i32) {
    %c0_i32 = arith.constant 0 : i32
    %c0_i32_0 = arith.constant 0 : i32
    %c0_i32_1 = arith.constant 0 : i32
    return %c0_i32, %c0_i32_0 : i32, i32
  }
  func.func @transform_2(%arg0: i32) -> (i32, i32) {
    %c0_i32 = arith.constant 0 : i32
    %c0_i32_0 = arith.constant 0 : i32
    %c0_i32_1 = arith.constant 0 : i32
    return %c0_i32, %c0_i32_0 : i32, i32
  }
  func.func @transform_3(%arg0: i32) -> (i32, i32) {
    %c0_i32 = arith.constant 0 : i32
    %c0_i32_0 = arith.constant 0 : i32
    return %arg0, %c0_i32 : i32, i32
  }
}

module attributes {stable_mosaic.version = 11 : i64} {
  func.func @_dueling_head_kernel(%arg0: i32, %arg1: memref<2x512xbf16, #tpu.memory_space<vmem>>, %arg2: memref<512x512xbf16, #tpu.memory_space<vmem>>, %arg3: memref<1x512xf32, #tpu.memory_space<vmem>>, %arg4: memref<512x128xbf16, #tpu.memory_space<vmem>>, %arg5: memref<1x128xf32, #tpu.memory_space<vmem>>, %arg6: memref<2x128xf32, #tpu.memory_space<vmem>>, %arg7: memref<2x512xf32, #tpu.memory_space<vmem>>) attributes {dimension_semantics = [#tpu.dimension_semantics<arbitrary>], iteration_bounds = array<i64: 7>, scalar_prefetch = 0 : i64, scratch_operands = 1 : i64, tpu.core_type = #tpu.core_type<tc>, window_params = [{transform_indices = @transform_0, window_bounds = array<i64: 2, 512>}, {transform_indices = @transform_1, window_bounds = array<i64: 512, 512>}, {pipeline_mode = #tpu.pipeline_mode<synchronous>, transform_indices = @transform_2, window_bounds = array<i64: 1, 512>}, {pipeline_mode = #tpu.pipeline_mode<synchronous>, transform_indices = @transform_3, window_bounds = array<i64: 512, 128>}, {pipeline_mode = #tpu.pipeline_mode<synchronous>, transform_indices = @transform_4, window_bounds = array<i64: 1, 128>}, {pipeline_mode = #tpu.pipeline_mode<synchronous>, transform_indices = @transform_5, window_bounds = array<i64: 2, 128>}]} {
    %c0_i32 = arith.constant 0 : i32
    %0 = arith.cmpi eq, %arg0, %c0_i32 : i32
    %1 = arith.extui %0 : i1 to i32
    %c0_i32_0 = arith.constant 0 : i32
    %2 = arith.cmpi ne, %1, %c0_i32_0 : i32
    scf.if %2 {
      %cst_9 = arith.constant 0.000000e+00 : f32
      %12 = vector.broadcast %cst_9 : f32 to vector<2x512xf32>
      %c0_10 = arith.constant 0 : index
      %c0_11 = arith.constant 0 : index
      %13 = vector.load %arg7[%c0_10, %c0_11] : memref<2x512xf32, #tpu.memory_space<vmem>>, vector<2x512xf32>
      tpu.vector_store %arg7[%c0_10, %c0_11], %12 {strides = array<i32>} : memref<2x512xf32, #tpu.memory_space<vmem>>, vector<2x512xf32>,
    } else {
    }
    %c0 = arith.constant 0 : index
    %c0_1 = arith.constant 0 : index
    %3 = vector.load %arg7[%c0, %c0_1] : memref<2x512xf32, #tpu.memory_space<vmem>>, vector<2x512xf32>
    %c0_2 = arith.constant 0 : index
    %c0_3 = arith.constant 0 : index
    %4 = vector.load %arg1[%c0_2, %c0_3] : memref<2x512xbf16, #tpu.memory_space<vmem>>, vector<2x512xbf16>
    %c0_4 = arith.constant 0 : index
    %c0_5 = arith.constant 0 : index
    %5 = vector.load %arg2[%c0_4, %c0_5] : memref<512x512xbf16, #tpu.memory_space<vmem>>, vector<512x512xbf16>
    %cst = arith.constant dense<0.000000e+00> : vector<2x512xf32>
    %6 = tpu.matmul %4, %5, %cst {dimension_numbers = #tpu.dot_dimension_numbers<[1], [0], [0], [1], [0, 0, 1, 1], [], []>} : vector<2x512xbf16>, vector<512x512xbf16>, vector<2x512xf32> -> vector<2x512xf32>
    %7 = arith.addf %3, %6 : vector<2x512xf32>
    %c0_6 = arith.constant 0 : index
    %c0_7 = arith.constant 0 : index
    %8 = vector.load %arg7[%c0_6, %c0_7] : memref<2x512xf32, #tpu.memory_space<vmem>>, vector<2x512xf32>
    tpu.vector_store %arg7[%c0_6, %c0_7], %7 {strides = array<i32>} : memref<2x512xf32, #tpu.memory_space<vmem>>, vector<2x512xf32>,
    %c6_i32 = arith.constant 6 : i32
    %9 = arith.cmpi eq, %arg0, %c6_i32 : i32
    %10 = arith.extui %9 : i1 to i32
    %c0_i32_8 = arith.constant 0 : i32
    %11 = arith.cmpi ne, %10, %c0_i32_8 : i32
    scf.if %11 {
      %c0_9 = arith.constant 0 : index
      %c0_10 = arith.constant 0 : index
      %12 = vector.load %arg7[%c0_9, %c0_10] : memref<2x512xf32, #tpu.memory_space<vmem>>, vector<2x512xf32>
      %c0_11 = arith.constant 0 : index
      %c0_12 = arith.constant 0 : index
      %13 = vector.load %arg3[%c0_11, %c0_12] : memref<1x512xf32, #tpu.memory_space<vmem>>, vector<1x512xf32>
      %14 = vector.broadcast %13 : vector<1x512xf32> to vector<2x512xf32>
      %15 = arith.addf %12, %14 : vector<2x512xf32>
      %cst_13 = arith.constant 0.000000e+00 : f32
      %16 = vector.broadcast %cst_13 : f32 to vector<2x512xf32>
      %17 = arith.maximumf %15, %16 : vector<2x512xf32>
      %18 = arith.truncf %17 : vector<2x512xf32> to vector<2x512xbf16>
      %c0_14 = arith.constant 0 : index
      %c0_15 = arith.constant 0 : index
      %19 = vector.load %arg4[%c0_14, %c0_15] : memref<512x128xbf16, #tpu.memory_space<vmem>>, vector<512x128xbf16>
      %cst_16 = arith.constant dense<0.000000e+00> : vector<2x128xf32>
      %20 = tpu.matmul %18, %19, %cst_16 {dimension_numbers = #tpu.dot_dimension_numbers<[1], [0], [0], [1], [0, 0, 1, 1], [], []>} : vector<2x512xbf16>, vector<512x128xbf16>, vector<2x128xf32> -> vector<2x128xf32>
      %c0_17 = arith.constant 0 : index
      %c0_18 = arith.constant 0 : index
      %21 = vector.load %arg5[%c0_17, %c0_18] : memref<1x128xf32, #tpu.memory_space<vmem>>, vector<1x128xf32>
      %22 = vector.broadcast %21 : vector<1x128xf32> to vector<2x128xf32>
      %23 = arith.addf %20, %22 : vector<2x128xf32>
      %c0_19 = arith.constant 0 : index
      %c0_20 = arith.constant 0 : index
      %24 = vector.load %arg6[%c0_19, %c0_20] : memref<2x128xf32, #tpu.memory_space<vmem>>, vector<2x128xf32>
      tpu.vector_store %arg6[%c0_19, %c0_20], %23 {strides = array<i32>} : memref<2x128xf32, #tpu.memory_space<vmem>>, vector<2x128xf32>,
    } else {
    }
    return
  }
  func.func @transform_0(%arg0: i32) -> (i32, i32) {
    %c0_i32 = arith.constant 0 : i32
    %c0_i32_0 = arith.constant 0 : i32
    return %c0_i32, %arg0 : i32, i32
  }
  func.func @transform_1(%arg0: i32) -> (i32, i32) {
    %c0_i32 = arith.constant 0 : i32
    %c0_i32_0 = arith.constant 0 : i32
    return %arg0, %c0_i32 : i32, i32
  }
  func.func @transform_2(%arg0: i32) -> (i32, i32) {
    %c0_i32 = arith.constant 0 : i32
    %c0_i32_0 = arith.constant 0 : i32
    %c0_i32_1 = arith.constant 0 : i32
    return %c0_i32, %c0_i32_0 : i32, i32
  }
  func.func @transform_3(%arg0: i32) -> (i32, i32) {
    %c0_i32 = arith.constant 0 : i32
    %c0_i32_0 = arith.constant 0 : i32
    %c0_i32_1 = arith.constant 0 : i32
    return %c0_i32, %c0_i32_0 : i32, i32
  }
  func.func @transform_4(%arg0: i32) -> (i32, i32) {
    %c0_i32 = arith.constant 0 : i32
    %c0_i32_0 = arith.constant 0 : i32
    %c0_i32_1 = arith.constant 0 : i32
    return %c0_i32, %c0_i32_0 : i32, i32
  }
  func.func @transform_5(%arg0: i32) -> (i32, i32) {
    %c0_i32 = arith.constant 0 : i32
    %c0_i32_0 = arith.constant 0 : i32
    %c0_i32_1 = arith.constant 0 : i32
    return %c0_i32, %c0_i32_0 : i32, i32
  }
}

</mosaic_0001>

<bundles_post_ra>
// kernel: _lambda_.4
= control target key start
LH: loop header
LB: loop body
LE: loop exit
PB: predicated region body
PF: predicated region fallthrough
CT: control target
= control target key end

     0   :  { %s1478_s12 = smov 0   ;;  %s1812_s0 = inlined_call_operand.vmem [shape: bf16[800,256], index: 0, kind: input, shape index: {}]   ;;  %s1813_s1 = inlined_call_operand.vmem [shape: bf16[256,16], index: 1, kind: input, shape index: {}]   ;;  %s1814_s2 = inlined_call_operand.vmem [shape: f32[1,16], index: 2, kind: input, shape index: {}]   ;;  %s1815_s3 = inlined_call_operand.vmem [shape: bf16[800,16], index: 3, kind: output, shape index: {}]  }
   0x1 LB: > { %s1084_s13 = sadd.s32 4294967295, %s1456_s12   ;;  %p1088_p0 = scmp.ge.s32.totalorder %s1456_s12, 1  ;;  %s1456_s12 = sphi %s1478_s12, %s13_s12  }
   0x2   : > { %p139_p1 = scmp.lt.s32.totalorder %s1456_s12, 3 }
   0x4   : > { %p140_p2 = pnand %p1088_p0, %p139_p1 }
   0x5   : > { %s164_s26 = smul.u32 (!%p140_p2), 50, %s1084_s13 }
   0x6   : > { %143 = sbr.rel (%p140_p2) target bundleno = 384 (0x180), region = 32 }
   0x7   : > { %p165_p3 = scmp.lt.s32.totalorder (!%p140_p2), %s164_s26, 99 }
   0xb   : > { %v1416_v0 = vld [vmem:[%s1813_s1 + $0x38] sm:$0xff]  ;;  %v1415_v2 = vld [vmem:[%s1813_s1 + $0x30] sm:$0xff]  ;;  %v1414_v4 = vld [vmem:[%s1813_s1 + $0x28] sm:$0xff]  ;;  %s1817_s26 = smov (!%p165_p3, %s164_s26), 99  ;;  %vm977_vm0 = vcmask 125952  }
   0xc   : > { %v1424_v1 = vld [vmem:[%s1813_s1 + $0x78] sm:$0xff]  ;;  %609 = vmatpush.bf16.msra.mxu0 %v1416_v0  ;;  %1425 = vmatpush.bf16.msra.mxu2 %v1416_v0  ;;  %v1423_v3 = vld [vmem:[%s1813_s1 + $0x70] sm:$0xff]  ;;  %v1422_v5 = vld [vmem:[%s1813_s1 + $0x68] sm:$0xff]  ;;  %s1358_s13 = sshll.u32 %s1817_s26, 3  ;;  %s1091_s28 = sshll.u32 %s1817_s26, 2 }
   0xd   : > { %743 = vmatpush.bf16.msra.mxu1 %v1424_v1  ;;  %1433 = vmatpush.bf16.msra.mxu3 %v1424_v1  ;;  %v1413_v6 = vld [vmem:[%s1813_s1 + $0x20] sm:$0xff]  ;;  %v1412_v8 = vld [vmem:[%s1813_s1 + $0x18] sm:$0xff]  ;;  %v1411_v10 = vld [vmem:[%s1813_s1 + $0x10] sm:$0xff]  ;;  %s1531_s18 = scalar_lea.vmem %s1812_s0, %s1358_s13  ;;  %s1624_s4 = scalar_lea.vmem %s1815_s3, %s1091_s28 }
   0xe   : > { %v1421_v7 = vld [vmem:[%s1813_s1 + $0x60] sm:$0xff]  ;;  %v1420_v9 = vld [vmem:[%s1813_s1 + $0x58] sm:$0xff]  ;;  %v1419_v11 = vld [vmem:[%s1813_s1 + $0x50] sm:$0xff] }
   0xf   : > { %v1410_v12 = vld [vmem:[%s1813_s1 + $0x8] sm:$0xff]  ;;  %v1409_v14 = vld [vmem:[%s1813_s1] sm:$0xff]  ;;  %v1385_v22 = vld [vmem:[%s1531_s18 + $0xd4] sm:$0xf] }
  0x10   : > { %610 = vmatpush.bf16.msra.mxu0 %v1415_v2  ;;  %1426 = vmatpush.bf16.msra.mxu2 %v1415_v2  ;;  %v1418_v13 = vld [vmem:[%s1813_s1 + $0x48] sm:$0xff]  ;;  %v1417_v15 = vld [vmem:[%s1813_s1 + $0x40] sm:$0xff]  ;;  %v1200_v23 = vld [vmem:[%s1531_s18 + $0xd8] sm:$0xf0] }
  0x11   : > { %744 = vmatpush.bf16.msra.mxu1 %v1423_v3  ;;  %1434 = vmatpush.bf16.msra.mxu3 %v1423_v3  ;;  %v1094_v16 = vld [vmem:[%s1531_s18] sm:$0xf]  ;;  %v1360_v17 = vld [vmem:[%s1531_s18 + $0x4] sm:$0xf0]  ;;  %v1359_v20 = vld [vmem:[%s1531_s18 + $0x4] sm:$0xf]  ;;  %v1203_v27 = vor.u32 %v1385_v22, %v1200_v23 }
  0x12   : > { %v1190_v18 = vld [vmem:[%s1531_s18 + $0xc0] sm:$0xf]  ;;  %v1384_v19 = vld [vmem:[%s1531_s18 + $0xc4] sm:$0xf0]  ;;  %v1096_v21 = vld [vmem:[%s1531_s18 + $0x8] sm:$0xf0]  ;;  %v1095_v24 = vor.u32 %v1360_v17, %v1094_v16 }
  0x13   : > { %v1191_v25 = vor.u32 %v1384_v19, %v1190_v18  ;;  %v1099_v26 = vor.u32 %v1359_v20, %v1096_v21  ;;  %v1102_v28 = vld [vmem:[%s1531_s18 + $0x10] sm:$0xf]  ;;  %v1362_v29 = vld [vmem:[%s1531_s18 + $0x14] sm:$0xf0]  ;;  %v1361_v32 = vld [vmem:[%s1531_s18 + $0x14] sm:$0xf] }
  0x14   : > { %611 = vmatpush.bf16.msra.mxu0 %v1414_v4  ;;  %1427 = vmatpush.bf16.msra.mxu2 %v1414_v4  ;;  %v1198_v30 = vld [vmem:[%s1531_s18 + $0xd0] sm:$0xf]  ;;  %v1386_v31 = vld [vmem:[%s1531_s18 + $0xd4] sm:$0xf0]  ;;  %v1104_v33 = vld [vmem:[%s1531_s18 + $0x18] sm:$0xf0]  ;;  %v1103_v36 = vor.u32 %v1362_v29, %v1102_v28 }
  0x15   : > { %745 = vmatpush.bf16.msra.mxu1 %v1422_v5  ;;  %1435 = vmatpush.bf16.msra.mxu3 %v1422_v5  ;;  %v1387_v34 = vld [vmem:[%s1531_s18 + $0xe4] sm:$0xf]  ;;  %v1208_v35 = vld [vmem:[%s1531_s18 + $0xe8] sm:$0xf0]  ;;  %v1199_v37 = vor.u32 %v1386_v31, %v1198_v30  ;;  %v1107_v38 = vor.u32 %v1361_v32, %v1104_v33  ;;  %v1110_v40 = vld [vmem:[%s1531_s18 + $0x20] sm:$0xf] }
  0x16   : > { %v1211_v39 = vor.u32 %v1387_v34, %v1208_v35  ;;  %v1364_v41 = vld [vmem:[%s1531_s18 + $0x24] sm:$0xf0]  ;;  %v1206_v42 = vld [vmem:[%s1531_s18 + $0xe0] sm:$0xf]  ;;  %v1363_v44 = vld [vmem:[%s1531_s18 + $0x24] sm:$0xf] }
  0x17   : > { %v1388_v43 = vld [vmem:[%s1531_s18 + $0xe4] sm:$0xf0]  ;;  %v1112_v45 = vld [vmem:[%s1531_s18 + $0x28] sm:$0xf0]  ;;  %v1389_v46 = vld [vmem:[%s1531_s18 + $0xf4] sm:$0xf]  ;;  %v1111_v48 = vor.u32 %v1364_v41, %v1110_v40 }
  0x18   : > { %612 = vmatpush.bf16.msra.mxu0 %v1413_v6  ;;  %1428 = vmatpush.bf16.msra.mxu2 %v1413_v6  ;;  %v1216_v47 = vld [vmem:[%s1531_s18 + $0xf8] sm:$0xf0]  ;;  %v1207_v49 = vor.u32 %v1388_v43, %v1206_v42  ;;  %v1115_v50 = vor.u32 %v1363_v44, %v1112_v45  ;;  %v1118_v52 = vld [vmem:[%s1531_s18 + $0x30] sm:$0xf]  ;;  %v1366_v53 = vld [vmem:[%s1531_s18 + $0x34] sm:$0xf0] }
  0x19   : > { %746 = vmatpush.bf16.msra.mxu1 %v1421_v7  ;;  %1436 = vmatpush.bf16.msra.mxu3 %v1421_v7  ;;  %v1219_v51 = vor.u32 %v1389_v46, %v1216_v47  ;;  %v1214_v54 = vld [vmem:[%s1531_s18 + $0xf0] sm:$0xf]  ;;  %v1390_v55 = vld [vmem:[%s1531_s18 + $0xf4] sm:$0xf0]  ;;  %v1365_v56 = vld [vmem:[%s1531_s18 + $0x34] sm:$0xf]  ;;  %v1119_v60 = vor.u32 %v1366_v53, %v1118_v52 }
  0x1a   : > { %v1120_v57 = vld [vmem:[%s1531_s18 + $0x38] sm:$0xf0]  ;;  %v1391_v58 = vld [vmem:[%s1531_s18 + $0x104] sm:$0xf]  ;;  %v1224_v59 = vld [vmem:[%s1531_s18 + $0x108] sm:$0xf0]  ;;  %v1215_v61 = vor.u32 %v1390_v55, %v1214_v54 }
  0x1b   : > { %v1123_v62 = vor.u32 %v1365_v56, %v1120_v57  ;;  %v1227_v63 = vor.u32 %v1391_v58, %v1224_v59  ;;  %v1126_v0 = vld [vmem:[%s1531_s18 + $0x40] sm:$0xf]  ;;  %v1368_v1 = vld [vmem:[%s1531_s18 + $0x44] sm:$0xf0]  ;;  %v1367_v4 = vld [vmem:[%s1531_s18 + $0x44] sm:$0xf] }
  0x1c   : > { %613 = vmatpush.bf16.msra.mxu0 %v1412_v8  ;;  %1429 = vmatpush.bf16.msra.mxu2 %v1412_v8  ;;  %v1222_v2 = vld [vmem:[%s1531_s18 + $0x100] sm:$0xf]  ;;  %v1392_v3 = vld [vmem:[%s1531_s18 + $0x104] sm:$0xf0]  ;;  %v1128_v5 = vld [vmem:[%s1531_s18 + $0x48] sm:$0xf0]  ;;  %v1127_v8 = vor.u32 %v1368_v1, %v1126_v0 }
  0x1d   : > { %747 = vmatpush.bf16.msra.mxu1 %v1420_v9  ;;  %1437 = vmatpush.bf16.msra.mxu3 %v1420_v9  ;;  %v1393_v6 = vld [vmem:[%s1531_s18 + $0x114] sm:$0xf]  ;;  %v1232_v7 = vld [vmem:[%s1531_s18 + $0x118] sm:$0xf0]  ;;  %v1223_v9 = vor.u32 %v1392_v3, %v1222_v2  ;;  %v1395_v18 = vld [vmem:[%s1531_s18 + $0x124] sm:$0xf] }
  0x1e   : > { %v1369_v16 = vld [vmem:[%s1531_s18 + $0x54] sm:$0xf]  ;;  %v1136_v17 = vld [vmem:[%s1531_s18 + $0x58] sm:$0xf0]  ;;  %v1240_v19 = vld [vmem:[%s1531_s18 + $0x128] sm:$0xf0] }
  0x1f   : > { %v1139_v22 = vor.u32 %v1369_v16, %v1136_v17  ;;  %v1243_v23 = vor.u32 %v1395_v18, %v1240_v19  ;;  %v1371_v28 = vld [vmem:[%s1531_s18 + $0x64] sm:$0xf]  ;;  %v1144_v29 = vld [vmem:[%s1531_s18 + $0x68] sm:$0xf0]  ;;  %v1397_v30 = vld [vmem:[%s1531_s18 + $0x134] sm:$0xf] }
  0x20   : > { %614 = vmatpush.bf16.msra.mxu0 %v1411_v10  ;;  %1430 = vmatpush.bf16.msra.mxu2 %v1411_v10  ;;  %v1131_v10 = vor.u32 %v1367_v4, %v1128_v5  ;;  %v1248_v31 = vld [vmem:[%s1531_s18 + $0x138] sm:$0xf0]  ;;  %v1147_v34 = vor.u32 %v1371_v28, %v1144_v29  ;;  %v1373_v40 = vld [vmem:[%s1531_s18 + $0x74] sm:$0xf]  ;;  %v1399_v42 = vld [vmem:[%s1531_s18 + $0x144] sm:$0xf] }
  0x21   : > { %748 = vmatpush.bf16.msra.mxu1 %v1419_v11  ;;  %1438 = vmatpush.bf16.msra.mxu3 %v1419_v11  ;;  %v1235_v11 = vor.u32 %v1393_v6, %v1232_v7  ;;  %v1251_v35 = vor.u32 %v1397_v30, %v1248_v31  ;;  %v1152_v41 = vld [vmem:[%s1531_s18 + $0x78] sm:$0xf0]  ;;  %v1256_v43 = vld [vmem:[%s1531_s18 + $0x148] sm:$0xf0]  ;;  %v1400_v52 = vld [vmem:[%s1531_s18 + $0x144] sm:$0xf0] }
  0x22   : > { %v1155_v46 = vor.u32 %v1373_v40, %v1152_v41  ;;  %v1259_v47 = vor.u32 %v1399_v42, %v1256_v43  ;;  %v1375_v53 = vld [vmem:[%s1531_s18 + $0x84] sm:$0xf]  ;;  %v1160_v54 = vld [vmem:[%s1531_s18 + $0x88] sm:$0xf0]  ;;  %v1401_v55 = vld [vmem:[%s1531_s18 + $0x154] sm:$0xf] }
  0x23   : > { %v1264_v56 = vld [vmem:[%s1531_s18 + $0x158] sm:$0xf0]  ;;  %v1403_v16 = vld [vmem:[%s1531_s18 + $0x164] sm:$0xf]  ;;  %v1272_v17 = vld [vmem:[%s1531_s18 + $0x168] sm:$0xf0] }
  0x24   : > { %615 = vmatpush.bf16.msra.mxu0 %v1410_v12  ;;  %1431 = vmatpush.bf16.msra.mxu2 %v1410_v12  ;;  %v1134_v12 = vld [vmem:[%s1531_s18 + $0x50] sm:$0xf]  ;;  %v1380_v41 = vld [vmem:[%s1531_s18 + $0xa4] sm:$0xf0]  ;;  %v1270_v42 = vld [vmem:[%s1531_s18 + $0x160] sm:$0xf] }
  0x25   : > { %749 = vmatpush.bf16.msra.mxu1 %v1418_v13  ;;  %1439 = vmatpush.bf16.msra.mxu3 %v1418_v13  ;;  %v1370_v13 = vld [vmem:[%s1531_s18 + $0x54] sm:$0xf0]  ;;  %v1404_v43 = vld [vmem:[%s1531_s18 + $0x164] sm:$0xf0] }
  0x26   : > { %v1135_v20 = vor.u32 %v1370_v13, %v1134_v12  ;;  %v1402_v12 = vld [vmem:[%s1531_s18 + $0x154] sm:$0xf0]  ;;  %v1377_v13 = vld [vmem:[%s1531_s18 + $0x94] sm:$0xf] }
  0x28   : > { %616 = vmatpush.bf16.msra.mxu0 %v1409_v14  ;;  %1432 = vmatpush.bf16.msra.mxu2 %v1409_v14  ;;  %v1230_v14 = vld [vmem:[%s1531_s18 + $0x110] sm:$0xf] }
  0x29   : > { %750 = vmatpush.bf16.msra.mxu1 %v1417_v15  ;;  %1440 = vmatpush.bf16.msra.mxu3 %v1417_v15  ;;  %v1394_v15 = vld [vmem:[%s1531_s18 + $0x114] sm:$0xf0] }
  0x2a   : > { %v1231_v21 = vor.u32 %v1394_v15, %v1230_v14  ;;  %v1168_v14 = vld [vmem:[%s1531_s18 + $0x98] sm:$0xf0] }
  0x2b   : > { %617 = vmatmul.bf16.vlgmr.msra.gmra.mxu0 %v1095_v24  ;;  %677 = vmatmul.bf16.vlgmr.msra.gmra.mxu2 %v1191_v25  ;;  %v1142_v24 = vld [vmem:[%s1531_s18 + $0x60] sm:$0xf]  ;;  %v1372_v25 = vld [vmem:[%s1531_s18 + $0x64] sm:$0xf0] }
  0x2c   : > { %751 = vmatmul.bf16.vlgmr.msra.gmra.mxu1 %v1099_v26  ;;  %816 = vmatmul.bf16.vlgmr.msra.gmra.mxu3 %v1203_v27  ;;  %v1238_v26 = vld [vmem:[%s1531_s18 + $0x120] sm:$0xf]  ;;  %v1396_v27 = vld [vmem:[%s1531_s18 + $0x124] sm:$0xf0]  ;;  %v1143_v32 = vor.u32 %v1372_v25, %v1142_v24  ;;  %v1171_v24 = vor.u32 %v1377_v13, %v1168_v14  ;;  %v1275_v25 = vor.u32 %v1403_v16, %v1272_v17  ;;  %v1278_v16 = vld [vmem:[%s1531_s18 + $0x170] sm:$0xf] }
  0x2d   : > { %v1239_v33 = vor.u32 %v1396_v27, %v1238_v26  ;;  %v1406_v17 = vld [vmem:[%s1531_s18 + $0x174] sm:$0xf0] }
  0x3b   : > { %622 = vmatmul.bf16.gmra.mxu0 %v1103_v36  ;;  %682 = vmatmul.bf16.gmra.mxu2 %v1199_v37  ;;  %v1150_v36 = vld [vmem:[%s1531_s18 + $0x70] sm:$0xf]  ;;  %v1374_v37 = vld [vmem:[%s1531_s18 + $0x74] sm:$0xf0] }
  0x3c   : > { %756 = vmatmul.bf16.gmra.mxu1 %v1107_v38  ;;  %821 = vmatmul.bf16.gmra.mxu3 %v1211_v39  ;;  %v1246_v38 = vld [vmem:[%s1531_s18 + $0x130] sm:$0xf]  ;;  %v1398_v39 = vld [vmem:[%s1531_s18 + $0x134] sm:$0xf0]  ;;  %v1151_v44 = vor.u32 %v1374_v37, %v1150_v36 }
  0x3d   : > { %v1247_v45 = vor.u32 %v1398_v39, %v1246_v38  ;;  %v1174_v38 = vld [vmem:[%s1531_s18 + $0xa0] sm:$0xf] }
  0x4b   : > { %627 = vmatmul.bf16.gmra.mxu0 %v1111_v48  ;;  %687 = vmatmul.bf16.gmra.mxu2 %v1207_v49  ;;  %v1609_v48 = vld [vmem:[%s1814_s2] ss:$0 sm:$0xff] }
  0x4c   : > { %761 = vmatmul.bf16.gmra.mxu1 %v1115_v50  ;;  %826 = vmatmul.bf16.gmra.mxu3 %v1219_v51  ;;  %v1158_v49 = vld [vmem:[%s1531_s18 + $0x80] sm:$0xf]  ;;  %v1376_v50 = vld [vmem:[%s1531_s18 + $0x84] sm:$0xf0] }
  0x4d   : > { %v1254_v51 = vld [vmem:[%s1531_s18 + $0x140] sm:$0xf]  ;;  %v1159_v57 = vor.u32 %v1376_v50, %v1158_v49  ;;  %v1405_v49 = vld [vmem:[%s1531_s18 + $0x174] sm:$0xf]  ;;  %v1280_v50 = vld [vmem:[%s1531_s18 + $0x178] sm:$0xf0] }
  0x4e   : > { %v1255_v58 = vor.u32 %v1400_v52, %v1254_v51 }
  0x5b   : > { %632 = vmatmul.bf16.gmra.mxu0 %v1119_v60  ;;  %692 = vmatmul.bf16.gmra.mxu2 %v1215_v61  ;;  %v1163_v60 = vor.u32 %v1375_v53, %v1160_v54  ;;  %v1267_v61 = vor.u32 %v1401_v55, %v1264_v56  ;;  %v1175_v54 = vor.u32 %v1380_v41, %v1174_v38 }
  0x5c   : > { %766 = vmatmul.bf16.gmra.mxu1 %v1123_v62  ;;  %831 = vmatmul.bf16.gmra.mxu3 %v1227_v63  ;;  %v1271_v55 = vor.u32 %v1404_v43, %v1270_v42 }
  0x6b   : > { %637 = vmatmul.bf16.gmra.mxu0 %v1127_v8  ;;  %697 = vmatmul.bf16.gmra.mxu2 %v1223_v9  ;;  %v1166_v9 = vld [vmem:[%s1531_s18 + $0x90] sm:$0xf] }
  0x6c   : > { %771 = vmatmul.bf16.gmra.mxu1 %v1131_v10  ;;  %836 = vmatmul.bf16.gmra.mxu3 %v1235_v11  ;;  %v1378_v10 = vld [vmem:[%s1531_s18 + $0x94] sm:$0xf0]  ;;  %v1262_v11 = vld [vmem:[%s1531_s18 + $0x150] sm:$0xf] }
  0x7b   : > { %642 = vmatmul.bf16.gmra.mxu0 %v1135_v20  ;;  %702 = vmatmul.bf16.gmra.mxu2 %v1231_v21  ;;  %v1167_v20 = vor.u32 %v1378_v10, %v1166_v9  ;;  %v1263_v21 = vor.u32 %v1402_v12, %v1262_v11  ;;  %v1182_v12 = vld [vmem:[%s1531_s18 + $0xb0] sm:$0xf] }
  0x7c   : > { %776 = vmatmul.bf16.gmra.mxu1 %v1139_v22  ;;  %841 = vmatmul.bf16.gmra.mxu3 %v1243_v23 }
  0x8b   : > { %647 = vmatmul.bf16.gmra.mxu0 %v1143_v32  ;;  %707 = vmatmul.bf16.gmra.mxu2 %v1239_v33 }
  0x8c   : > { %781 = vmatmul.bf16.gmra.mxu1 %v1147_v34  ;;  %846 = vmatmul.bf16.gmra.mxu3 %v1251_v35 }
  0x9b   : > { %652 = vmatmul.bf16.gmra.mxu0 %v1151_v44  ;;  %712 = vmatmul.bf16.gmra.mxu2 %v1247_v45  ;;  %v1379_v44 = vld [vmem:[%s1531_s18 + $0xa4] sm:$0xf]  ;;  %v1176_v45 = vld [vmem:[%s1531_s18 + $0xa8] sm:$0xf0] }
  0x9c   : > { %786 = vmatmul.bf16.gmra.mxu1 %v1155_v46  ;;  %851 = vmatmul.bf16.gmra.mxu3 %v1259_v47 }
  0xa8   : > { %v618_v59 = vpop.f32.mrf.mxu0 }
  0xa9   : > { %v619_v62 = vadd.f32 %v1609_v48, %v618_v59  ;;  %v752_v63 = vpop.f32.mrf.mxu1  ;;  %v1283_v59 = vor.u32 %v1405_v49, %v1280_v50 }
  0xab   : > { %v753_v0 = vadd.f32 %v752_v63, %v619_v62  ;;  %657 = vmatmul.bf16.gmra.mxu0 %v1159_v57  ;;  %717 = vmatmul.bf16.gmra.mxu2 %v1255_v58  ;;  %v1179_v58 = vor.u32 %v1379_v44, %v1176_v45 }
  0xac   : > { %791 = vmatmul.bf16.gmra.mxu1 %v1163_v60  ;;  %856 = vmatmul.bf16.gmra.mxu3 %v1267_v61 }
  0xad   : > { %v877_v1 = vmax.f32 %v753_v0, 0.0 }
  0xae   : > { %v1626_v2 = vpop.f32.mrf.mxu2 }
  0xaf   : > { %v927_v3 = vpack.c.bf16 %v877_v1, %v877_v1  ;;  %v817_v4 = vpop.f32.mrf.mxu3 }
  0xb0   : > { %v620_v5 = vpop.f32.mrf.mxu0 }
  0xb1   : > { %978 = vst.msk [vmem:[%s1624_s4] sm:$0xf] %vm977_vm0, %v927_v3  ;;  %v621_v6 = vadd.f32 %v1609_v48, %v620_v5  ;;  %v754_v7 = vpop.f32.mrf.mxu1 }
  0xb3   : > { %v755_v8 = vadd.f32 %v754_v7, %v621_v6 }
  0xb5   : > { %v878_v15 = vmax.f32 %v755_v8, 0.0 }
  0xb6   : > { %v1639_v18 = vpop.f32.mrf.mxu2 }
  0xb7   : > { %v928_v19 = vpack.c.bf16 %v878_v15, %v878_v15  ;;  %v819_v22 = vpop.f32.mrf.mxu3  ;;  %v1382_v15 = vld [vmem:[%s1531_s18 + $0xb4] sm:$0xf0] }
  0xb8   : > { %v623_v23 = vpop.f32.mrf.mxu0 }
  0xb9   : > { %979 = vst.msk [vmem:[%s1624_s4 + $0x4] sm:$0xf] %vm977_vm0, %v928_v19  ;;  %v624_v26 = vadd.f32 %v1609_v48, %v623_v23  ;;  %v757_v27 = vpop.f32.mrf.mxu1  ;;  %v1381_v19 = vld [vmem:[%s1531_s18 + $0xb4] sm:$0xf]  ;;  %v1407_v23 = vld [vmem:[%s1531_s18 + $0x184] sm:$0xf] }
  0xbb   : > { %v758_v28 = vadd.f32 %v757_v27, %v624_v26  ;;  %662 = vmatmul.bf16.gmra.mxu0 %v1167_v20  ;;  %722 = vmatmul.bf16.gmra.mxu2 %v1263_v21  ;;  %v1184_v20 = vld [vmem:[%s1531_s18 + $0xb8] sm:$0xf0] }
  0xbc   : > { %796 = vmatmul.bf16.gmra.mxu1 %v1171_v24  ;;  %861 = vmatmul.bf16.gmra.mxu3 %v1275_v25  ;;  %v1288_v24 = vld [vmem:[%s1531_s18 + $0x188] sm:$0xf0] }
  0xbd   : > { %v879_v29 = vmax.f32 %v758_v28, 0.0  ;;  %v1183_v28 = vor.u32 %v1382_v15, %v1182_v12 }
  0xbe   : > { %v683_v30 = vpop.f32.mrf.mxu2 }
  0xbf   : > { %v929_v31 = vpack.c.bf16 %v879_v29, %v879_v29  ;;  %v684_v32 = vadd.f32 %v1609_v48, %v683_v30  ;;  %v822_v33 = vpop.f32.mrf.mxu3  ;;  %v1279_v29 = vor.u32 %v1406_v17, %v1278_v16 }
  0xc0   : > { %v625_v34 = vpop.f32.mrf.mxu0 }
  0xc1   : > { %980 = vst.msk [vmem:[%s1624_s4 + $0x8] sm:$0xf] %vm977_vm0, %v929_v31  ;;  %v818_v35 = vadd.f32 %v817_v4, %v684_v32  ;;  %v626_v36 = vadd.f32 %v1609_v48, %v625_v34  ;;  %v759_v37 = vpop.f32.mrf.mxu1  ;;  %v1187_v32 = vor.u32 %v1381_v19, %v1184_v20 }
  0xc3   : > { %v903_v39 = vmax.f32 %v818_v35, 0.0  ;;  %v760_v40 = vadd.f32 %v759_v37, %v626_v36 }
  0xc5   : > { %v953_v46 = vpack.c.bf16 %v903_v39, %v903_v39  ;;  %v880_v47 = vmax.f32 %v760_v40, 0.0 }
  0xc6   : > { %v685_v51 = vpop.f32.mrf.mxu2 }
  0xc7   : > { %1004 = vst.msk [vmem:[%s1624_s4 + $0x68] sm:$0xf] %vm977_vm0, %v953_v46  ;;  %v930_v52 = vpack.c.bf16 %v880_v47, %v880_v47  ;;  %v686_v53 = vadd.f32 %v1609_v48, %v685_v51  ;;  %v824_v56 = vpop.f32.mrf.mxu3 }
  0xc8   : > { %v628_v57 = vpop.f32.mrf.mxu0 }
  0xc9   : > { %981 = vst.msk [vmem:[%s1624_s4 + $0xc] sm:$0xf] %vm977_vm0, %v930_v52  ;;  %v820_v60 = vadd.f32 %v819_v22, %v686_v53  ;;  %v629_v61 = vadd.f32 %v1609_v48, %v628_v57  ;;  %v762_v62 = vpop.f32.mrf.mxu1  ;;  %v1286_v52 = vld [vmem:[%s1531_s18 + $0x180] sm:$0xf]  ;;  %v1408_v53 = vld [vmem:[%s1531_s18 + $0x184] sm:$0xf0] }
  0xca   : > { %v1192_v57 = vld [vmem:[%s1531_s18 + $0xc8] sm:$0xf0] }
  0xcb   : > { %v904_v63 = vmax.f32 %v820_v60, 0.0  ;;  %v763_v0 = vadd.f32 %v762_v62, %v629_v61  ;;  %667 = vmatmul.bf16.gmra.mxu0 %v1175_v54  ;;  %727 = vmatmul.bf16.gmra.mxu2 %v1271_v55  ;;  %v1287_v61 = vor.u32 %v1408_v53, %v1286_v52 }
  0xcc   : > { %801 = vmatmul.bf16.gmra.mxu1 %v1179_v58  ;;  %866 = vmatmul.bf16.gmra.mxu3 %v1283_v59 }
  0xcd   : > { %v954_v1 = vpack.c.bf16 %v904_v63, %v904_v63  ;;  %v881_v3 = vmax.f32 %v763_v0, 0.0 }
  0xce   : > { %v688_v4 = vpop.f32.mrf.mxu2 }
  0xcf   : > { %1005 = vst.msk [vmem:[%s1624_s4 + $0x6c] sm:$0xf] %vm977_vm0, %v954_v1  ;;  %v931_v5 = vpack.c.bf16 %v881_v3, %v881_v3  ;;  %v689_v6 = vadd.f32 %v1609_v48, %v688_v4  ;;  %v827_v7 = vpop.f32.mrf.mxu3 }
  0xd0   : > { %v630_v8 = vpop.f32.mrf.mxu0 }
  0xd1   : > { %982 = vst.msk [vmem:[%s1624_s4 + $0x10] sm:$0xf] %vm977_vm0, %v931_v5  ;;  %v823_v9 = vadd.f32 %v822_v33, %v689_v6  ;;  %v631_v10 = vadd.f32 %v1609_v48, %v630_v8  ;;  %v764_v11 = vpop.f32.mrf.mxu1  ;;  %v1291_v33 = vor.u32 %v1407_v23, %v1288_v24 }
  0xd3   : > { %v905_v13 = vmax.f32 %v823_v9, 0.0  ;;  %v765_v14 = vadd.f32 %v764_v11, %v631_v10 }
  0xd5   : > { %v955_v21 = vpack.c.bf16 %v905_v13, %v905_v13  ;;  %v882_v22 = vmax.f32 %v765_v14, 0.0 }
  0xd6   : > { %v690_v25 = vpop.f32.mrf.mxu2 }
  0xd7   : > { %1006 = vst.msk [vmem:[%s1624_s4 + $0x70] sm:$0xf] %vm977_vm0, %v955_v21  ;;  %v932_v26 = vpack.c.bf16 %v882_v22, %v882_v22  ;;  %v691_v27 = vadd.f32 %v1609_v48, %v690_v25  ;;  %v829_v30 = vpop.f32.mrf.mxu3 }
  0xd8   : > { %v633_v31 = vpop.f32.mrf.mxu0 }
  0xd9   : > { %983 = vst.msk [vmem:[%s1624_s4 + $0x14] sm:$0xf] %vm977_vm0, %v932_v26  ;;  %v825_v34 = vadd.f32 %v824_v56, %v691_v27  ;;  %v634_v35 = vadd.f32 %v1609_v48, %v633_v31  ;;  %v767_v36 = vpop.f32.mrf.mxu1  ;;  %v1383_v56 = vld [vmem:[%s1531_s18 + $0xc4] sm:$0xf] }
  0xda   : > { %v1195_v0 = vor.u32 %v1383_v56, %v1192_v57 }
  0xdb   : > { %v906_v37 = vmax.f32 %v825_v34, 0.0  ;;  %v768_v38 = vadd.f32 %v767_v36, %v634_v35  ;;  %672 = vmatmul.bf16.gmra.mxu0 %v1183_v28  ;;  %732 = vmatmul.bf16.gmra.mxu2 %v1279_v29 }
  0xdc   : > { %806 = vmatmul.bf16.gmra.mxu1 %v1187_v32  ;;  %871 = vmatmul.bf16.gmra.mxu3 %v1291_v33 }
  0xdd   : > { %v956_v39 = vpack.c.bf16 %v906_v37, %v906_v37  ;;  %v883_v40 = vmax.f32 %v768_v38, 0.0 }
  0xde   : > { %v693_v41 = vpop.f32.mrf.mxu2 }
  0xdf   : > { %1007 = vst.msk [vmem:[%s1624_s4 + $0x74] sm:$0xf] %vm977_vm0, %v956_v39  ;;  %v933_v42 = vpack.c.bf16 %v883_v40, %v883_v40  ;;  %v694_v43 = vadd.f32 %v1609_v48, %v693_v41  ;;  %v832_v44 = vpop.f32.mrf.mxu3 }
  0xe0   : > { %v635_v45 = vpop.f32.mrf.mxu0 }
  0xe1   : > { %984 = vst.msk [vmem:[%s1624_s4 + $0x18] sm:$0xf] %vm977_vm0, %v933_v42  ;;  %v828_v46 = vadd.f32 %v827_v7, %v694_v43  ;;  %v636_v47 = vadd.f32 %v1609_v48, %v635_v45  ;;  %v769_v49 = vpop.f32.mrf.mxu1 }
  0xe3   : > { %v907_v50 = vmax.f32 %v828_v46, 0.0  ;;  %v770_v51 = vadd.f32 %v769_v49, %v636_v47 }
  0xe5   : > { %v957_v54 = vpack.c.bf16 %v907_v50, %v907_v50  ;;  %v884_v55 = vmax.f32 %v770_v51, 0.0 }
  0xe6   : > { %v695_v58 = vpop.f32.mrf.mxu2 }
  0xe7   : > { %1008 = vst.msk [vmem:[%s1624_s4 + $0x78] sm:$0xf] %vm977_vm0, %v957_v54  ;;  %v934_v59 = vpack.c.bf16 %v884_v55, %v884_v55  ;;  %v696_v60 = vadd.f32 %v1609_v48, %v695_v58  ;;  %v834_v62 = vpop.f32.mrf.mxu3 }
  0xe8   : > { %v638_v63 = vpop.f32.mrf.mxu0 }
  0xe9   : > { %985 = vst.msk [vmem:[%s1624_s4 + $0x1c] sm:$0xf] %vm977_vm0, %v934_v59  ;;  %v830_v1 = vadd.f32 %v829_v30, %v696_v60  ;;  %v639_v3 = vadd.f32 %v1609_v48, %v638_v63  ;;  %v772_v4 = vpop.f32.mrf.mxu1 }
  0xeb   : > { %v908_v5 = vmax.f32 %v830_v1, 0.0  ;;  %v773_v6 = vadd.f32 %v772_v4, %v639_v3  ;;  %737 = vmatmul.bf16.gmra.mxu2 %v1287_v61 }
  0xec   : > { %811 = vmatmul.bf16.gmra.mxu1 %v1195_v0 }
  0xed   : > { %v958_v7 = vpack.c.bf16 %v908_v5, %v908_v5  ;;  %v885_v8 = vmax.f32 %v773_v6, 0.0 }
  0xee   : > { %v698_v9 = vpop.f32.mrf.mxu2 }
  0xef   : > { %1009 = vst.msk [vmem:[%s1624_s4 + $0x7c] sm:$0xf] %vm977_vm0, %v958_v7  ;;  %v935_v10 = vpack.c.bf16 %v885_v8, %v885_v8  ;;  %v699_v11 = vadd.f32 %v1609_v48, %v698_v9  ;;  %v837_v12 = vpop.f32.mrf.mxu3 }
  0xf0   : > { %v640_v13 = vpop.f32.mrf.mxu0 }
  0xf1   : > { %986 = vst.msk [vmem:[%s1624_s4 + $0x20] sm:$0xf] %vm977_vm0, %v935_v10  ;;  %v833_v14 = vadd.f32 %v832_v44, %v699_v11  ;;  %v641_v15 = vadd.f32 %v1609_v48, %v640_v13  ;;  %v774_v16 = vpop.f32.mrf.mxu1 }
  0xf3   : > { %v909_v17 = vmax.f32 %v833_v14, 0.0  ;;  %v775_v19 = vadd.f32 %v774_v16, %v641_v15 }
  0xf5   : > { %v959_v20 = vpack.c.bf16 %v909_v17, %v909_v17  ;;  %v886_v21 = vmax.f32 %v775_v19, 0.0 }
  0xf6   : > { %v700_v22 = vpop.f32.mrf.mxu2 }
  0xf7   : > { %1010 = vst.msk [vmem:[%s1624_s4 + $0x80] sm:$0xf] %vm977_vm0, %v959_v20  ;;  %v936_v23 = vpack.c.bf16 %v886_v21, %v886_v21  ;;  %v701_v24 = vadd.f32 %v1609_v48, %v700_v22  ;;  %v839_v25 = vpop.f32.mrf.mxu3 }
  0xf8   : > { %v643_v26 = vpop.f32.mrf.mxu0 }
  0xf9   : > { %987 = vst.msk [vmem:[%s1624_s4 + $0x24] sm:$0xf] %vm977_vm0, %v936_v23  ;;  %v835_v27 = vadd.f32 %v834_v62, %v701_v24  ;;  %v644_v28 = vadd.f32 %v1609_v48, %v643_v26  ;;  %v777_v29 = vpop.f32.mrf.mxu1 }
  0xfb   : > { %v910_v30 = vmax.f32 %v835_v27, 0.0  ;;  %v778_v31 = vadd.f32 %v777_v29, %v644_v28 }
  0xfd   : > { %v960_v32 = vpack.c.bf16 %v910_v30, %v910_v30  ;;  %v887_v33 = vmax.f32 %v778_v31, 0.0 }
  0xfe   : > { %v703_v34 = vpop.f32.mrf.mxu2 }
  0xff   : > { %1011 = vst.msk [vmem:[%s1624_s4 + $0x84] sm:$0xf] %vm977_vm0, %v960_v32  ;;  %v937_v35 = vpack.c.bf16 %v887_v33, %v887_v33  ;;  %v704_v36 = vadd.f32 %v1609_v48, %v703_v34  ;;  %v842_v37 = vpop.f32.mrf.mxu3 }
 0x100   : > { %v645_v38 = vpop.f32.mrf.mxu0 }
 0x101   : > { %988 = vst.msk [vmem:[%s1624_s4 + $0x28] sm:$0xf] %vm977_vm0, %v937_v35  ;;  %v838_v39 = vadd.f32 %v837_v12, %v704_v36  ;;  %v646_v40 = vadd.f32 %v1609_v48, %v645_v38  ;;  %v779_v41 = vpop.f32.mrf.mxu1 }
 0x103   : > { %v911_v42 = vmax.f32 %v838_v39, 0.0  ;;  %v780_v43 = vadd.f32 %v779_v41, %v646_v40 }
 0x105   : > { %v961_v44 = vpack.c.bf16 %v911_v42, %v911_v42  ;;  %v888_v45 = vmax.f32 %v780_v43, 0.0 }
 0x106   : > { %v705_v46 = vpop.f32.mrf.mxu2 }
 0x107   : > { %1012 = vst.msk [vmem:[%s1624_s4 + $0x88] sm:$0xf] %vm977_vm0, %v961_v44  ;;  %v938_v47 = vpack.c.bf16 %v888_v45, %v888_v45  ;;  %v706_v49 = vadd.f32 %v1609_v48, %v705_v46  ;;  %v844_v50 = vpop.f32.mrf.mxu3 }
 0x108   : > { %v648_v51 = vpop.f32.mrf.mxu0 }
 0x109   : > { %989 = vst.msk [vmem:[%s1624_s4 + $0x2c] sm:$0xf] %vm977_vm0, %v938_v47  ;;  %v840_v52 = vadd.f32 %v839_v25, %v706_v49  ;;  %v649_v53 = vadd.f32 %v1609_v48, %v648_v51  ;;  %v782_v54 = vpop.f32.mrf.mxu1 }
 0x10b   : > { %v912_v55 = vmax.f32 %v840_v52, 0.0  ;;  %v783_v56 = vadd.f32 %v782_v54, %v649_v53 }
 0x10d   : > { %v962_v57 = vpack.c.bf16 %v912_v55, %v912_v55  ;;  %v889_v58 = vmax.f32 %v783_v56, 0.0 }
 0x10e   : > { %v708_v59 = vpop.f32.mrf.mxu2 }
 0x10f   : > { %1013 = vst.msk [vmem:[%s1624_s4 + $0x8c] sm:$0xf] %vm977_vm0, %v962_v57  ;;  %v939_v60 = vpack.c.bf16 %v889_v58, %v889_v58  ;;  %v709_v61 = vadd.f32 %v1609_v48, %v708_v59  ;;  %v847_v62 = vpop.f32.mrf.mxu3 }
 0x110   : > { %v650_v63 = vpop.f32.mrf.mxu0 }
 0x111   : > { %990 = vst.msk [vmem:[%s1624_s4 + $0x30] sm:$0xf] %vm977_vm0, %v939_v60  ;;  %v843_v0 = vadd.f32 %v842_v37, %v709_v61  ;;  %v651_v1 = vadd.f32 %v1609_v48, %v650_v63  ;;  %v784_v3 = vpop.f32.mrf.mxu1 }
 0x113   : > { %v913_v4 = vmax.f32 %v843_v0, 0.0  ;;  %v785_v5 = vadd.f32 %v784_v3, %v651_v1 }
 0x115   : > { %v963_v6 = vpack.c.bf16 %v913_v4, %v913_v4  ;;  %v890_v7 = vmax.f32 %v785_v5, 0.0 }
 0x116   : > { %v710_v8 = vpop.f32.mrf.mxu2 }
 0x117   : > { %1014 = vst.msk [vmem:[%s1624_s4 + $0x90] sm:$0xf] %vm977_vm0, %v963_v6  ;;  %v940_v9 = vpack.c.bf16 %v890_v7, %v890_v7  ;;  %v711_v10 = vadd.f32 %v1609_v48, %v710_v8  ;;  %v849_v11 = vpop.f32.mrf.mxu3 }
 0x118   : > { %v653_v12 = vpop.f32.mrf.mxu0 }
 0x119   : > { %991 = vst.msk [vmem:[%s1624_s4 + $0x34] sm:$0xf] %vm977_vm0, %v940_v9  ;;  %v845_v13 = vadd.f32 %v844_v50, %v711_v10  ;;  %v654_v14 = vadd.f32 %v1609_v48, %v653_v12  ;;  %v787_v15 = vpop.f32.mrf.mxu1 }
 0x11b   : > { %v914_v16 = vmax.f32 %v845_v13, 0.0  ;;  %v788_v17 = vadd.f32 %v787_v15, %v654_v14 }
 0x11d   : > { %v964_v19 = vpack.c.bf16 %v914_v16, %v914_v16  ;;  %v891_v20 = vmax.f32 %v788_v17, 0.0 }
 0x11e   : > { %v713_v21 = vpop.f32.mrf.mxu2 }
 0x11f   : > { %1015 = vst.msk [vmem:[%s1624_s4 + $0x94] sm:$0xf] %vm977_vm0, %v964_v19  ;;  %v941_v22 = vpack.c.bf16 %v891_v20, %v891_v20  ;;  %v714_v23 = vadd.f32 %v1609_v48, %v713_v21  ;;  %v852_v24 = vpop.f32.mrf.mxu3 }
 0x120   : > { %v655_v25 = vpop.f32.mrf.mxu0 }
 0x121   : > { %992 = vst.msk [vmem:[%s1624_s4 + $0x38] sm:$0xf] %vm977_vm0, %v941_v22  ;;  %v848_v26 = vadd.f32 %v847_v62, %v714_v23  ;;  %v656_v27 = vadd.f32 %v1609_v48, %v655_v25  ;;  %v789_v28 = vpop.f32.mrf.mxu1 }
 0x123   : > { %v915_v29 = vmax.f32 %v848_v26, 0.0  ;;  %v790_v30 = vadd.f32 %v789_v28, %v656_v27 }
 0x125   : > { %v965_v31 = vpack.c.bf16 %v915_v29, %v915_v29  ;;  %v892_v32 = vmax.f32 %v790_v30, 0.0 }
 0x126   : > { %v715_v33 = vpop.f32.mrf.mxu2 }
 0x127   : > { %1016 = vst.msk [vmem:[%s1624_s4 + $0x98] sm:$0xf] %vm977_vm0, %v965_v31  ;;  %v942_v34 = vpack.c.bf16 %v892_v32, %v892_v32  ;;  %v716_v35 = vadd.f32 %v1609_v48, %v715_v33  ;;  %v854_v37 = vpop.f32.mrf.mxu3 }
 0x128   : > { %v658_v36 = vpop.f32.mrf.mxu0 }
 0x129   : > { %993 = vst.msk [vmem:[%s1624_s4 + $0x3c] sm:$0xf] %vm977_vm0, %v942_v34  ;;  %v850_v38 = vadd.f32 %v849_v11, %v716_v35  ;;  %v659_v39 = vadd.f32 %v1609_v48, %v658_v36  ;;  %v792_v40 = vpop.f32.mrf.mxu1 }
 0x12b   : > { %v916_v41 = vmax.f32 %v850_v38, 0.0  ;;  %v793_v42 = vadd.f32 %v792_v40, %v659_v39 }
 0x12d   : > { %v966_v43 = vpack.c.bf16 %v916_v41, %v916_v41  ;;  %v893_v44 = vmax.f32 %v793_v42, 0.0 }
 0x12e   : > { %v718_v45 = vpop.f32.mrf.mxu2 }
 0x12f   : > { %1017 = vst.msk [vmem:[%s1624_s4 + $0x9c] sm:$0xf] %vm977_vm0, %v966_v43  ;;  %v943_v46 = vpack.c.bf16 %v893_v44, %v893_v44  ;;  %v719_v47 = vadd.f32 %v1609_v48, %v718_v45  ;;  %v857_v53 = vpop.f32.mrf.mxu3 }
 0x130   : > { %v660_v49 = vpop.f32.mrf.mxu0 }
 0x131   : > { %994 = vst.msk [vmem:[%s1624_s4 + $0x40] sm:$0xf] %vm977_vm0, %v943_v46  ;;  %v853_v50 = vadd.f32 %v852_v24, %v719_v47  ;;  %v661_v51 = vadd.f32 %v1609_v48, %v660_v49  ;;  %v794_v52 = vpop.f32.mrf.mxu1 }
 0x133   : > { %v917_v54 = vmax.f32 %v853_v50, 0.0  ;;  %v795_v55 = vadd.f32 %v794_v52, %v661_v51 }
 0x135   : > { %v967_v56 = vpack.c.bf16 %v917_v54, %v917_v54  ;;  %v894_v57 = vmax.f32 %v795_v55, 0.0 }
 0x136   : > { %v720_v58 = vpop.f32.mrf.mxu2 }
 0x137   : > { %1018 = vst.msk [vmem:[%s1624_s4 + $0xa0] sm:$0xf] %vm977_vm0, %v967_v56  ;;  %v944_v59 = vpack.c.bf16 %v894_v57, %v894_v57  ;;  %v721_v60 = vadd.f32 %v1609_v48, %v720_v58  ;;  %v859_v4 = vpop.f32.mrf.mxu3 }
 0x138   : > { %v663_v61 = vpop.f32.mrf.mxu0 }
 0x139   : > { %995 = vst.msk [vmem:[%s1624_s4 + $0x44] sm:$0xf] %vm977_vm0, %v944_v59  ;;  %v855_v62 = vadd.f32 %v854_v37, %v721_v60  ;;  %v664_v63 = vadd.f32 %v1609_v48, %v663_v61  ;;  %v797_v0 = vpop.f32.mrf.mxu1 }
 0x13b   : > { %v918_v1 = vmax.f32 %v855_v62, 0.0  ;;  %v798_v3 = vadd.f32 %v797_v0, %v664_v63 }
 0x13d   : > { %v968_v5 = vpack.c.bf16 %v918_v1, %v918_v1  ;;  %v895_v6 = vmax.f32 %v798_v3, 0.0 }
 0x13e   : > { %v723_v7 = vpop.f32.mrf.mxu2 }
 0x13f   : > { %1019 = vst.msk [vmem:[%s1624_s4 + $0xa4] sm:$0xf] %vm977_vm0, %v968_v5  ;;  %v945_v8 = vpack.c.bf16 %v895_v6, %v895_v6  ;;  %v724_v9 = vadd.f32 %v1609_v48, %v723_v7  ;;  %v862_v20 = vpop.f32.mrf.mxu3 }
 0x140   : > { %v665_v10 = vpop.f32.mrf.mxu0 }
 0x141   : > { %996 = vst.msk [vmem:[%s1624_s4 + $0x48] sm:$0xf] %vm977_vm0, %v945_v8  ;;  %v858_v11 = vadd.f32 %v857_v53, %v724_v9  ;;  %v666_v12 = vadd.f32 %v1609_v48, %v665_v10  ;;  %v799_v13 = vpop.f32.mrf.mxu1  ;;  %v679_v8 = vadd.f32 %v1609_v48, %v1626_v2  ;;  %v681_v2 = vadd.f32 %v1609_v48, %v1639_v18 }
 0x143   : > { %v919_v14 = vmax.f32 %v858_v11, 0.0  ;;  %v800_v15 = vadd.f32 %v799_v13, %v666_v12 }
 0x145   : > { %v969_v16 = vpack.c.bf16 %v919_v14, %v919_v14  ;;  %v896_v17 = vmax.f32 %v800_v15, 0.0 }
 0x146   : > { %v725_v19 = vpop.f32.mrf.mxu2 }
 0x147   : > { %1020 = vst.msk [vmem:[%s1624_s4 + $0xa8] sm:$0xf] %vm977_vm0, %v969_v16  ;;  %v946_v21 = vpack.c.bf16 %v896_v17, %v896_v17  ;;  %v726_v22 = vadd.f32 %v1609_v48, %v725_v19  ;;  %v864_v35 = vpop.f32.mrf.mxu3 }
 0x148   : > { %v668_v23 = vpop.f32.mrf.mxu0 }
 0x149   : > { %997 = vst.msk [vmem:[%s1624_s4 + $0x4c] sm:$0xf] %vm977_vm0, %v946_v21  ;;  %v860_v24 = vadd.f32 %v859_v4, %v726_v22  ;;  %v669_v25 = vadd.f32 %v1609_v48, %v668_v23  ;;  %v802_v26 = vpop.f32.mrf.mxu1 }
 0x14b   : > { %v920_v27 = vmax.f32 %v860_v24, 0.0  ;;  %v803_v28 = vadd.f32 %v802_v26, %v669_v25 }
 0x14d   : > { %v970_v29 = vpack.c.bf16 %v920_v27, %v920_v27  ;;  %v897_v30 = vmax.f32 %v803_v28, 0.0 }
 0x14e   : > { %v728_v31 = vpop.f32.mrf.mxu2 }
 0x14f   : > { %1021 = vst.msk [vmem:[%s1624_s4 + $0xac] sm:$0xf] %vm977_vm0, %v970_v29  ;;  %v947_v32 = vpack.c.bf16 %v897_v30, %v897_v30  ;;  %v729_v33 = vadd.f32 %v1609_v48, %v728_v31  ;;  %v867_v51 = vpop.f32.mrf.mxu3 }
 0x150   : > { %v670_v34 = vpop.f32.mrf.mxu0 }
 0x151   : > { %998 = vst.msk [vmem:[%s1624_s4 + $0x50] sm:$0xf] %vm977_vm0, %v947_v32  ;;  %v863_v36 = vadd.f32 %v862_v20, %v729_v33  ;;  %v671_v37 = vadd.f32 %v1609_v48, %v670_v34  ;;  %v804_v38 = vpop.f32.mrf.mxu1 }
 0x153   : > { %v921_v39 = vmax.f32 %v863_v36, 0.0  ;;  %v805_v40 = vadd.f32 %v804_v38, %v671_v37 }
 0x155   : > { %v971_v41 = vpack.c.bf16 %v921_v39, %v921_v39  ;;  %v898_v42 = vmax.f32 %v805_v40, 0.0 }
 0x156   : > { %v730_v43 = vpop.f32.mrf.mxu2 }
 0x157   : > { %1022 = vst.msk [vmem:[%s1624_s4 + $0xb0] sm:$0xf] %vm977_vm0, %v971_v41  ;;  %v948_v44 = vpack.c.bf16 %v898_v42, %v898_v42  ;;  %v731_v45 = vadd.f32 %v1609_v48, %v730_v43  ;;  %v869_v1 = vpop.f32.mrf.mxu3 }
 0x158   : > { %v673_v46 = vpop.f32.mrf.mxu0 }
 0x159   : > { %999 = vst.msk [vmem:[%s1624_s4 + $0x54] sm:$0xf] %vm977_vm0, %v948_v44  ;;  %v865_v47 = vadd.f32 %v864_v35, %v731_v45  ;;  %v674_v49 = vadd.f32 %v1609_v48, %v673_v46  ;;  %v807_v50 = vpop.f32.mrf.mxu1 }
 0x15b   : > { %v922_v52 = vmax.f32 %v865_v47, 0.0  ;;  %v808_v53 = vadd.f32 %v807_v50, %v674_v49 }
 0x15d   : > { %v972_v54 = vpack.c.bf16 %v922_v52, %v922_v52  ;;  %v899_v55 = vmax.f32 %v808_v53, 0.0 }
 0x15e   : > { %v733_v56 = vpop.f32.mrf.mxu2 }
 0x15f   : > { %1023 = vst.msk [vmem:[%s1624_s4 + $0xb4] sm:$0xf] %vm977_vm0, %v972_v54  ;;  %v949_v57 = vpack.c.bf16 %v899_v55, %v899_v55  ;;  %v734_v58 = vadd.f32 %v1609_v48, %v733_v56  ;;  %v872_v16 = vpop.f32.mrf.mxu3 }
 0x160   : > { %v675_v59 = vpop.f32.mrf.mxu0 }
 0x161   : > { %1000 = vst.msk [vmem:[%s1624_s4 + $0x58] sm:$0xf] %vm977_vm0, %v949_v57  ;;  %v868_v60 = vadd.f32 %v867_v51, %v734_v58  ;;  %v676_v61 = vadd.f32 %v1609_v48, %v675_v59  ;;  %v809_v62 = vpop.f32.mrf.mxu1 }
 0x163   : > { %v923_v63 = vmax.f32 %v868_v60, 0.0  ;;  %v810_v0 = vadd.f32 %v809_v62, %v676_v61 }
 0x165   : > { %v973_v3 = vpack.c.bf16 %v923_v63, %v923_v63  ;;  %v900_v4 = vmax.f32 %v810_v0, 0.0 }
 0x166   : > { %v735_v5 = vpop.f32.mrf.mxu2 }
 0x167   : > { %1024 = vst.msk [vmem:[%s1624_s4 + $0xb8] sm:$0xf] %vm977_vm0, %v973_v3  ;;  %v950_v6 = vpack.c.bf16 %v900_v4, %v900_v4  ;;  %v736_v7 = vadd.f32 %v1609_v48, %v735_v5  ;;  %v874_v29 = vpop.f32.mrf.mxu3 }
 0x169   : > { %1001 = vst.msk [vmem:[%s1624_s4 + $0x5c] sm:$0xf] %vm977_vm0, %v950_v6  ;;  %v870_v9 = vadd.f32 %v869_v1, %v736_v7  ;;  %v812_v10 = vpop.f32.mrf.mxu1 }
 0x16a   : > { %v813_v11 = vadd.f32 %v812_v10, %v679_v8 }
 0x16b   : > { %v924_v12 = vmax.f32 %v870_v9, 0.0 }
 0x16c   : > { %v901_v13 = vmax.f32 %v813_v11, 0.0 }
 0x16d   : > { %v974_v14 = vpack.c.bf16 %v924_v12, %v924_v12 }
 0x16e   : > { %v951_v15 = vpack.c.bf16 %v901_v13, %v901_v13  ;;  %v738_v17 = vpop.f32.mrf.mxu2 }
 0x16f   : > { %1025 = vst.msk [vmem:[%s1624_s4 + $0xbc] sm:$0xf] %vm977_vm0, %v974_v14  ;;  %v739_v19 = vadd.f32 %v1609_v48, %v738_v17 }
 0x170   : > { %1002 = vst.msk [vmem:[%s1624_s4 + $0x60] sm:$0xf] %vm977_vm0, %v951_v15 }
 0x171   : > { %v873_v20 = vadd.f32 %v872_v16, %v739_v19  ;;  %v814_v21 = vpop.f32.mrf.mxu1 }
 0x172   : > { %v815_v22 = vadd.f32 %v814_v21, %v681_v2 }
 0x173   : > { %v925_v23 = vmax.f32 %v873_v20, 0.0 }
 0x174   : > { %v902_v24 = vmax.f32 %v815_v22, 0.0 }
 0x175   : > { %v975_v25 = vpack.c.bf16 %v925_v23, %v925_v23 }
 0x176   : > { %v952_v26 = vpack.c.bf16 %v902_v24, %v902_v24  ;;  %v740_v27 = vpop.f32.mrf.mxu2 }
 0x177   : > { %1026 = vst.msk [vmem:[%s1624_s4 + $0xc0] sm:$0xf] %vm977_vm0, %v975_v25  ;;  %v741_v28 = vadd.f32 %v1609_v48, %v740_v27 }
 0x178   : > { %1003 = vst.msk [vmem:[%s1624_s4 + $0x64] sm:$0xf] %vm977_vm0, %v952_v26 }
 0x179   : > { %v875_v30 = vadd.f32 %v874_v29, %v741_v28 }
 0x17b   : > { %v926_v18 = vmax.f32 %v875_v30, 0.0 }
 0x17d   : > { %v976_v31 = vpack.c.bf16 %v926_v18, %v926_v18 }
 0x17f   : > { %1027 = vst.msk [vmem:[%s1624_s4 + $0xc4] sm:$0xf] %vm977_vm0, %v976_v31 }
 0x180 PF: > { %s13_s12 = sadd.s32 1, %s1456_s12  }
 0x181   : > { %p10_p4 = scmp.ge.s32.totalorder %s13_s12, 4  }
 0x183   :  { %12 = sbr.rel (!%p10_p4) target bundleno = 1 (0x1), region = 62 }

// kernel: _lambda_.5
= control target key start
LH: loop header
LB: loop body
LE: loop exit
PB: predicated region body
PF: predicated region fallthrough
CT: control target
= control target key end

     0   :  { %vm442_vm0 = vcmask 257024   ;;  %s972_s1 = inlined_call_operand.vmem [shape: bf16[256,32], index: 1, kind: input, shape index: {}]   ;;  %s973_s2 = inlined_call_operand.vmem [shape: f32[1,32], index: 2, kind: input, shape index: {}]   ;;  %s974_s0 = inlined_call_operand.vmem [shape: bf16[168,256], index: 0, kind: input, shape index: {}]   ;;  %s975_s3 = inlined_call_operand.vmem [shape: bf16[168,32], index: 3, kind: output, shape index: {}]  }
   0x1   :  { %v639_v0 = vld [vmem:[%s972_s1 + $0x38] sm:$0xff]  ;;  %v638_v2 = vld [vmem:[%s972_s1 + $0x30] sm:$0xff]  ;;  %v637_v4 = vld [vmem:[%s972_s1 + $0x28] sm:$0xff] }
   0x2   :  { %v647_v1 = vld [vmem:[%s972_s1 + $0x78] sm:$0xff]  ;;  %274 = vmatpush.bf16.msra.mxu0 %v639_v0  ;;  %648 = vmatpush.bf16.msra.mxu2 %v639_v0  ;;  %v646_v3 = vld [vmem:[%s972_s1 + $0x70] sm:$0xff]  ;;  %v645_v5 = vld [vmem:[%s972_s1 + $0x68] sm:$0xff] }
   0x3   :  { %337 = vmatpush.bf16.msra.mxu1 %v647_v1  ;;  %656 = vmatpush.bf16.msra.mxu3 %v647_v1  ;;  %v636_v6 = vld [vmem:[%s972_s1 + $0x20] sm:$0xff]  ;;  %v635_v8 = vld [vmem:[%s972_s1 + $0x18] sm:$0xff]  ;;  %v634_v10 = vld [vmem:[%s972_s1 + $0x10] sm:$0xff] }
   0x4   :  { %v644_v7 = vld [vmem:[%s972_s1 + $0x60] sm:$0xff]  ;;  %v643_v9 = vld [vmem:[%s972_s1 + $0x58] sm:$0xff]  ;;  %v642_v11 = vld [vmem:[%s972_s1 + $0x50] sm:$0xff] }
   0x5   :  { %v633_v12 = vld [vmem:[%s972_s1 + $0x8] sm:$0xff]  ;;  %v632_v14 = vld [vmem:[%s972_s1] sm:$0xff]  ;;  %v510_v18 = vld [vmem:[%s974_s0 + $0x50] sm:$0xf] }
   0x6   :  { %275 = vmatpush.bf16.msra.mxu0 %v638_v2  ;;  %649 = vmatpush.bf16.msra.mxu2 %v638_v2  ;;  %v641_v13 = vld [vmem:[%s972_s1 + $0x48] sm:$0xff]  ;;  %v640_v15 = vld [vmem:[%s972_s1 + $0x40] sm:$0xff]  ;;  %v623_v19 = vld [vmem:[%s974_s0 + $0x54] sm:$0xf0] }
   0x7   :  { %338 = vmatpush.bf16.msra.mxu1 %v646_v3  ;;  %657 = vmatpush.bf16.msra.mxu3 %v646_v3  ;;  %v470_v16 = vld [vmem:[%s974_s0] sm:$0xf]  ;;  %v613_v17 = vld [vmem:[%s974_s0 + $0x4] sm:$0xf0]  ;;  %v612_v20 = vld [vmem:[%s974_s0 + $0x4] sm:$0xf]  ;;  %v511_v25 = vor.u32 %v623_v19, %v510_v18 }
   0x8   :  { %v472_v21 = vld [vmem:[%s974_s0 + $0x8] sm:$0xf0]  ;;  %v624_v22 = vld [vmem:[%s974_s0 + $0x64] sm:$0xf]  ;;  %v471_v24 = vor.u32 %v613_v17, %v470_v16  ;;  %v478_v28 = vld [vmem:[%s974_s0 + $0x10] sm:$0xf] }
   0x9   :  { %v520_v23 = vld [vmem:[%s974_s0 + $0x68] sm:$0xf0]  ;;  %v475_v26 = vor.u32 %v612_v20, %v472_v21  ;;  %v615_v29 = vld [vmem:[%s974_s0 + $0x14] sm:$0xf0]  ;;  %v518_v30 = vld [vmem:[%s974_s0 + $0x60] sm:$0xf] }
   0xa   :  { %276 = vmatpush.bf16.msra.mxu0 %v637_v4  ;;  %650 = vmatpush.bf16.msra.mxu2 %v637_v4  ;;  %v523_v27 = vor.u32 %v624_v22, %v520_v23  ;;  %v625_v31 = vld [vmem:[%s974_s0 + $0x64] sm:$0xf0]  ;;  %v614_v32 = vld [vmem:[%s974_s0 + $0x14] sm:$0xf]  ;;  %v480_v33 = vld [vmem:[%s974_s0 + $0x18] sm:$0xf0]  ;;  %v479_v36 = vor.u32 %v615_v29, %v478_v28 }
   0xb   :  { %339 = vmatpush.bf16.msra.mxu1 %v645_v5  ;;  %658 = vmatpush.bf16.msra.mxu3 %v645_v5  ;;  %v626_v34 = vld [vmem:[%s974_s0 + $0x74] sm:$0xf]  ;;  %v528_v35 = vld [vmem:[%s974_s0 + $0x78] sm:$0xf0]  ;;  %v519_v37 = vor.u32 %v625_v31, %v518_v30  ;;  %v483_v38 = vor.u32 %v614_v32, %v480_v33  ;;  %v486_v40 = vld [vmem:[%s974_s0 + $0x20] sm:$0xf] }
   0xc   :  { %v531_v39 = vor.u32 %v626_v34, %v528_v35  ;;  %v617_v41 = vld [vmem:[%s974_s0 + $0x24] sm:$0xf0]  ;;  %v526_v42 = vld [vmem:[%s974_s0 + $0x70] sm:$0xf]  ;;  %v627_v43 = vld [vmem:[%s974_s0 + $0x74] sm:$0xf0] }
   0xd   :  { %v616_v44 = vld [vmem:[%s974_s0 + $0x24] sm:$0xf]  ;;  %v488_v45 = vld [vmem:[%s974_s0 + $0x28] sm:$0xf0]  ;;  %v487_v48 = vor.u32 %v617_v41, %v486_v40  ;;  %v527_v49 = vor.u32 %v627_v43, %v526_v42  ;;  %v494_v52 = vld [vmem:[%s974_s0 + $0x30] sm:$0xf] }
   0xe   :  { %277 = vmatpush.bf16.msra.mxu0 %v636_v6  ;;  %651 = vmatpush.bf16.msra.mxu2 %v636_v6  ;;  %v628_v46 = vld [vmem:[%s974_s0 + $0x84] sm:$0xf]  ;;  %v536_v47 = vld [vmem:[%s974_s0 + $0x88] sm:$0xf0]  ;;  %v491_v50 = vor.u32 %v616_v44, %v488_v45  ;;  %v619_v53 = vld [vmem:[%s974_s0 + $0x34] sm:$0xf0] }
   0xf   :  { %340 = vmatpush.bf16.msra.mxu1 %v644_v7  ;;  %659 = vmatpush.bf16.msra.mxu3 %v644_v7  ;;  %v539_v51 = vor.u32 %v628_v46, %v536_v47  ;;  %v534_v54 = vld [vmem:[%s974_s0 + $0x80] sm:$0xf]  ;;  %v629_v55 = vld [vmem:[%s974_s0 + $0x84] sm:$0xf0]  ;;  %v618_v56 = vld [vmem:[%s974_s0 + $0x34] sm:$0xf]  ;;  %v495_v60 = vor.u32 %v619_v53, %v494_v52 }
  0x10   :  { %v496_v57 = vld [vmem:[%s974_s0 + $0x38] sm:$0xf0]  ;;  %v630_v58 = vld [vmem:[%s974_s0 + $0x94] sm:$0xf]  ;;  %v535_v61 = vor.u32 %v629_v55, %v534_v54  ;;  %v34_v0 = vld [vmem:[%s974_s0 + $0xa0] sm:$0xff] }
  0x11   :  { %v544_v59 = vld [vmem:[%s974_s0 + $0x98] sm:$0xf0]  ;;  %v499_v62 = vor.u32 %v618_v56, %v496_v57  ;;  %v502_v1 = vld [vmem:[%s974_s0 + $0x40] sm:$0xf]  ;;  %v621_v2 = vld [vmem:[%s974_s0 + $0x44] sm:$0xf0]  ;;  %v133_v5 = vunpack.c.h.b16 %v34_v0 }
  0x12   :  { %278 = vmatpush.bf16.msra.mxu0 %v635_v8  ;;  %652 = vmatpush.bf16.msra.mxu2 %v635_v8  ;;  %v547_v63 = vor.u32 %v630_v58, %v544_v59  ;;  %v542_v3 = vld [vmem:[%s974_s0 + $0x90] sm:$0xf]  ;;  %v631_v4 = vld [vmem:[%s974_s0 + $0x94] sm:$0xf0]  ;;  %v620_v6 = vld [vmem:[%s974_s0 + $0x44] sm:$0xf]  ;;  %v503_v8 = vor.u32 %v621_v2, %v502_v1 }
  0x13   :  { %341 = vmatpush.bf16.msra.mxu1 %v643_v9  ;;  %660 = vmatpush.bf16.msra.mxu3 %v643_v9  ;;  %v504_v7 = vld [vmem:[%s974_s0 + $0x48] sm:$0xf0]  ;;  %v543_v9 = vor.u32 %v631_v4, %v542_v3  ;;  %v859_v17 = vld [vmem:[%s973_s2] ss:$0 sm:$0xff] }
  0x16   :  { %279 = vmatpush.bf16.msra.mxu0 %v634_v10  ;;  %653 = vmatpush.bf16.msra.mxu2 %v634_v10  ;;  %v507_v10 = vor.u32 %v620_v6, %v504_v7 }
  0x17   :  { %342 = vmatpush.bf16.msra.mxu1 %v642_v11  ;;  %661 = vmatpush.bf16.msra.mxu3 %v642_v11  ;;  %v155_v11 = vpack.c.b16 %v133_v5, %v133_v5 }
  0x1a   :  { %280 = vmatpush.bf16.msra.mxu0 %v633_v12  ;;  %654 = vmatpush.bf16.msra.mxu2 %v633_v12  ;;  %v132_v12 = vunpack.c.l.b16 %v34_v0 }
  0x1b   :  { %343 = vmatpush.bf16.msra.mxu1 %v641_v13  ;;  %662 = vmatpush.bf16.msra.mxu3 %v641_v13  ;;  %v622_v13 = vld [vmem:[%s974_s0 + $0x54] sm:$0xf] }
  0x1e   :  { %281 = vmatpush.bf16.msra.mxu0 %v632_v14  ;;  %655 = vmatpush.bf16.msra.mxu2 %v632_v14  ;;  %v512_v14 = vld [vmem:[%s974_s0 + $0x58] sm:$0xf0] }
  0x1f   :  { %344 = vmatpush.bf16.msra.mxu1 %v640_v15  ;;  %663 = vmatpush.bf16.msra.mxu3 %v640_v15  ;;  %v154_v15 = vpack.c.b16 %v132_v12, %v132_v12  ;;  %v515_v16 = vor.u32 %v622_v13, %v512_v14 }
  0x21   :  { %282 = vmatmul.bf16.vlgmr.msra.gmra.mxu0 %v471_v24  ;;  %307 = vmatmul.bf16.vlgmr.msra.gmra.mxu2 %v511_v25 }
  0x22   :  { %345 = vmatmul.bf16.vlgmr.msra.gmra.mxu1 %v475_v26  ;;  %375 = vmatmul.bf16.vlgmr.msra.gmra.mxu3 %v523_v27 }
  0x31   :  { %287 = vmatmul.bf16.gmra.mxu0 %v479_v36  ;;  %312 = vmatmul.bf16.gmra.mxu2 %v519_v37 }
  0x32   :  { %350 = vmatmul.bf16.gmra.mxu1 %v483_v38  ;;  %380 = vmatmul.bf16.gmra.mxu3 %v531_v39 }
  0x41   :  { %292 = vmatmul.bf16.gmra.mxu0 %v487_v48  ;;  %317 = vmatmul.bf16.gmra.mxu2 %v527_v49 }
  0x42   :  { %355 = vmatmul.bf16.gmra.mxu1 %v491_v50  ;;  %385 = vmatmul.bf16.gmra.mxu3 %v539_v51 }
  0x51   :  { %297 = vmatmul.bf16.gmra.mxu0 %v495_v60  ;;  %322 = vmatmul.bf16.gmra.mxu2 %v535_v61 }
  0x52   :  { %360 = vmatmul.bf16.gmra.mxu1 %v499_v62  ;;  %390 = vmatmul.bf16.gmra.mxu3 %v547_v63 }
  0x61   :  { %302 = vmatmul.bf16.gmra.mxu0 %v503_v8  ;;  %327 = vmatmul.bf16.gmra.mxu2 %v543_v9 }
  0x62   :  { %365 = vmatmul.bf16.gmra.mxu1 %v507_v10  ;;  %395 = vmatmul.bf16.gmra.mxu3 %v155_v11 }
  0x71   :  { %332 = vmatmul.bf16.gmra.mxu2 %v154_v15 }
  0x72   :  { %370 = vmatmul.bf16.gmra.mxu1 %v515_v16 }
  0x9e   :  { %v283_v18 = vpop.f32.mrf.mxu0 }
  0x9f   :  { %v284_v19 = vadd.f32 %v859_v17, %v283_v18  ;;  %v346_v20 = vpop.f32.mrf.mxu1 }
  0xa1   :  { %v347_v21 = vadd.f32 %v346_v20, %v284_v19 }
  0xa3   :  { %v400_v22 = vmax.f32 %v347_v21, 0.0 }
  0xa4   :  { %v862_v23 = vpop.f32.mrf.mxu2 }
  0xa5   :  { %v421_v24 = vpack.c.bf16 %v400_v22, %v400_v22  ;;  %v376_v25 = vpop.f32.mrf.mxu3 }
  0xa6   :  { %v285_v26 = vpop.f32.mrf.mxu0 }
  0xa7   :  { %443 = vst.msk [vmem:[%s975_s3] sm:$0xf] %vm442_vm0, %v421_v24  ;;  %v286_v27 = vadd.f32 %v859_v17, %v285_v26  ;;  %v348_v28 = vpop.f32.mrf.mxu1 }
  0xa9   :  { %v349_v29 = vadd.f32 %v348_v28, %v286_v27 }
  0xab   :  { %v401_v30 = vmax.f32 %v349_v29, 0.0 }
  0xac   :  { %v869_v31 = vpop.f32.mrf.mxu2 }
  0xad   :  { %v422_v32 = vpack.c.bf16 %v401_v30, %v401_v30  ;;  %v378_v33 = vpop.f32.mrf.mxu3 }
  0xae   :  { %v288_v34 = vpop.f32.mrf.mxu0 }
  0xaf   :  { %444 = vst.msk [vmem:[%s975_s3 + $0x4] sm:$0xf] %vm442_vm0, %v422_v32  ;;  %v289_v35 = vadd.f32 %v859_v17, %v288_v34  ;;  %v351_v36 = vpop.f32.mrf.mxu1 }
  0xb1   :  { %v352_v37 = vadd.f32 %v351_v36, %v289_v35 }
  0xb3   :  { %v402_v38 = vmax.f32 %v352_v37, 0.0 }
  0xb4   :  { %v313_v39 = vpop.f32.mrf.mxu2 }
  0xb5   :  { %v423_v40 = vpack.c.bf16 %v402_v38, %v402_v38  ;;  %v314_v41 = vadd.f32 %v859_v17, %v313_v39  ;;  %v381_v42 = vpop.f32.mrf.mxu3 }
  0xb6   :  { %v290_v43 = vpop.f32.mrf.mxu0 }
  0xb7   :  { %445 = vst.msk [vmem:[%s975_s3 + $0x8] sm:$0xf] %vm442_vm0, %v423_v40  ;;  %v377_v44 = vadd.f32 %v376_v25, %v314_v41  ;;  %v291_v45 = vadd.f32 %v859_v17, %v290_v43  ;;  %v353_v46 = vpop.f32.mrf.mxu1 }
  0xb9   :  { %v412_v47 = vmax.f32 %v377_v44, 0.0  ;;  %v354_v48 = vadd.f32 %v353_v46, %v291_v45 }
  0xbb   :  { %v433_v49 = vpack.c.bf16 %v412_v47, %v412_v47  ;;  %v403_v50 = vmax.f32 %v354_v48, 0.0 }
  0xbc   :  { %v315_v51 = vpop.f32.mrf.mxu2 }
  0xbd   :  { %455 = vst.msk [vmem:[%s975_s3 + $0x30] sm:$0xf] %vm442_vm0, %v433_v49  ;;  %v424_v52 = vpack.c.bf16 %v403_v50, %v403_v50  ;;  %v316_v53 = vadd.f32 %v859_v17, %v315_v51  ;;  %v383_v54 = vpop.f32.mrf.mxu3 }
  0xbe   :  { %v293_v55 = vpop.f32.mrf.mxu0 }
  0xbf   :  { %446 = vst.msk [vmem:[%s975_s3 + $0xc] sm:$0xf] %vm442_vm0, %v424_v52  ;;  %v379_v56 = vadd.f32 %v378_v33, %v316_v53  ;;  %v294_v57 = vadd.f32 %v859_v17, %v293_v55  ;;  %v356_v58 = vpop.f32.mrf.mxu1 }
  0xc1   :  { %v413_v59 = vmax.f32 %v379_v56, 0.0  ;;  %v357_v60 = vadd.f32 %v356_v58, %v294_v57 }
  0xc3   :  { %v434_v61 = vpack.c.bf16 %v413_v59, %v413_v59  ;;  %v404_v62 = vmax.f32 %v357_v60, 0.0 }
  0xc4   :  { %v318_v63 = vpop.f32.mrf.mxu2 }
  0xc5   :  { %456 = vst.msk [vmem:[%s975_s3 + $0x34] sm:$0xf] %vm442_vm0, %v434_v61  ;;  %v425_v0 = vpack.c.bf16 %v404_v62, %v404_v62  ;;  %v319_v1 = vadd.f32 %v859_v17, %v318_v63  ;;  %v386_v2 = vpop.f32.mrf.mxu3 }
  0xc6   :  { %v295_v3 = vpop.f32.mrf.mxu0 }
  0xc7   :  { %447 = vst.msk [vmem:[%s975_s3 + $0x10] sm:$0xf] %vm442_vm0, %v425_v0  ;;  %v382_v4 = vadd.f32 %v381_v42, %v319_v1  ;;  %v296_v5 = vadd.f32 %v859_v17, %v295_v3  ;;  %v358_v6 = vpop.f32.mrf.mxu1 }
  0xc9   :  { %v414_v7 = vmax.f32 %v382_v4, 0.0  ;;  %v359_v8 = vadd.f32 %v358_v6, %v296_v5 }
  0xcb   :  { %v435_v9 = vpack.c.bf16 %v414_v7, %v414_v7  ;;  %v405_v10 = vmax.f32 %v359_v8, 0.0 }
  0xcc   :  { %v320_v11 = vpop.f32.mrf.mxu2 }
  0xcd   :  { %457 = vst.msk [vmem:[%s975_s3 + $0x38] sm:$0xf] %vm442_vm0, %v435_v9  ;;  %v426_v12 = vpack.c.bf16 %v405_v10, %v405_v10  ;;  %v321_v13 = vadd.f32 %v859_v17, %v320_v11  ;;  %v388_v14 = vpop.f32.mrf.mxu3  ;;  %v311_v11 = vadd.f32 %v859_v17, %v869_v31 }
  0xce   :  { %v298_v15 = vpop.f32.mrf.mxu0 }
  0xcf   :  { %448 = vst.msk [vmem:[%s975_s3 + $0x14] sm:$0xf] %vm442_vm0, %v426_v12  ;;  %v384_v16 = vadd.f32 %v383_v54, %v321_v13  ;;  %v299_v18 = vadd.f32 %v859_v17, %v298_v15  ;;  %v361_v19 = vpop.f32.mrf.mxu1 }
  0xd1   :  { %v415_v20 = vmax.f32 %v384_v16, 0.0  ;;  %v362_v21 = vadd.f32 %v361_v19, %v299_v18 }
  0xd3   :  { %v436_v22 = vpack.c.bf16 %v415_v20, %v415_v20  ;;  %v406_v24 = vmax.f32 %v362_v21, 0.0 }
  0xd4   :  { %v323_v25 = vpop.f32.mrf.mxu2 }
  0xd5   :  { %458 = vst.msk [vmem:[%s975_s3 + $0x3c] sm:$0xf] %vm442_vm0, %v436_v22  ;;  %v427_v26 = vpack.c.bf16 %v406_v24, %v406_v24  ;;  %v324_v27 = vadd.f32 %v859_v17, %v323_v25  ;;  %v391_v28 = vpop.f32.mrf.mxu3 }
  0xd6   :  { %v300_v29 = vpop.f32.mrf.mxu0 }
  0xd7   :  { %449 = vst.msk [vmem:[%s975_s3 + $0x18] sm:$0xf] %vm442_vm0, %v427_v26  ;;  %v387_v30 = vadd.f32 %v386_v2, %v324_v27  ;;  %v301_v32 = vadd.f32 %v859_v17, %v300_v29  ;;  %v363_v33 = vpop.f32.mrf.mxu1  ;;  %v309_v2 = vadd.f32 %v859_v17, %v862_v23 }
  0xd9   :  { %v416_v34 = vmax.f32 %v387_v30, 0.0  ;;  %v364_v35 = vadd.f32 %v363_v33, %v301_v32 }
  0xdb   :  { %v437_v36 = vpack.c.bf16 %v416_v34, %v416_v34  ;;  %v407_v37 = vmax.f32 %v364_v35, 0.0 }
  0xdc   :  { %v325_v38 = vpop.f32.mrf.mxu2 }
  0xdd   :  { %459 = vst.msk [vmem:[%s975_s3 + $0x40] sm:$0xf] %vm442_vm0, %v437_v36  ;;  %v428_v39 = vpack.c.bf16 %v407_v37, %v407_v37  ;;  %v326_v40 = vadd.f32 %v859_v17, %v325_v38  ;;  %v393_v41 = vpop.f32.mrf.mxu3 }
  0xde   :  { %v303_v42 = vpop.f32.mrf.mxu0 }
  0xdf   :  { %450 = vst.msk [vmem:[%s975_s3 + $0x1c] sm:$0xf] %vm442_vm0, %v428_v39  ;;  %v389_v43 = vadd.f32 %v388_v14, %v326_v40  ;;  %v304_v44 = vadd.f32 %v859_v17, %v303_v42  ;;  %v366_v45 = vpop.f32.mrf.mxu1 }
  0xe1   :  { %v417_v46 = vmax.f32 %v389_v43, 0.0  ;;  %v367_v47 = vadd.f32 %v366_v45, %v304_v44 }
  0xe3   :  { %v438_v48 = vpack.c.bf16 %v417_v46, %v417_v46  ;;  %v408_v49 = vmax.f32 %v367_v47, 0.0 }
  0xe4   :  { %v328_v50 = vpop.f32.mrf.mxu2 }
  0xe5   :  { %460 = vst.msk [vmem:[%s975_s3 + $0x44] sm:$0xf] %vm442_vm0, %v438_v48  ;;  %v429_v51 = vpack.c.bf16 %v408_v49, %v408_v49  ;;  %v329_v52 = vadd.f32 %v859_v17, %v328_v50  ;;  %v396_v53 = vpop.f32.mrf.mxu3 }
  0xe6   :  { %v305_v54 = vpop.f32.mrf.mxu0 }
  0xe7   :  { %451 = vst.msk [vmem:[%s975_s3 + $0x20] sm:$0xf] %vm442_vm0, %v429_v51  ;;  %v392_v55 = vadd.f32 %v391_v28, %v329_v52  ;;  %v306_v56 = vadd.f32 %v859_v17, %v305_v54  ;;  %v368_v57 = vpop.f32.mrf.mxu1 }
  0xe9   :  { %v418_v58 = vmax.f32 %v392_v55, 0.0  ;;  %v369_v59 = vadd.f32 %v368_v57, %v306_v56 }
  0xeb   :  { %v439_v60 = vpack.c.bf16 %v418_v58, %v418_v58  ;;  %v409_v61 = vmax.f32 %v369_v59, 0.0 }
  0xec   :  { %v330_v62 = vpop.f32.mrf.mxu2 }
  0xed   :  { %461 = vst.msk [vmem:[%s975_s3 + $0x48] sm:$0xf] %vm442_vm0, %v439_v60  ;;  %v430_v63 = vpack.c.bf16 %v409_v61, %v409_v61  ;;  %v331_v0 = vadd.f32 %v859_v17, %v330_v62  ;;  %v398_v1 = vpop.f32.mrf.mxu3 }
  0xef   :  { %452 = vst.msk [vmem:[%s975_s3 + $0x24] sm:$0xf] %vm442_vm0, %v430_v63  ;;  %v394_v3 = vadd.f32 %v393_v41, %v331_v0  ;;  %v371_v4 = vpop.f32.mrf.mxu1 }
  0xf0   :  { %v372_v5 = vadd.f32 %v371_v4, %v309_v2 }
  0xf1   :  { %v419_v6 = vmax.f32 %v394_v3, 0.0 }
  0xf2   :  { %v410_v7 = vmax.f32 %v372_v5, 0.0 }
  0xf3   :  { %v440_v8 = vpack.c.bf16 %v419_v6, %v419_v6 }
  0xf4   :  { %v431_v9 = vpack.c.bf16 %v410_v7, %v410_v7  ;;  %v333_v10 = vpop.f32.mrf.mxu2 }
  0xf5   :  { %462 = vst.msk [vmem:[%s975_s3 + $0x4c] sm:$0xf] %vm442_vm0, %v440_v8  ;;  %v334_v23 = vadd.f32 %v859_v17, %v333_v10 }
  0xf6   :  { %453 = vst.msk [vmem:[%s975_s3 + $0x28] sm:$0xf] %vm442_vm0, %v431_v9 }
  0xf7   :  { %v397_v12 = vadd.f32 %v396_v53, %v334_v23  ;;  %v373_v13 = vpop.f32.mrf.mxu1 }
  0xf8   :  { %v374_v14 = vadd.f32 %v373_v13, %v311_v11 }
  0xf9   :  { %v420_v15 = vmax.f32 %v397_v12, 0.0 }
  0xfa   :  { %v411_v16 = vmax.f32 %v374_v14, 0.0 }
  0xfb   :  { %v441_v18 = vpack.c.bf16 %v420_v15, %v420_v15 }
  0xfc   :  { %v432_v19 = vpack.c.bf16 %v411_v16, %v411_v16  ;;  %v335_v20 = vpop.f32.mrf.mxu2 }
  0xfd   :  { %463 = vst.msk [vmem:[%s975_s3 + $0x50] sm:$0xf] %vm442_vm0, %v441_v18 }
  0xfe   :  { %454 = vst.msk [vmem:[%s975_s3 + $0x2c] sm:$0xf] %vm442_vm0, %v432_v19 }

// kernel: _lambda_.6
= control target key start
LH: loop header
LB: loop body
LE: loop exit
PB: predicated region body
PF: predicated region fallthrough
CT: control target
= control target key end

     0   :  { %vm498_vm0 = vcmask 519168   ;;  %s1067_s1 = inlined_call_operand.vmem [shape: bf16[384,64], index: 1, kind: input, shape index: {}]   ;;  %s1068_s0 = inlined_call_operand.vmem [shape: bf16[104,384], index: 0, kind: input, shape index: {}]   ;;  %s1069_s2 = inlined_call_operand.vmem [shape: f32[1,64], index: 2, kind: input, shape index: {}]   ;;  %s1070_s3 = inlined_call_operand.vmem [shape: bf16[104,64], index: 3, kind: output, shape index: {}]  }
   0x1   :  { %v709_v0 = vld [vmem:[%s1067_s1 + $0x38] sm:$0xff]  ;;  %v708_v3 = vld [vmem:[%s1067_s1 + $0x30] sm:$0xff]  ;;  %v707_v6 = vld [vmem:[%s1067_s1 + $0x28] sm:$0xff] }
   0x2   :  { %v777_v1 = vld [vmem:[%s1067_s1 + $0x78] sm:$0xff]  ;;  %343 = vmatpush.bf16.msra.mxu0 %v709_v0  ;;  %726 = vmatpush.bf16.msra.mxu3 %v709_v0  ;;  %v792_v4 = vld [vmem:[%s1067_s1 + $0x70] sm:$0xff]  ;;  %v715_v7 = vld [vmem:[%s1067_s1 + $0x68] sm:$0xff] }
   0x3   :  { %v782_v2 = vld [vmem:[%s1067_s1 + $0xb8] sm:$0xff]  ;;  %734 = vmatpush.bf16.msra.mxu1 %v777_v1  ;;  %v797_v5 = vld [vmem:[%s1067_s1 + $0xb0] sm:$0xff]  ;;  %v810_v8 = vld [vmem:[%s1067_s1 + $0xa8] sm:$0xff] }
   0x4   :  { %742 = vmatpush.bf16.msra.mxu2 %v782_v2  ;;  %v706_v9 = vld [vmem:[%s1067_s1 + $0x20] sm:$0xff]  ;;  %v705_v12 = vld [vmem:[%s1067_s1 + $0x18] sm:$0xff]  ;;  %v704_v15 = vld [vmem:[%s1067_s1 + $0x10] sm:$0xff] }
   0x5   :  { %v714_v10 = vld [vmem:[%s1067_s1 + $0x60] sm:$0xff]  ;;  %v713_v13 = vld [vmem:[%s1067_s1 + $0x58] sm:$0xff]  ;;  %v712_v16 = vld [vmem:[%s1067_s1 + $0x50] sm:$0xff] }
   0x6   :  { %344 = vmatpush.bf16.msra.mxu0 %v708_v3  ;;  %727 = vmatpush.bf16.msra.mxu3 %v708_v3  ;;  %v822_v11 = vld [vmem:[%s1067_s1 + $0xa0] sm:$0xff]  ;;  %v834_v14 = vld [vmem:[%s1067_s1 + $0x98] sm:$0xff]  ;;  %v846_v17 = vld [vmem:[%s1067_s1 + $0x90] sm:$0xff] }
   0x7   :  { %735 = vmatpush.bf16.msra.mxu1 %v792_v4  ;;  %v703_v18 = vld [vmem:[%s1067_s1 + $0x8] sm:$0xff]  ;;  %v702_v21 = vld [vmem:[%s1067_s1] sm:$0xff]  ;;  %v530_v24 = vld [vmem:[%s1068_s0 + $0x18] sm:$0xf] }
   0x8   :  { %743 = vmatpush.bf16.msra.mxu2 %v797_v5  ;;  %v711_v19 = vld [vmem:[%s1067_s1 + $0x48] sm:$0xff]  ;;  %v710_v22 = vld [vmem:[%s1067_s1 + $0x40] sm:$0xff]  ;;  %v687_v26 = vld [vmem:[%s1068_s0 + $0x1c] sm:$0xf] }
   0x9   :  { %v858_v20 = vld [vmem:[%s1067_s1 + $0x88] sm:$0xff]  ;;  %v869_v23 = vld [vmem:[%s1067_s1 + $0x80] sm:$0xff]  ;;  %v542_v36 = vld [vmem:[%s1068_s0 + $0x30] sm:$0xf] }
   0xa   :  { %345 = vmatpush.bf16.msra.mxu0 %v707_v6  ;;  %728 = vmatpush.bf16.msra.mxu3 %v707_v6  ;;  %v688_v25 = vld [vmem:[%s1068_s0 + $0x20] sm:$0xf0]  ;;  %v518_v27 = vld [vmem:[%s1068_s0] sm:$0xf]  ;;  %v685_v28 = vld [vmem:[%s1068_s0 + $0x8] sm:$0xf0] }
   0xb   :  { %736 = vmatpush.bf16.msra.mxu1 %v715_v7  ;;  %v532_v29 = vld [vmem:[%s1068_s0 + $0x24] sm:$0xf0]  ;;  %v538_v30 = vld [vmem:[%s1068_s0 + $0x20] sm:$0xf]  ;;  %v689_v31 = vld [vmem:[%s1068_s0 + $0x28] sm:$0xf0]  ;;  %v531_v32 = vor.u32 %v688_v25, %v530_v24  ;;  %v519_v33 = vor.u32 %v685_v28, %v518_v27 }
   0xc   :  { %744 = vmatpush.bf16.msra.mxu2 %v810_v8  ;;  %v535_v34 = vor.u32 %v687_v26, %v532_v29  ;;  %v539_v35 = vor.u32 %v689_v31, %v538_v30  ;;  %v691_v37 = vld [vmem:[%s1068_s0 + $0x38] sm:$0xf0]  ;;  %v690_v38 = vld [vmem:[%s1068_s0 + $0x34] sm:$0xf]  ;;  %v544_v39 = vld [vmem:[%s1068_s0 + $0x3c] sm:$0xf0] }
   0xd   :  { %v550_v40 = vld [vmem:[%s1068_s0 + $0x38] sm:$0xf]  ;;  %v692_v41 = vld [vmem:[%s1068_s0 + $0x40] sm:$0xf0]  ;;  %v543_v42 = vor.u32 %v691_v37, %v542_v36  ;;  %v547_v43 = vor.u32 %v690_v38, %v544_v39  ;;  %v520_v46 = vld [vmem:[%s1068_s0 + $0xc] sm:$0xf0] }
   0xe   :  { %346 = vmatpush.bf16.msra.mxu0 %v706_v9  ;;  %729 = vmatpush.bf16.msra.mxu3 %v706_v9  ;;  %v551_v44 = vor.u32 %v692_v41, %v550_v40  ;;  %v684_v45 = vld [vmem:[%s1068_s0 + $0x4] sm:$0xf]  ;;  %v554_v47 = vld [vmem:[%s1068_s0 + $0x48] sm:$0xf]  ;;  %v694_v48 = vld [vmem:[%s1068_s0 + $0x50] sm:$0xf0] }
   0xf   :  { %737 = vmatpush.bf16.msra.mxu1 %v714_v10  ;;  %v693_v49 = vld [vmem:[%s1068_s0 + $0x4c] sm:$0xf]  ;;  %v556_v50 = vld [vmem:[%s1068_s0 + $0x54] sm:$0xf0]  ;;  %v562_v51 = vld [vmem:[%s1068_s0 + $0x50] sm:$0xf]  ;;  %v523_v53 = vor.u32 %v684_v45, %v520_v46  ;;  %v555_v54 = vor.u32 %v694_v48, %v554_v47 }
  0x10   :  { %745 = vmatpush.bf16.msra.mxu2 %v822_v11  ;;  %v695_v52 = vld [vmem:[%s1068_s0 + $0x58] sm:$0xf0]  ;;  %v559_v55 = vor.u32 %v693_v49, %v556_v50  ;;  %v566_v57 = vld [vmem:[%s1068_s0 + $0x60] sm:$0xf]  ;;  %v697_v58 = vld [vmem:[%s1068_s0 + $0x68] sm:$0xf0] }
  0x11   :  { %v563_v56 = vor.u32 %v695_v52, %v562_v51  ;;  %v696_v59 = vld [vmem:[%s1068_s0 + $0x64] sm:$0xf]  ;;  %v568_v60 = vld [vmem:[%s1068_s0 + $0x6c] sm:$0xf0]  ;;  %v574_v61 = vld [vmem:[%s1068_s0 + $0x68] sm:$0xf]  ;;  %v567_v63 = vor.u32 %v697_v58, %v566_v57 }
  0x12   :  { %347 = vmatpush.bf16.msra.mxu0 %v705_v12  ;;  %730 = vmatpush.bf16.msra.mxu3 %v705_v12  ;;  %v698_v62 = vld [vmem:[%s1068_s0 + $0x70] sm:$0xf0]  ;;  %v571_v0 = vor.u32 %v696_v59, %v568_v60  ;;  %v700_v6 = vld [vmem:[%s1068_s0 + $0x80] sm:$0xf0]  ;;  %v586_v9 = vld [vmem:[%s1068_s0 + $0x80] sm:$0xf] }
  0x13   :  { %738 = vmatpush.bf16.msra.mxu1 %v713_v13  ;;  %v686_v3 = vld [vmem:[%s1068_s0 + $0x10] sm:$0xf0] }
  0x14   :  { %746 = vmatpush.bf16.msra.mxu2 %v834_v14 }
  0x16   :  { %348 = vmatpush.bf16.msra.mxu0 %v704_v15  ;;  %731 = vmatpush.bf16.msra.mxu3 %v704_v15  ;;  %v39_v15 = vld [vmem:[%s1068_s0 + $0x98] sm:$0xf] }
  0x17   :  { %739 = vmatpush.bf16.msra.mxu1 %v712_v16 }
  0x18   :  { %747 = vmatpush.bf16.msra.mxu2 %v846_v17 }
  0x1a   :  { %349 = vmatpush.bf16.msra.mxu0 %v703_v18  ;;  %732 = vmatpush.bf16.msra.mxu3 %v703_v18  ;;  %v156_v18 = vunpack.c.l.b16 %v39_v15 }
  0x1b   :  { %740 = vmatpush.bf16.msra.mxu1 %v711_v19 }
  0x1c   :  { %748 = vmatpush.bf16.msra.mxu2 %v858_v20 }
  0x1e   :  { %350 = vmatpush.bf16.msra.mxu0 %v702_v21  ;;  %733 = vmatpush.bf16.msra.mxu3 %v702_v21  ;;  %v177_v21 = vpack.c.b16 %v156_v18, %v156_v18 }
  0x1f   :  { %741 = vmatpush.bf16.msra.mxu1 %v710_v22 }
  0x20   :  { %749 = vmatpush.bf16.msra.mxu2 %v869_v23 }
  0x21   :  { %356 = vmatmul.bf16.vlgmr.msra.gmra.mxu3 %v531_v32  ;;  %351 = vmatmul.bf16.vlgmr.msra.gmra.mxu0 %v519_v33 }
  0x22   :  { %386 = vmatpush.bf16.msrb.mxu0 %v777_v1  ;;  %399 = vmatmul.bf16.vlgmr.msra.gmra.mxu1 %v535_v34  ;;  %v575_v1 = vor.u32 %v698_v62, %v574_v61 }
  0x23   :  { %442 = vmatmul.bf16.vlgmr.msra.gmra.mxu2 %v539_v35 }
  0x26   :  { %387 = vmatpush.bf16.msrb.mxu0 %v792_v4 }
  0x2a   :  { %388 = vmatpush.bf16.msrb.mxu0 %v715_v7  ;;  %v699_v7 = vld [vmem:[%s1068_s0 + $0x7c] sm:$0xf] }
  0x2e   :  { %389 = vmatpush.bf16.msrb.mxu0 %v714_v10  ;;  %v701_v10 = vld [vmem:[%s1068_s0 + $0x88] sm:$0xf0] }
  0x31   :  { %361 = vmatmul.bf16.gmra.mxu3 %v543_v42 }
  0x32   :  { %390 = vmatpush.bf16.msrb.mxu0 %v713_v13  ;;  %404 = vmatmul.bf16.gmra.mxu1 %v547_v43  ;;  %v587_v13 = vor.u32 %v701_v10, %v586_v9 }
  0x33   :  { %447 = vmatmul.bf16.gmra.mxu2 %v551_v44 }
  0x36   :  { %391 = vmatpush.bf16.msrb.mxu0 %v712_v16 }
  0x3a   :  { %392 = vmatpush.bf16.msrb.mxu0 %v711_v19 }
  0x3e   :  { %393 = vmatpush.bf16.msrb.mxu0 %v710_v22 }
  0x41   :  { %394 = vmatmul.bf16.vlgmr.msrb.gmra.mxu0 %v523_v53  ;;  %366 = vmatmul.bf16.gmra.mxu3 %v555_v54 }
  0x42   :  { %429 = vmatpush.bf16.msra.mxu0 %v782_v2  ;;  %409 = vmatmul.bf16.gmra.mxu1 %v559_v55  ;;  %v526_v2 = vld [vmem:[%s1068_s0 + $0x8] sm:$0xf] }
  0x43   :  { %452 = vmatmul.bf16.gmra.mxu2 %v563_v56  ;;  %v527_v4 = vor.u32 %v686_v3, %v526_v2 }
  0x46   :  { %430 = vmatpush.bf16.msra.mxu0 %v797_v5  ;;  %v578_v5 = vld [vmem:[%s1068_s0 + $0x78] sm:$0xf] }
  0x4a   :  { %431 = vmatpush.bf16.msra.mxu0 %v810_v8  ;;  %v580_v8 = vld [vmem:[%s1068_s0 + $0x84] sm:$0xf0] }
  0x4b   :  { %v583_v12 = vor.u32 %v699_v7, %v580_v8 }
  0x4e   :  { %432 = vmatpush.bf16.msra.mxu0 %v822_v11  ;;  %v579_v11 = vor.u32 %v700_v6, %v578_v5 }
  0x51   :  { %371 = vmatmul.bf16.gmra.mxu3 %v567_v63 }
  0x52   :  { %433 = vmatpush.bf16.msra.mxu0 %v834_v14  ;;  %414 = vmatmul.bf16.gmra.mxu1 %v571_v0  ;;  %v38_v14 = vld [vmem:[%s1068_s0 + $0x90] sm:$0xff] }
  0x53   :  { %457 = vmatmul.bf16.gmra.mxu2 %v575_v1  ;;  %v154_v16 = vunpack.c.l.b16 %v38_v14 }
  0x55   :  { %v175_v19 = vpack.c.b16 %v154_v16, %v154_v16 }
  0x56   :  { %434 = vmatpush.bf16.msra.mxu0 %v846_v17  ;;  %v155_v17 = vunpack.c.h.b16 %v38_v14 }
  0x5a   :  { %435 = vmatpush.bf16.msra.mxu0 %v858_v20  ;;  %v176_v20 = vpack.c.b16 %v155_v17, %v155_v17 }
  0x5e   :  { %436 = vmatpush.bf16.msra.mxu0 %v869_v23  ;;  %v1000_v23 = vld [vmem:[%s1069_s2] ss:$0 sm:$0xff] }
  0x61   :  { %437 = vmatmul.bf16.vlgmr.msra.gmra.mxu0 %v527_v4  ;;  %376 = vmatmul.bf16.gmra.mxu3 %v579_v11 }
  0x62   :  { %419 = vmatmul.bf16.gmra.mxu1 %v583_v12 }
  0x63   :  { %462 = vmatmul.bf16.gmra.mxu2 %v587_v13 }
  0x71   :  { %381 = vmatmul.bf16.gmra.mxu3 %v175_v19 }
  0x72   :  { %424 = vmatmul.bf16.gmra.mxu1 %v176_v20 }
  0x73   :  { %467 = vmatmul.bf16.gmra.mxu2 %v177_v21 }
  0x9e   :  { %v352_v38 = vpop.f32.mrf.mxu0 }
  0x9f   :  { %v400_v22 = vpop.f32.mrf.mxu1  ;;  %v353_v11 = vadd.f32 %v1000_v23, %v352_v38 }
  0xa4   :  { %v357_v24 = vpop.f32.mrf.mxu3 }
  0xa5   :  { %v358_v25 = vadd.f32 %v1000_v23, %v357_v24 }
  0xa6   :  { %v443_v26 = vpop.f32.mrf.mxu2  ;;  %v354_v48 = vpop.f32.mrf.mxu0 }
  0xa7   :  { %v401_v27 = vadd.f32 %v400_v22, %v358_v25  ;;  %v402_v28 = vpop.f32.mrf.mxu1  ;;  %v355_v24 = vadd.f32 %v1000_v23, %v354_v48 }
  0xa9   :  { %v444_v29 = vadd.f32 %v443_v26, %v401_v27 }
  0xab   :  { %v474_v30 = vmax.f32 %v444_v29, 0.0 }
  0xac   :  { %v359_v31 = vpop.f32.mrf.mxu3 }
  0xad   :  { %v487_v32 = vpack.c.bf16 %v474_v30, %v474_v30  ;;  %v360_v33 = vadd.f32 %v1000_v23, %v359_v31 }
  0xae   :  { %v445_v34 = vpop.f32.mrf.mxu2 }
  0xaf   :  { %501 = vst.msk [vmem:[%s1070_s3 + $0x8] sm:$0xf] %vm498_vm0, %v487_v32  ;;  %v403_v35 = vadd.f32 %v402_v28, %v360_v33  ;;  %v405_v36 = vpop.f32.mrf.mxu1 }
  0xb1   :  { %v446_v37 = vadd.f32 %v445_v34, %v403_v35 }
  0xb3   :  { %v475_v39 = vmax.f32 %v446_v37, 0.0 }
  0xb4   :  { %v362_v40 = vpop.f32.mrf.mxu3 }
  0xb5   :  { %v488_v41 = vpack.c.bf16 %v475_v39, %v475_v39  ;;  %v363_v42 = vadd.f32 %v1000_v23, %v362_v40 }
  0xb6   :  { %v448_v43 = vpop.f32.mrf.mxu2 }
  0xb7   :  { %502 = vst.msk [vmem:[%s1070_s3 + $0xc] sm:$0xf] %vm498_vm0, %v488_v41  ;;  %v406_v44 = vadd.f32 %v405_v36, %v363_v42  ;;  %v407_v45 = vpop.f32.mrf.mxu1 }
  0xb9   :  { %v449_v46 = vadd.f32 %v448_v43, %v406_v44 }
  0xbb   :  { %v476_v47 = vmax.f32 %v449_v46, 0.0 }
  0xbc   :  { %v364_v49 = vpop.f32.mrf.mxu3 }
  0xbd   :  { %v489_v50 = vpack.c.bf16 %v476_v47, %v476_v47  ;;  %v365_v51 = vadd.f32 %v1000_v23, %v364_v49 }
  0xbe   :  { %v450_v52 = vpop.f32.mrf.mxu2  ;;  %v395_v61 = vpop.f32.mrf.mxu0 }
  0xbf   :  { %503 = vst.msk [vmem:[%s1070_s3 + $0x10] sm:$0xf] %vm498_vm0, %v489_v50  ;;  %v408_v53 = vadd.f32 %v407_v45, %v365_v51  ;;  %v410_v54 = vpop.f32.mrf.mxu1  ;;  %v396_v18 = vadd.f32 %v395_v61, %v353_v11 }
  0xc1   :  { %v451_v55 = vadd.f32 %v450_v52, %v408_v53 }
  0xc3   :  { %v477_v56 = vmax.f32 %v451_v55, 0.0 }
  0xc4   :  { %v367_v57 = vpop.f32.mrf.mxu3 }
  0xc5   :  { %v490_v58 = vpack.c.bf16 %v477_v56, %v477_v56  ;;  %v368_v59 = vadd.f32 %v1000_v23, %v367_v57 }
  0xc6   :  { %v453_v60 = vpop.f32.mrf.mxu2  ;;  %v397_v8 = vpop.f32.mrf.mxu0 }
  0xc7   :  { %504 = vst.msk [vmem:[%s1070_s3 + $0x14] sm:$0xf] %vm498_vm0, %v490_v58  ;;  %v411_v62 = vadd.f32 %v410_v54, %v368_v59  ;;  %v412_v63 = vpop.f32.mrf.mxu1  ;;  %v398_v33 = vadd.f32 %v397_v8, %v355_v24 }
  0xc9   :  { %v454_v0 = vadd.f32 %v453_v60, %v411_v62 }
  0xcb   :  { %v478_v1 = vmax.f32 %v454_v0, 0.0 }
  0xcc   :  { %v369_v2 = vpop.f32.mrf.mxu3 }
  0xcd   :  { %v491_v3 = vpack.c.bf16 %v478_v1, %v478_v1  ;;  %v370_v4 = vadd.f32 %v1000_v23, %v369_v2 }
  0xce   :  { %v455_v5 = vpop.f32.mrf.mxu2 }
  0xcf   :  { %505 = vst.msk [vmem:[%s1070_s3 + $0x18] sm:$0xf] %vm498_vm0, %v491_v3  ;;  %v413_v6 = vadd.f32 %v412_v63, %v370_v4  ;;  %v415_v7 = vpop.f32.mrf.mxu1 }
  0xd1   :  { %v456_v9 = vadd.f32 %v455_v5, %v413_v6 }
  0xd3   :  { %v479_v10 = vmax.f32 %v456_v9, 0.0 }
  0xd4   :  { %v372_v12 = vpop.f32.mrf.mxu3 }
  0xd5   :  { %v492_v13 = vpack.c.bf16 %v479_v10, %v479_v10  ;;  %v373_v14 = vadd.f32 %v1000_v23, %v372_v12 }
  0xd6   :  { %v458_v15 = vpop.f32.mrf.mxu2 }
  0xd7   :  { %506 = vst.msk [vmem:[%s1070_s3 + $0x1c] sm:$0xf] %vm498_vm0, %v492_v13  ;;  %v416_v16 = vadd.f32 %v415_v7, %v373_v14  ;;  %v417_v17 = vpop.f32.mrf.mxu1 }
  0xd9   :  { %v459_v19 = vadd.f32 %v458_v15, %v416_v16 }
  0xdb   :  { %v480_v22 = vmax.f32 %v459_v19, 0.0 }
  0xdc   :  { %v374_v26 = vpop.f32.mrf.mxu3 }
  0xdd   :  { %v493_v27 = vpack.c.bf16 %v480_v22, %v480_v22  ;;  %v375_v28 = vadd.f32 %v1000_v23, %v374_v26 }
  0xde   :  { %v438_v20 = vpop.f32.mrf.mxu0  ;;  %v460_v29 = vpop.f32.mrf.mxu2 }
  0xdf   :  { %v439_v21 = vadd.f32 %v438_v20, %v396_v18  ;;  %507 = vst.msk [vmem:[%s1070_s3 + $0x20] sm:$0xf] %vm498_vm0, %v493_v27  ;;  %v418_v31 = vadd.f32 %v417_v17, %v375_v28  ;;  %v420_v32 = vpop.f32.mrf.mxu1 }
  0xe1   :  { %v472_v25 = vmax.f32 %v439_v21, 0.0  ;;  %v461_v34 = vadd.f32 %v460_v29, %v418_v31 }
  0xe3   :  { %v485_v30 = vpack.c.bf16 %v472_v25, %v472_v25  ;;  %v481_v37 = vmax.f32 %v461_v34, 0.0 }
  0xe4   :  { %v377_v39 = vpop.f32.mrf.mxu3 }
  0xe5   :  { %499 = vst.msk [vmem:[%s1070_s3] sm:$0xf] %vm498_vm0, %v485_v30  ;;  %v494_v40 = vpack.c.bf16 %v481_v37, %v481_v37  ;;  %v378_v41 = vadd.f32 %v1000_v23, %v377_v39 }
  0xe6   :  { %v440_v35 = vpop.f32.mrf.mxu0  ;;  %v463_v42 = vpop.f32.mrf.mxu2 }
  0xe7   :  { %v441_v36 = vadd.f32 %v440_v35, %v398_v33  ;;  %508 = vst.msk [vmem:[%s1070_s3 + $0x24] sm:$0xf] %vm498_vm0, %v494_v40  ;;  %v421_v44 = vadd.f32 %v420_v32, %v378_v41  ;;  %v422_v45 = vpop.f32.mrf.mxu1 }
  0xe9   :  { %v473_v38 = vmax.f32 %v441_v36, 0.0  ;;  %v464_v46 = vadd.f32 %v463_v42, %v421_v44 }
  0xeb   :  { %v486_v43 = vpack.c.bf16 %v473_v38, %v473_v38  ;;  %v482_v47 = vmax.f32 %v464_v46, 0.0 }
  0xec   :  { %v379_v48 = vpop.f32.mrf.mxu3 }
  0xed   :  { %500 = vst.msk [vmem:[%s1070_s3 + $0x4] sm:$0xf] %vm498_vm0, %v486_v43  ;;  %v495_v49 = vpack.c.bf16 %v482_v47, %v482_v47  ;;  %v380_v50 = vadd.f32 %v1000_v23, %v379_v48 }
  0xee   :  { %v465_v51 = vpop.f32.mrf.mxu2 }
  0xef   :  { %509 = vst.msk [vmem:[%s1070_s3 + $0x28] sm:$0xf] %vm498_vm0, %v495_v49  ;;  %v423_v52 = vadd.f32 %v422_v45, %v380_v50  ;;  %v425_v53 = vpop.f32.mrf.mxu1 }
  0xf1   :  { %v466_v54 = vadd.f32 %v465_v51, %v423_v52 }
  0xf3   :  { %v483_v55 = vmax.f32 %v466_v54, 0.0 }
  0xf4   :  { %v382_v56 = vpop.f32.mrf.mxu3 }
  0xf5   :  { %v496_v57 = vpack.c.bf16 %v483_v55, %v483_v55  ;;  %v383_v58 = vadd.f32 %v1000_v23, %v382_v56 }
  0xf6   :  { %v468_v59 = vpop.f32.mrf.mxu2 }
  0xf7   :  { %510 = vst.msk [vmem:[%s1070_s3 + $0x2c] sm:$0xf] %vm498_vm0, %v496_v57  ;;  %v426_v60 = vadd.f32 %v425_v53, %v383_v58  ;;  %v427_v61 = vpop.f32.mrf.mxu1 }
  0xf9   :  { %v469_v62 = vadd.f32 %v468_v59, %v426_v60 }
  0xfb   :  { %v484_v63 = vmax.f32 %v469_v62, 0.0 }
  0xfc   :  { %v384_v0 = vpop.f32.mrf.mxu3 }
  0xfd   :  { %v497_v1 = vpack.c.bf16 %v484_v63, %v484_v63 }
  0xfe   :  { %v470_v2 = vpop.f32.mrf.mxu2 }
  0xff   :  { %511 = vst.msk [vmem:[%s1070_s3 + $0x30] sm:$0xf] %vm498_vm0, %v497_v1 }

// kernel: _lambda_.7
= control target key start
LH: loop header
LB: loop body
LE: loop exit
PB: predicated region body
PF: predicated region fallthrough
CT: control target
= control target key end

     0   :  { %10 = vsyncpa [#allocation4], 0  ;;  %s2552_s18 = smov 0   ;;  %s2977_s0 = inlined_call_operand.vmem [shape: bf16[2,3584], index: 0, kind: input, shape index: {}]   ;;  %s2978_s1 = inlined_call_operand.vmem [shape: bf16[3584,512], index: 1, kind: input, shape index: {}]   ;;  %s2979_s2 = inlined_call_operand.vmem [shape: f32[1,512], index: 2, kind: input, shape index: {}]   ;;  %s2980_s3 = inlined_call_operand.vmem [shape: bf16[512,128], index: 3, kind: input, shape index: {}]   ;;  %s2981_s4 = inlined_call_operand.vmem [shape: f32[1,128], index: 4, kind: input, shape index: {}]   ;;  %s2982_s5 = inlined_call_operand.hbm [shape: f32[2,128], index: 5, kind: output, shape index: {}]  }
   0x1 LB: > { %s2558_s19 = sadd.s32 4294967295, %s2518_s18   ;;  %p1651_p0 = scmp.ge.s32.totalorder %s2518_s18, 1  ;;  %s2518_s18 = sphi %s2552_s18, %s16_s18  }
   0x2   : > { %p195_p1 = scmp.lt.s32.totalorder %s2518_s18, 8 }
   0x4   : > { %p196_p2 = pnand %p1651_p0, %p195_p1 }
   0x5   : > { %s1652_s20 = sshll.u32 (!%p196_p2), %s2558_s19, 2  ;;  %s1653_s21 = sshll.u32 (!%p196_p2), %s2558_s19, 6 }
   0x6   : > { %199 = sbr.rel (%p196_p2) target bundleno = 475 (0x1db), region = 40  ;;  %p224_p3 = scmp.lt.s32.totalorder (!%p196_p2), %s1652_s20, 27 }
   0x7   : > { %p229_p4 = scmp.lt.s32.totalorder (!%p196_p2), %s1653_s21, 447  ;;  %p1656_p5 = scmp.ne.s32.totalorder (!%p196_p2), %s2558_s19, 0 }
   0xb   : > { %s2984_s20 = smov (!%p224_p3, %s1652_s20), 27  ;;  %s2986_s21 = smov (!%p229_p4, %s1653_s21), 447 }
   0xc   : > { %s226_s24 = scalar_lea.vmem %s2977_s0, %s2984_s20  ;;  %s2302_s25 = sshll.u32 %s2986_s21, 4 }
   0xd   : > { %s2573_s28 = scalar_lea.vmem %s2978_s1, %s2302_s25  ;;  %238 = sbr.rel (%p1656_p5) target bundleno = 20 (0x14), region = 44 }
  0x12   : > { %v2520_v0 = vmov 0.0  }
  0x13   : > { %239 = vst [vmem:[#allocation2] sm:$0xff] %v2520_v0 }
  0x14 PF: > { %v1771_v1 = vld [vmem:[%s2573_s28 + $0xe0] sm:$0xf]  ;;  %v2333_v2 = vld [vmem:[%s2573_s28 + $0xec] sm:$0xf0]  ;;  %vm1235_vm0 = vcmask 1041408   ;;  %vm1237_vm1 = vcmask 1045508  }
  0x15   : > { %v1899_v3 = vld [vmem:[%s2573_s28 + $0x1e0] sm:$0xf]  ;;  %v1772_v4 = vor.u32 %v2333_v2, %v1771_v1  ;;  %v2365_v5 = vld [vmem:[%s2573_s28 + $0x1ec] sm:$0xf0]  ;;  %vm1239_vm2 = vcmask 1043456   ;;  %p2169_p6 = scmp.ne.s32.totalorder %s2558_s19, 6 }
  0x16   : > { %v2027_v6 = vld [vmem:[%s2573_s28 + $0x2e0] sm:$0xf]  ;;  %v2397_v7 = vld [vmem:[%s2573_s28 + $0x2ec] sm:$0xf0]  ;;  %v1900_v8 = vor.u32 %v2365_v5, %v1899_v3 }
  0x17   : > { %v2028_v9 = vor.u32 %v2397_v7, %v2027_v6  ;;  %v2155_v10 = vld [vmem:[%s2573_s28 + $0x3e0] sm:$0xf]  ;;  %v2429_v11 = vld [vmem:[%s2573_s28 + $0x3ec] sm:$0xf0]  ;;  %1020 = vmatpush.bf16.msra.mxu0 %v1772_v4 }
  0x18   : > { %v1755_v12 = vld [vmem:[%s2573_s28 + $0xc0] sm:$0xf]  ;;  %v2156_v13 = vor.u32 %v2429_v11, %v2155_v10  ;;  %v2329_v14 = vld [vmem:[%s2573_s28 + $0xcc] sm:$0xf0]  ;;  %1033 = vmatpush.bf16.msra.mxu1 %v1900_v8 }
  0x19   : > { %v1883_v15 = vld [vmem:[%s2573_s28 + $0x1c0] sm:$0xf]  ;;  %v2361_v16 = vld [vmem:[%s2573_s28 + $0x1cc] sm:$0xf0]  ;;  %1046 = vmatpush.bf16.msra.mxu2 %v2028_v9  ;;  %v1756_v17 = vor.u32 %v2329_v14, %v1755_v12 }
  0x1a   : > { %v1884_v18 = vor.u32 %v2361_v16, %v1883_v15  ;;  %v2011_v19 = vld [vmem:[%s2573_s28 + $0x2c0] sm:$0xf]  ;;  %v2393_v20 = vld [vmem:[%s2573_s28 + $0x2cc] sm:$0xf0]  ;;  %1059 = vmatpush.bf16.msra.mxu3 %v2156_v13 }
  0x1b   : > { %v2139_v21 = vld [vmem:[%s2573_s28 + $0x3c0] sm:$0xf]  ;;  %v2012_v22 = vor.u32 %v2393_v20, %v2011_v19  ;;  %v2425_v23 = vld [vmem:[%s2573_s28 + $0x3cc] sm:$0xf0]  ;;  %1021 = vmatpush.bf16.msra.mxu0 %v1756_v17 }
  0x1c   : > { %v1739_v24 = vld [vmem:[%s2573_s28 + $0xa0] sm:$0xf]  ;;  %v2325_v25 = vld [vmem:[%s2573_s28 + $0xac] sm:$0xf0]  ;;  %v2140_v26 = vor.u32 %v2425_v23, %v2139_v21  ;;  %1034 = vmatpush.bf16.msra.mxu1 %v1884_v18 }
  0x1d   : > { %v1867_v27 = vld [vmem:[%s2573_s28 + $0x1a0] sm:$0xf]  ;;  %v2357_v28 = vld [vmem:[%s2573_s28 + $0x1ac] sm:$0xf0]  ;;  %v1740_v30 = vor.u32 %v2325_v25, %v1739_v24  ;;  %1047 = vmatpush.bf16.msra.mxu2 %v2012_v22 }
  0x1e   : > { %v1995_v29 = vld [vmem:[%s2573_s28 + $0x2a0] sm:$0xf]  ;;  %v2389_v31 = vld [vmem:[%s2573_s28 + $0x2ac] sm:$0xf0]  ;;  %v1868_v34 = vor.u32 %v2357_v28, %v1867_v27  ;;  %1060 = vmatpush.bf16.msra.mxu3 %v2140_v26 }
  0x1f   : > { %v2123_v32 = vld [vmem:[%s2573_s28 + $0x3a0] sm:$0xf]  ;;  %v2421_v33 = vld [vmem:[%s2573_s28 + $0x3ac] sm:$0xf0]  ;;  %v1996_v35 = vor.u32 %v2389_v31, %v1995_v29  ;;  %1022 = vmatpush.bf16.msra.mxu0 %v1740_v30  ;;  %v2331_v29 = vld [vmem:[%s2573_s28 + $0xe4] sm:$0xf] }
  0x20   : > { %v1723_v36 = vld [vmem:[%s2573_s28 + $0x80] sm:$0xf]  ;;  %v2321_v37 = vld [vmem:[%s2573_s28 + $0x8c] sm:$0xf0]  ;;  %v2124_v39 = vor.u32 %v2421_v33, %v2123_v32  ;;  %1035 = vmatpush.bf16.msra.mxu1 %v1868_v34  ;;  %v1773_v30 = vld [vmem:[%s2573_s28 + $0xf0] sm:$0xf0] }
  0x21   : > { %v1851_v38 = vld [vmem:[%s2573_s28 + $0x180] sm:$0xf]  ;;  %v2353_v40 = vld [vmem:[%s2573_s28 + $0x18c] sm:$0xf0]  ;;  %v1724_v45 = vor.u32 %v2321_v37, %v1723_v36  ;;  %1048 = vmatpush.bf16.msra.mxu2 %v1996_v35  ;;  %v2363_v31 = vld [vmem:[%s2573_s28 + $0x1e4] sm:$0xf] }
  0x22   : > { %v1979_v41 = vld [vmem:[%s2573_s28 + $0x280] sm:$0xf]  ;;  %v2385_v42 = vld [vmem:[%s2573_s28 + $0x28c] sm:$0xf0]  ;;  %v1852_v46 = vor.u32 %v2353_v40, %v1851_v38  ;;  %1061 = vmatpush.bf16.msra.mxu3 %v2124_v39  ;;  %v1901_v33 = vld [vmem:[%s2573_s28 + $0x1f0] sm:$0xf0] }
  0x23   : > { %v2107_v43 = vld [vmem:[%s2573_s28 + $0x380] sm:$0xf]  ;;  %v2417_v44 = vld [vmem:[%s2573_s28 + $0x38c] sm:$0xf0]  ;;  %v1980_v47 = vor.u32 %v2385_v42, %v1979_v41  ;;  %1023 = vmatpush.bf16.msra.mxu0 %v1724_v45  ;;  %v2395_v34 = vld [vmem:[%s2573_s28 + $0x2e4] sm:$0xf]  ;;  %v1776_v41 = vor.u32 %v2331_v29, %v1773_v30  ;;  %v1904_v42 = vor.u32 %v2363_v31, %v1901_v33 }
  0x24   : > { %v1707_v48 = vld [vmem:[%s2573_s28 + $0x60] sm:$0xf]  ;;  %v2317_v49 = vld [vmem:[%s2573_s28 + $0x6c] sm:$0xf0]  ;;  %v2108_v51 = vor.u32 %v2417_v44, %v2107_v43  ;;  %1036 = vmatpush.bf16.msra.mxu1 %v1852_v46  ;;  %v2029_v35 = vld [vmem:[%s2573_s28 + $0x2f0] sm:$0xf0] }
  0x25   : > { %v1835_v50 = vld [vmem:[%s2573_s28 + $0x160] sm:$0xf]  ;;  %v2349_v52 = vld [vmem:[%s2573_s28 + $0x16c] sm:$0xf0]  ;;  %v1708_v57 = vor.u32 %v2317_v49, %v1707_v48  ;;  %1049 = vmatpush.bf16.msra.mxu2 %v1980_v47  ;;  %v2427_v38 = vld [vmem:[%s2573_s28 + $0x3e4] sm:$0xf]  ;;  %v2032_v43 = vor.u32 %v2395_v34, %v2029_v35 }
  0x26   : > { %v1963_v53 = vld [vmem:[%s2573_s28 + $0x260] sm:$0xf]  ;;  %v2381_v54 = vld [vmem:[%s2573_s28 + $0x26c] sm:$0xf0]  ;;  %v1836_v58 = vor.u32 %v2349_v52, %v1835_v50  ;;  %1062 = vmatpush.bf16.msra.mxu3 %v2108_v51  ;;  %v2157_v39 = vld [vmem:[%s2573_s28 + $0x3f0] sm:$0xf0] }
  0x27   : > { %v2091_v55 = vld [vmem:[%s2573_s28 + $0x360] sm:$0xf]  ;;  %v2413_v56 = vld [vmem:[%s2573_s28 + $0x36c] sm:$0xf0]  ;;  %v1964_v59 = vor.u32 %v2381_v54, %v1963_v53  ;;  %1024 = vmatpush.bf16.msra.mxu0 %v1708_v57  ;;  %v2327_v44 = vld [vmem:[%s2573_s28 + $0xc4] sm:$0xf]  ;;  %v2160_v47 = vor.u32 %v2427_v38, %v2157_v39 }
  0x28   : > { %v1691_v60 = vld [vmem:[%s2573_s28 + $0x40] sm:$0xf]  ;;  %v2313_v61 = vld [vmem:[%s2573_s28 + $0x4c] sm:$0xf0]  ;;  %v2092_v63 = vor.u32 %v2413_v56, %v2091_v55  ;;  %1037 = vmatpush.bf16.msra.mxu1 %v1836_v58  ;;  %v1757_v45 = vld [vmem:[%s2573_s28 + $0xd0] sm:$0xf0] }
  0x29   : > { %v1819_v62 = vld [vmem:[%s2573_s28 + $0x140] sm:$0xf]  ;;  %v2345_v0 = vld [vmem:[%s2573_s28 + $0x14c] sm:$0xf0]  ;;  %v1692_v5 = vor.u32 %v2313_v61, %v1691_v60  ;;  %1050 = vmatpush.bf16.msra.mxu2 %v1964_v59  ;;  %v2359_v46 = vld [vmem:[%s2573_s28 + $0x1c4] sm:$0xf]  ;;  %v1760_v54 = vor.u32 %v2327_v44, %v1757_v45 }
  0x2a   : > { %v1947_v1 = vld [vmem:[%s2573_s28 + $0x240] sm:$0xf]  ;;  %v2377_v2 = vld [vmem:[%s2573_s28 + $0x24c] sm:$0xf0]  ;;  %v1820_v6 = vor.u32 %v2345_v0, %v1819_v62  ;;  %1063 = vmatpush.bf16.msra.mxu3 %v2092_v63  ;;  %v1885_v48 = vld [vmem:[%s2573_s28 + $0x1d0] sm:$0xf0] }
  0x2b   : > { %v2075_v3 = vld [vmem:[%s2573_s28 + $0x340] sm:$0xf]  ;;  %v2409_v4 = vld [vmem:[%s2573_s28 + $0x34c] sm:$0xf0]  ;;  %v1948_v7 = vor.u32 %v2377_v2, %v1947_v1  ;;  %1025 = vmatpush.bf16.msra.mxu0 %v1692_v5  ;;  %v2391_v49 = vld [vmem:[%s2573_s28 + $0x2c4] sm:$0xf]  ;;  %v1888_v55 = vor.u32 %v2359_v46, %v1885_v48 }
  0x2c   : > { %v1675_v8 = vld [vmem:[%s2573_s28 + $0x20] sm:$0xf]  ;;  %v2309_v9 = vld [vmem:[%s2573_s28 + $0x2c] sm:$0xf0]  ;;  %v2076_v11 = vor.u32 %v2409_v4, %v2075_v3  ;;  %1038 = vmatpush.bf16.msra.mxu1 %v1820_v6  ;;  %v2013_v50 = vld [vmem:[%s2573_s28 + $0x2d0] sm:$0xf0] }
  0x2d   : > { %v1803_v10 = vld [vmem:[%s2573_s28 + $0x120] sm:$0xf]  ;;  %v2341_v12 = vld [vmem:[%s2573_s28 + $0x12c] sm:$0xf0]  ;;  %v1676_v17 = vor.u32 %v2309_v9, %v1675_v8  ;;  %1051 = vmatpush.bf16.msra.mxu2 %v1948_v7  ;;  %v2423_v51 = vld [vmem:[%s2573_s28 + $0x3c4] sm:$0xf]  ;;  %v2016_v56 = vor.u32 %v2391_v49, %v2013_v50 }
  0x2e   : > { %v1931_v13 = vld [vmem:[%s2573_s28 + $0x220] sm:$0xf]  ;;  %v2373_v14 = vld [vmem:[%s2573_s28 + $0x22c] sm:$0xf0]  ;;  %v1804_v20 = vor.u32 %v2341_v12, %v1803_v10  ;;  %1064 = vmatpush.bf16.msra.mxu3 %v2076_v11  ;;  %v2141_v52 = vld [vmem:[%s2573_s28 + $0x3d0] sm:$0xf0] }
  0x2f   : > { %v2059_v15 = vld [vmem:[%s2573_s28 + $0x320] sm:$0xf]  ;;  %v2405_v16 = vld [vmem:[%s2573_s28 + $0x32c] sm:$0xf0]  ;;  %v1932_v21 = vor.u32 %v2373_v14, %v1931_v13  ;;  %1026 = vmatpush.bf16.msra.mxu0 %v1676_v17  ;;  %v2323_v57 = vld [vmem:[%s2573_s28 + $0xa4] sm:$0xf]  ;;  %v2144_v60 = vor.u32 %v2423_v51, %v2141_v52 }
  0x30   : > { %v1659_v18 = vld [vmem:[%s2573_s28] sm:$0xf]  ;;  %v2305_v19 = vld [vmem:[%s2573_s28 + $0xc] sm:$0xf0]  ;;  %v2060_v25 = vor.u32 %v2405_v16, %v2059_v15  ;;  %1039 = vmatpush.bf16.msra.mxu1 %v1804_v20  ;;  %v1741_v58 = vld [vmem:[%s2573_s28 + $0xb0] sm:$0xf0] }
  0x31   : > { %v1787_v22 = vld [vmem:[%s2573_s28 + $0x100] sm:$0xf]  ;;  %v2337_v23 = vld [vmem:[%s2573_s28 + $0x10c] sm:$0xf0]  ;;  %v1660_v32 = vor.u32 %v2305_v19, %v1659_v18  ;;  %1052 = vmatpush.bf16.msra.mxu2 %v1932_v21  ;;  %v2355_v59 = vld [vmem:[%s2573_s28 + $0x1a4] sm:$0xf]  ;;  %v1744_v2 = vor.u32 %v2323_v57, %v1741_v58 }
  0x32   : > { %v1915_v24 = vld [vmem:[%s2573_s28 + $0x200] sm:$0xf]  ;;  %v2369_v26 = vld [vmem:[%s2573_s28 + $0x20c] sm:$0xf0]  ;;  %v1788_v36 = vor.u32 %v2337_v23, %v1787_v22  ;;  %1065 = vmatpush.bf16.msra.mxu3 %v2060_v25  ;;  %v1869_v61 = vld [vmem:[%s2573_s28 + $0x1b0] sm:$0xf0] }
  0x33   : > { %v2043_v27 = vld [vmem:[%s2573_s28 + $0x300] sm:$0xf]  ;;  %v2401_v28 = vld [vmem:[%s2573_s28 + $0x30c] sm:$0xf0]  ;;  %v1916_v37 = vor.u32 %v2369_v26, %v1915_v24  ;;  %1027 = vmatpush.bf16.msra.mxu0 %v1660_v32  ;;  %v2387_v62 = vld [vmem:[%s2573_s28 + $0x2a4] sm:$0xf]  ;;  %v1872_v4 = vor.u32 %v2355_v59, %v1869_v61 }
  0x34   : > { %v2044_v40 = vor.u32 %v2401_v28, %v2043_v27  ;;  %1040 = vmatpush.bf16.msra.mxu1 %v1788_v36  ;;  %v241_v53 = vld [vmem:[%s226_s24] sm:$0xf]  ;;  %v1997_v63 = vld [vmem:[%s2573_s28 + $0x2b0] sm:$0xf0]  ;;  %v2419_v0 = vld [vmem:[%s2573_s28 + $0x3a4] sm:$0xf] }
  0x35   : > { %1053 = vmatpush.bf16.msra.mxu2 %v1916_v37  ;;  %371 = vst [vmem:[#allocation1] ss:$9 sm:$0xff] %v241_v53  ;;  %v2125_v1 = vld [vmem:[%s2573_s28 + $0x3b0] sm:$0xf0]  ;;  %v2319_v3 = vld [vmem:[%s2573_s28 + $0x84] sm:$0xf]  ;;  %v2000_v5 = vor.u32 %v2387_v62, %v1997_v63 }
  0x36   : > { %1066 = vmatpush.bf16.msra.mxu3 %v2044_v40  ;;  %v1725_v6 = vld [vmem:[%s2573_s28 + $0x90] sm:$0xf0]  ;;  %v2351_v7 = vld [vmem:[%s2573_s28 + $0x184] sm:$0xf]  ;;  %v2128_v9 = vor.u32 %v2419_v0, %v2125_v1 }
  0x37   : > { %1072 = vmatpush.bf16.msrb.mxu0 %v1776_v41  ;;  %v1853_v8 = vld [vmem:[%s2573_s28 + $0x190] sm:$0xf0]  ;;  %v2383_v10 = vld [vmem:[%s2573_s28 + $0x284] sm:$0xf]  ;;  %v1728_v16 = vor.u32 %v2319_v3, %v1725_v6  ;;  %v2334_v3 = vld [vmem:[%s2573_s28 + $0xf4] sm:$0xf0] }
  0x38   : > { %1085 = vmatpush.bf16.msrb.mxu1 %v1904_v42  ;;  %v1981_v11 = vld [vmem:[%s2573_s28 + $0x290] sm:$0xf0]  ;;  %v2415_v12 = vld [vmem:[%s2573_s28 + $0x384] sm:$0xf]  ;;  %v1856_v19 = vor.u32 %v2351_v7, %v1853_v8  ;;  %v2366_v6 = vld [vmem:[%s2573_s28 + $0x1f4] sm:$0xf0] }
  0x39   : > { %1098 = vmatpush.bf16.msrb.mxu2 %v2032_v43  ;;  %v2109_v13 = vld [vmem:[%s2573_s28 + $0x390] sm:$0xf0]  ;;  %v1984_v20 = vor.u32 %v2383_v10, %v1981_v11  ;;  %v2315_v21 = vld [vmem:[%s2573_s28 + $0x64] sm:$0xf]  ;;  %v2035_v7 = vld [vmem:[%s2573_s28 + $0x2e8] sm:$0xf] }
  0x3a   : > { %1111 = vmatpush.bf16.msrb.mxu3 %v2160_v47  ;;  %v1709_v22 = vld [vmem:[%s2573_s28 + $0x70] sm:$0xf0]  ;;  %v2347_v23 = vld [vmem:[%s2573_s28 + $0x164] sm:$0xf]  ;;  %v2112_v24 = vor.u32 %v2415_v12, %v2109_v13  ;;  %v2398_v8 = vld [vmem:[%s2573_s28 + $0x2f4] sm:$0xf0] }
  0x3b   : > { %1073 = vmatpush.bf16.msrb.mxu0 %v1760_v54  ;;  %v1837_v25 = vld [vmem:[%s2573_s28 + $0x170] sm:$0xf0]  ;;  %v2379_v26 = vld [vmem:[%s2573_s28 + $0x264] sm:$0xf]  ;;  %v1712_v30 = vor.u32 %v2315_v21, %v1709_v22  ;;  %v2163_v11 = vld [vmem:[%s2573_s28 + $0x3e8] sm:$0xf] }
  0x3c   : > { %1086 = vmatpush.bf16.msrb.mxu1 %v1888_v55  ;;  %v2677_v14 = vld [vmem:[#allocation1 + $0x12] sm:$0xff]  ;;  %v2679_v15 = vld [vmem:[#allocation1] sm:$0xff]  ;;  %v2684_v18 = vld [vmem:[#allocation1 + $0x9] sm:$0xff]  ;;  %v1840_v31 = vor.u32 %v2347_v23, %v1837_v25 }
  0x3d   : > { %1099 = vmatpush.bf16.msrb.mxu2 %v2016_v56  ;;  %v2682_v17 = vld [vmem:[#allocation1 + $0x1b] sm:$0xff]  ;;  %v1965_v27 = vld [vmem:[%s2573_s28 + $0x270] sm:$0xf0]  ;;  %1028 = vmatmul.bf16.vlgmr.msra.gmra.mxu0 %v2679_v15  ;;  %v2411_v28 = vld [vmem:[%s2573_s28 + $0x364] sm:$0xf] }
  0x3e   : > { %1112 = vmatpush.bf16.msrb.mxu3 %v2144_v60  ;;  %1054 = vmatmul.bf16.vlgmr.msra.gmra.mxu2 %v2677_v14  ;;  %v2093_v29 = vld [vmem:[%s2573_s28 + $0x370] sm:$0xf0]  ;;  %v1968_v32 = vor.u32 %v2379_v26, %v1965_v27  ;;  %v2311_v33 = vld [vmem:[%s2573_s28 + $0x44] sm:$0xf]  ;;  %v2430_v12 = vld [vmem:[%s2573_s28 + $0x3f4] sm:$0xf0] }
  0x3f   : > { %1074 = vmatpush.bf16.msrb.mxu0 %v1744_v2  ;;  %1067 = vmatmul.bf16.vlgmr.msra.gmra.mxu3 %v2682_v17  ;;  %v1693_v34 = vld [vmem:[%s2573_s28 + $0x50] sm:$0xf0]  ;;  %v2343_v35 = vld [vmem:[%s2573_s28 + $0x144] sm:$0xf]  ;;  %v2096_v36 = vor.u32 %v2411_v28, %v2093_v29  ;;  %v1779_v2 = vld [vmem:[%s2573_s28 + $0xe8] sm:$0xf] }
  0x40   : > { %1087 = vmatpush.bf16.msrb.mxu1 %v1872_v4  ;;  %v1821_v37 = vld [vmem:[%s2573_s28 + $0x150] sm:$0xf0]  ;;  %v2375_v38 = vld [vmem:[%s2573_s28 + $0x244] sm:$0xf]  ;;  %v1696_v42 = vor.u32 %v2311_v33, %v1693_v34  ;;  %v1907_v4 = vld [vmem:[%s2573_s28 + $0x1e8] sm:$0xf] }
  0x41   : > { %1100 = vmatpush.bf16.msrb.mxu2 %v2000_v5  ;;  %1041 = vmatmul.bf16.vlgmr.msra.gmra.mxu1 %v2684_v18  ;;  %v1949_v39 = vld [vmem:[%s2573_s28 + $0x250] sm:$0xf0]  ;;  %v2407_v40 = vld [vmem:[%s2573_s28 + $0x344] sm:$0xf]  ;;  %v1824_v43 = vor.u32 %v2343_v35, %v1821_v37  ;;  %v1763_v21 = vld [vmem:[%s2573_s28 + $0xc8] sm:$0xf] }
  0x42   : > { %1113 = vmatpush.bf16.msrb.mxu3 %v2128_v9  ;;  %v2077_v41 = vld [vmem:[%s2573_s28 + $0x350] sm:$0xf0]  ;;  %v1952_v44 = vor.u32 %v2375_v38, %v1949_v39  ;;  %v2307_v45 = vld [vmem:[%s2573_s28 + $0x24] sm:$0xf]  ;;  %v2330_v22 = vld [vmem:[%s2573_s28 + $0xd4] sm:$0xf0] }
  0x43   : > { %1075 = vmatpush.bf16.msrb.mxu0 %v1728_v16  ;;  %v1677_v46 = vld [vmem:[%s2573_s28 + $0x30] sm:$0xf0]  ;;  %v2339_v47 = vld [vmem:[%s2573_s28 + $0x124] sm:$0xf]  ;;  %v2080_v48 = vor.u32 %v2407_v40, %v2077_v41  ;;  %v1780_v16 = vor.u32 %v2334_v3, %v1779_v2  ;;  %v1891_v23 = vld [vmem:[%s2573_s28 + $0x1c8] sm:$0xf] }
  0x44   : > { %1088 = vmatpush.bf16.msrb.mxu1 %v1856_v19  ;;  %v1805_v49 = vld [vmem:[%s2573_s28 + $0x130] sm:$0xf0]  ;;  %v2371_v50 = vld [vmem:[%s2573_s28 + $0x224] sm:$0xf]  ;;  %v1680_v54 = vor.u32 %v2307_v45, %v1677_v46  ;;  %v1908_v19 = vor.u32 %v2366_v6, %v1907_v4  ;;  %v2362_v25 = vld [vmem:[%s2573_s28 + $0x1d4] sm:$0xf0] }
  0x45   : > { %1101 = vmatpush.bf16.msrb.mxu2 %v1984_v20  ;;  %v1933_v51 = vld [vmem:[%s2573_s28 + $0x230] sm:$0xf0]  ;;  %v2403_v52 = vld [vmem:[%s2573_s28 + $0x324] sm:$0xf]  ;;  %v1808_v57 = vor.u32 %v2339_v47, %v1805_v49  ;;  %v2036_v20 = vor.u32 %v2398_v8, %v2035_v7  ;;  %v2019_v26 = vld [vmem:[%s2573_s28 + $0x2c8] sm:$0xf] }
  0x46   : > { %1114 = vmatpush.bf16.msrb.mxu3 %v2112_v24  ;;  %v2061_v53 = vld [vmem:[%s2573_s28 + $0x330] sm:$0xf0]  ;;  %v2303_v55 = vld [vmem:[%s2573_s28 + $0x4] sm:$0xf]  ;;  %v1936_v58 = vor.u32 %v2371_v50, %v1933_v51  ;;  %v2164_v24 = vor.u32 %v2430_v12, %v2163_v11  ;;  %v2394_v27 = vld [vmem:[%s2573_s28 + $0x2d4] sm:$0xf0] }
  0x47   : > { %1076 = vmatpush.bf16.msrb.mxu0 %v1712_v30  ;;  %v1661_v56 = vld [vmem:[%s2573_s28 + $0x10] sm:$0xf0]  ;;  %v2335_v59 = vld [vmem:[%s2573_s28 + $0x104] sm:$0xf]  ;;  %v2064_v62 = vor.u32 %v2403_v52, %v2061_v53  ;;  %v2147_v28 = vld [vmem:[%s2573_s28 + $0x3c8] sm:$0xf]  ;;  %v1764_v30 = vor.u32 %v2330_v22, %v1763_v21 }
  0x48   : > { %1089 = vmatpush.bf16.msrb.mxu1 %v1840_v31  ;;  %v1789_v60 = vld [vmem:[%s2573_s28 + $0x110] sm:$0xf0]  ;;  %v2367_v61 = vld [vmem:[%s2573_s28 + $0x204] sm:$0xf]  ;;  %v1664_v5 = vor.u32 %v2303_v55, %v1661_v56  ;;  %v2426_v29 = vld [vmem:[%s2573_s28 + $0x3d4] sm:$0xf0]  ;;  %v1892_v31 = vor.u32 %v2362_v25, %v1891_v23 }
  0x49   : > { %1102 = vmatpush.bf16.msrb.mxu2 %v1968_v32  ;;  %v1917_v63 = vld [vmem:[%s2573_s28 + $0x210] sm:$0xf0]  ;;  %v2399_v0 = vld [vmem:[%s2573_s28 + $0x304] sm:$0xf]  ;;  %v1792_v9 = vor.u32 %v2335_v59, %v1789_v60  ;;  %v2020_v32 = vor.u32 %v2394_v27, %v2019_v26  ;;  %v1747_v33 = vld [vmem:[%s2573_s28 + $0xa8] sm:$0xf] }
  0x4a   : > { %1115 = vmatpush.bf16.msrb.mxu3 %v2096_v36  ;;  %v2045_v1 = vld [vmem:[%s2573_s28 + $0x310] sm:$0xf0]  ;;  %v1920_v10 = vor.u32 %v2367_v61, %v1917_v63  ;;  %v2326_v34 = vld [vmem:[%s2573_s28 + $0xb4] sm:$0xf0]  ;;  %v1875_v35 = vld [vmem:[%s2573_s28 + $0x1a8] sm:$0xf]  ;;  %v2148_v36 = vor.u32 %v2426_v29, %v2147_v28 }
  0x4b   : > { %1077 = vmatpush.bf16.msrb.mxu0 %v1696_v42  ;;  %v2048_v13 = vor.u32 %v2399_v0, %v2045_v1  ;;  %v2358_v37 = vld [vmem:[%s2573_s28 + $0x1b4] sm:$0xf0]  ;;  %v2003_v38 = vld [vmem:[%s2573_s28 + $0x2a8] sm:$0xf]  ;;  %v1748_v42 = vor.u32 %v2326_v34, %v1747_v33 }
  0x4c   : > { %1090 = vmatpush.bf16.msrb.mxu1 %v1824_v43  ;;  %v2390_v39 = vld [vmem:[%s2573_s28 + $0x2b4] sm:$0xf0]  ;;  %v2131_v40 = vld [vmem:[%s2573_s28 + $0x3a8] sm:$0xf]  ;;  %v1876_v43 = vor.u32 %v2358_v37, %v1875_v35 }
  0x4d   : > { %1103 = vmatpush.bf16.msrb.mxu2 %v1952_v44  ;;  %v2422_v41 = vld [vmem:[%s2573_s28 + $0x3b4] sm:$0xf0]  ;;  %v2004_v44 = vor.u32 %v2390_v39, %v2003_v38  ;;  %v1731_v45 = vld [vmem:[%s2573_s28 + $0x88] sm:$0xf] }
  0x4e   : > { %1116 = vmatpush.bf16.msrb.mxu3 %v2080_v48  ;;  %v2322_v46 = vld [vmem:[%s2573_s28 + $0x94] sm:$0xf0]  ;;  %v1859_v47 = vld [vmem:[%s2573_s28 + $0x188] sm:$0xf]  ;;  %v2132_v48 = vor.u32 %v2422_v41, %v2131_v40 }
  0x4f   : > { %1078 = vmatpush.bf16.msrb.mxu0 %v1680_v54  ;;  %v2354_v49 = vld [vmem:[%s2573_s28 + $0x194] sm:$0xf0]  ;;  %v1987_v50 = vld [vmem:[%s2573_s28 + $0x288] sm:$0xf]  ;;  %v1732_v54 = vor.u32 %v2322_v46, %v1731_v45  ;;  %v1909_v46 = vld [vmem:[%s2573_s28 + $0x1f8] sm:$0xf0] }
  0x50   : > { %1091 = vmatpush.bf16.msrb.mxu1 %v1808_v57  ;;  %v2386_v51 = vld [vmem:[%s2573_s28 + $0x294] sm:$0xf0]  ;;  %v2115_v52 = vld [vmem:[%s2573_s28 + $0x388] sm:$0xf]  ;;  %v1860_v55 = vor.u32 %v2354_v49, %v1859_v47  ;;  %v2396_v47 = vld [vmem:[%s2573_s28 + $0x2ec] sm:$0xf] }
  0x51   : > { %1104 = vmatpush.bf16.msrb.mxu2 %v1936_v58  ;;  %v2418_v53 = vld [vmem:[%s2573_s28 + $0x394] sm:$0xf0]  ;;  %v1988_v56 = vor.u32 %v2386_v51, %v1987_v50  ;;  %v1715_v57 = vld [vmem:[%s2573_s28 + $0x68] sm:$0xf]  ;;  %v2428_v51 = vld [vmem:[%s2573_s28 + $0x3ec] sm:$0xf] }
  0x52   : > { %1117 = vmatpush.bf16.msrb.mxu3 %v2064_v62  ;;  %v2318_v58 = vld [vmem:[%s2573_s28 + $0x74] sm:$0xf0]  ;;  %v1843_v59 = vld [vmem:[%s2573_s28 + $0x168] sm:$0xf]  ;;  %v2116_v60 = vor.u32 %v2418_v53, %v2115_v52  ;;  %v2165_v52 = vld [vmem:[%s2573_s28 + $0x3f8] sm:$0xf0] }
  0x53   : > { %1079 = vmatpush.bf16.msrb.mxu0 %v1664_v5  ;;  %v2350_v61 = vld [vmem:[%s2573_s28 + $0x174] sm:$0xf0]  ;;  %v1971_v62 = vld [vmem:[%s2573_s28 + $0x268] sm:$0xf]  ;;  %v1716_v2 = vor.u32 %v2318_v58, %v1715_v57  ;;  %v2328_v57 = vld [vmem:[%s2573_s28 + $0xcc] sm:$0xf] }
  0x54   : > { %1092 = vmatpush.bf16.msrb.mxu1 %v1792_v9  ;;  %v2382_v63 = vld [vmem:[%s2573_s28 + $0x274] sm:$0xf0]  ;;  %v2099_v0 = vld [vmem:[%s2573_s28 + $0x368] sm:$0xf]  ;;  %v1844_v3 = vor.u32 %v2350_v61, %v1843_v59  ;;  %v1765_v58 = vld [vmem:[%s2573_s28 + $0xd8] sm:$0xf0] }
  0x55   : > { %1105 = vmatpush.bf16.msrb.mxu2 %v1920_v10  ;;  %v2414_v1 = vld [vmem:[%s2573_s28 + $0x374] sm:$0xf0]  ;;  %v1972_v4 = vor.u32 %v2382_v63, %v1971_v62  ;;  %v1699_v5 = vld [vmem:[%s2573_s28 + $0x48] sm:$0xf]  ;;  %v2360_v59 = vld [vmem:[%s2573_s28 + $0x1cc] sm:$0xf] }
  0x56   : > { %1118 = vmatpush.bf16.msrb.mxu3 %v2048_v13  ;;  %1080 = vmatmul.bf16.vlgmr.msrb.gmra.mxu0 %v2679_v15  ;;  %v2314_v6 = vld [vmem:[%s2573_s28 + $0x54] sm:$0xf0]  ;;  %v1827_v7 = vld [vmem:[%s2573_s28 + $0x148] sm:$0xf]  ;;  %v2100_v8 = vor.u32 %v2414_v1, %v2099_v0  ;;  %v1893_v61 = vld [vmem:[%s2573_s28 + $0x1d8] sm:$0xf0] }
  0x57   : > { %1124 = vmatpush.bf16.msra.mxu0 %v1780_v16  ;;  %1093 = vmatmul.bf16.vlgmr.msrb.gmra.mxu1 %v2684_v18  ;;  %v2346_v9 = vld [vmem:[%s2573_s28 + $0x154] sm:$0xf0]  ;;  %v1955_v10 = vld [vmem:[%s2573_s28 + $0x248] sm:$0xf]  ;;  %v1700_v16 = vor.u32 %v2314_v6, %v1699_v5  ;;  %v2392_v62 = vld [vmem:[%s2573_s28 + $0x2cc] sm:$0xf] }
  0x58   : > { %1137 = vmatpush.bf16.msra.mxu1 %v1908_v19  ;;  %1106 = vmatmul.bf16.vlgmr.msrb.gmra.mxu2 %v2677_v14  ;;  %v2378_v11 = vld [vmem:[%s2573_s28 + $0x254] sm:$0xf0]  ;;  %v2083_v12 = vld [vmem:[%s2573_s28 + $0x348] sm:$0xf]  ;;  %v1828_v19 = vor.u32 %v2346_v9, %v1827_v7  ;;  %v2021_v63 = vld [vmem:[%s2573_s28 + $0x2d8] sm:$0xf0] }
  0x59   : > { %1150 = vmatpush.bf16.msra.mxu2 %v2036_v20  ;;  %1119 = vmatmul.bf16.vlgmr.msrb.gmra.mxu3 %v2682_v17  ;;  %v2410_v13 = vld [vmem:[%s2573_s28 + $0x354] sm:$0xf0]  ;;  %v1956_v20 = vor.u32 %v2378_v11, %v1955_v10  ;;  %v1683_v21 = vld [vmem:[%s2573_s28 + $0x28] sm:$0xf]  ;;  %v2424_v0 = vld [vmem:[%s2573_s28 + $0x3cc] sm:$0xf] }
  0x5a   : > { %1163 = vmatpush.bf16.msra.mxu3 %v2164_v24  ;;  %v2310_v22 = vld [vmem:[%s2573_s28 + $0x34] sm:$0xf0]  ;;  %v1811_v23 = vld [vmem:[%s2573_s28 + $0x128] sm:$0xf]  ;;  %v2084_v24 = vor.u32 %v2410_v13, %v2083_v12  ;;  %v2149_v1 = vld [vmem:[%s2573_s28 + $0x3d8] sm:$0xf0] }
  0x5b   : > { %1125 = vmatpush.bf16.msra.mxu0 %v1764_v30  ;;  %v2342_v25 = vld [vmem:[%s2573_s28 + $0x134] sm:$0xf0]  ;;  %v1939_v26 = vld [vmem:[%s2573_s28 + $0x228] sm:$0xf]  ;;  %v1684_v30 = vor.u32 %v2310_v22, %v1683_v21  ;;  %v2324_v5 = vld [vmem:[%s2573_s28 + $0xac] sm:$0xf] }
  0x5c   : > { %1138 = vmatpush.bf16.msra.mxu1 %v1892_v31  ;;  %v2374_v27 = vld [vmem:[%s2573_s28 + $0x234] sm:$0xf0]  ;;  %v2067_v28 = vld [vmem:[%s2573_s28 + $0x328] sm:$0xf]  ;;  %v1812_v33 = vor.u32 %v2342_v25, %v1811_v23  ;;  %v1749_v6 = vld [vmem:[%s2573_s28 + $0xb8] sm:$0xf0] }
  0x5d   : > { %1151 = vmatpush.bf16.msra.mxu2 %v2020_v32  ;;  %v2406_v29 = vld [vmem:[%s2573_s28 + $0x334] sm:$0xf0]  ;;  %v1667_v31 = vld [vmem:[%s2573_s28 + $0x8] sm:$0xf]  ;;  %v1940_v34 = vor.u32 %v2374_v27, %v1939_v26  ;;  %v2356_v7 = vld [vmem:[%s2573_s28 + $0x1ac] sm:$0xf] }
  0x5e   : > { %1164 = vmatpush.bf16.msra.mxu3 %v2148_v36  ;;  %v2306_v32 = vld [vmem:[%s2573_s28 + $0x14] sm:$0xf0]  ;;  %v1795_v35 = vld [vmem:[%s2573_s28 + $0x108] sm:$0xf]  ;;  %v2068_v38 = vor.u32 %v2406_v29, %v2067_v28  ;;  %v1877_v9 = vld [vmem:[%s2573_s28 + $0x1b8] sm:$0xf0] }
  0x5f   : > { %1126 = vmatpush.bf16.msra.mxu0 %v1748_v42  ;;  %v2338_v36 = vld [vmem:[%s2573_s28 + $0x114] sm:$0xf0]  ;;  %v1923_v37 = vld [vmem:[%s2573_s28 + $0x208] sm:$0xf]  ;;  %v2332_v42 = vld [vmem:[%s2573_s28 + $0xec] sm:$0xf]  ;;  %v1668_v45 = vor.u32 %v2306_v32, %v1667_v31 }
  0x60   : > { %1139 = vmatpush.bf16.msra.mxu1 %v1876_v43  ;;  %v2370_v39 = vld [vmem:[%s2573_s28 + $0x214] sm:$0xf0]  ;;  %v2051_v40 = vld [vmem:[%s2573_s28 + $0x308] sm:$0xf]  ;;  %v1781_v43 = vld [vmem:[%s2573_s28 + $0xf8] sm:$0xf0]  ;;  %v1796_v49 = vor.u32 %v2338_v36, %v1795_v35 }
  0x61   : > { %1152 = vmatpush.bf16.msra.mxu2 %v2004_v44  ;;  %v2402_v41 = vld [vmem:[%s2573_s28 + $0x314] sm:$0xf0]  ;;  %v2364_v44 = vld [vmem:[%s2573_s28 + $0x1ec] sm:$0xf]  ;;  %v1924_v50 = vor.u32 %v2370_v39, %v1923_v37  ;;  %v2005_v11 = vld [vmem:[%s2573_s28 + $0x2b8] sm:$0xf0] }
  0x62   : > { %1165 = vmatpush.bf16.msra.mxu3 %v2132_v48  ;;  %v2037_v48 = vld [vmem:[%s2573_s28 + $0x2f8] sm:$0xf0]  ;;  %v2052_v53 = vor.u32 %v2402_v41, %v2051_v40  ;;  %v2388_v10 = vld [vmem:[%s2573_s28 + $0x2ac] sm:$0xf] }
  0x63   : > { %1127 = vmatpush.bf16.msra.mxu0 %v1732_v54  ;;  %v1784_v54 = vor.u32 %v2332_v42, %v1781_v43  ;;  %v2420_v12 = vld [vmem:[%s2573_s28 + $0x3ac] sm:$0xf]  ;;  %v2133_v13 = vld [vmem:[%s2573_s28 + $0x3b8] sm:$0xf0] }
  0x64   : > { %1140 = vmatpush.bf16.msra.mxu1 %v1860_v55  ;;  %v1912_v55 = vor.u32 %v2364_v44, %v1909_v46  ;;  %v2320_v21 = vld [vmem:[%s2573_s28 + $0x8c] sm:$0xf]  ;;  %v1733_v22 = vld [vmem:[%s2573_s28 + $0x98] sm:$0xf0] }
  0x65   : > { %1153 = vmatpush.bf16.msra.mxu2 %v1988_v56  ;;  %v2040_v56 = vor.u32 %v2396_v47, %v2037_v48  ;;  %v2352_v23 = vld [vmem:[%s2573_s28 + $0x18c] sm:$0xf]  ;;  %v1861_v25 = vld [vmem:[%s2573_s28 + $0x198] sm:$0xf0] }
  0x66   : > { %1166 = vmatpush.bf16.msra.mxu3 %v2116_v60  ;;  %v2168_v60 = vor.u32 %v2428_v51, %v2165_v52  ;;  %v2384_v26 = vld [vmem:[%s2573_s28 + $0x28c] sm:$0xf]  ;;  %v1989_v27 = vld [vmem:[%s2573_s28 + $0x298] sm:$0xf0]  ;;  %v1864_v31 = vor.u32 %v2352_v23, %v1861_v25 }
  0x67   : > { %1128 = vmatpush.bf16.msra.mxu0 %v1716_v2  ;;  %v1768_v2 = vor.u32 %v2328_v57, %v1765_v58  ;;  %v2416_v28 = vld [vmem:[%s2573_s28 + $0x38c] sm:$0xf]  ;;  %v2117_v29 = vld [vmem:[%s2573_s28 + $0x398] sm:$0xf0]  ;;  %v1992_v32 = vor.u32 %v2384_v26, %v1989_v27 }
  0x68   : > { %1141 = vmatpush.bf16.msra.mxu1 %v1844_v3  ;;  %v1896_v3 = vor.u32 %v2360_v59, %v1893_v61  ;;  %v2348_v35 = vld [vmem:[%s2573_s28 + $0x16c] sm:$0xf]  ;;  %v2120_v36 = vor.u32 %v2416_v28, %v2117_v29  ;;  %v1845_v37 = vld [vmem:[%s2573_s28 + $0x178] sm:$0xf0] }
  0x69   : > { %1154 = vmatpush.bf16.msra.mxu2 %v1972_v4  ;;  %v2024_v4 = vor.u32 %v2392_v62, %v2021_v63  ;;  %v1973_v39 = vld [vmem:[%s2573_s28 + $0x278] sm:$0xf0]  ;;  %v2412_v40 = vld [vmem:[%s2573_s28 + $0x36c] sm:$0xf]  ;;  %v1848_v43 = vor.u32 %v2348_v35, %v1845_v37 }
  0x6a   : > { %1167 = vmatpush.bf16.msra.mxu3 %v2100_v8  ;;  %v2152_v8 = vor.u32 %v2424_v0, %v2149_v1  ;;  %v2101_v41 = vld [vmem:[%s2573_s28 + $0x378] sm:$0xf0]  ;;  %v2344_v47 = vld [vmem:[%s2573_s28 + $0x14c] sm:$0xf] }
  0x6b   : > { %1129 = vmatpush.bf16.msra.mxu0 %v1700_v16  ;;  %v1752_v16 = vor.u32 %v2324_v5, %v1749_v6  ;;  %v1701_v46 = vld [vmem:[%s2573_s28 + $0x58] sm:$0xf0]  ;;  %v2104_v48 = vor.u32 %v2412_v40, %v2101_v41  ;;  %v2408_v52 = vld [vmem:[%s2573_s28 + $0x34c] sm:$0xf] }
  0x6c   : > { %1142 = vmatpush.bf16.msra.mxu1 %v1828_v19  ;;  %v1880_v19 = vor.u32 %v2356_v7, %v1877_v9  ;;  %v1957_v51 = vld [vmem:[%s2573_s28 + $0x258] sm:$0xf0]  ;;  %v2308_v57 = vld [vmem:[%s2573_s28 + $0x2c] sm:$0xf] }
  0x6d   : > { %1155 = vmatpush.bf16.msra.mxu2 %v1956_v20  ;;  %v2008_v20 = vor.u32 %v2388_v10, %v2005_v11  ;;  %v1685_v58 = vld [vmem:[%s2573_s28 + $0x38] sm:$0xf0]  ;;  %v2340_v59 = vld [vmem:[%s2573_s28 + $0x12c] sm:$0xf] }
  0x6e   : > { %1168 = vmatpush.bf16.msra.mxu3 %v2084_v24  ;;  %v2136_v24 = vor.u32 %v2420_v12, %v2133_v13  ;;  %v1813_v61 = vld [vmem:[%s2573_s28 + $0x138] sm:$0xf0]  ;;  %v2372_v62 = vld [vmem:[%s2573_s28 + $0x22c] sm:$0xf] }
  0x6f   : > { %1130 = vmatpush.bf16.msra.mxu0 %v1684_v30  ;;  %v1736_v30 = vor.u32 %v2320_v21, %v1733_v22  ;;  %v1941_v63 = vld [vmem:[%s2573_s28 + $0x238] sm:$0xf0]  ;;  %v2404_v0 = vld [vmem:[%s2573_s28 + $0x32c] sm:$0xf] }
  0x70   : > { %1143 = vmatpush.bf16.msra.mxu1 %v1812_v33  ;;  %v2316_v33 = vld [vmem:[%s2573_s28 + $0x6c] sm:$0xf]  ;;  %v2069_v1 = vld [vmem:[%s2573_s28 + $0x338] sm:$0xf0] }
  0x71   : > { %1156 = vmatpush.bf16.msra.mxu2 %v1940_v34  ;;  %v1717_v34 = vld [vmem:[%s2573_s28 + $0x78] sm:$0xf0]  ;;  %v2304_v5 = vld [vmem:[%s2573_s28 + $0xc] sm:$0xf] }
  0x72   : > { %1169 = vmatpush.bf16.msra.mxu3 %v2068_v38  ;;  %v2380_v38 = vld [vmem:[%s2573_s28 + $0x26c] sm:$0xf]  ;;  %v1720_v42 = vor.u32 %v2316_v33, %v1717_v34  ;;  %v1669_v6 = vld [vmem:[%s2573_s28 + $0x18] sm:$0xf0] }
  0x73   : > { %1131 = vmatpush.bf16.msra.mxu0 %v1668_v45  ;;  %v1976_v44 = vor.u32 %v2380_v38, %v1973_v39  ;;  %v2312_v45 = vld [vmem:[%s2573_s28 + $0x4c] sm:$0xf]  ;;  %v1797_v9 = vld [vmem:[%s2573_s28 + $0x118] sm:$0xf0] }
  0x74   : > { %1144 = vmatpush.bf16.msra.mxu1 %v1796_v49  ;;  %v1829_v49 = vld [vmem:[%s2573_s28 + $0x158] sm:$0xf0]  ;;  %v2336_v7 = vld [vmem:[%s2573_s28 + $0x10c] sm:$0xf] }
  0x75   : > { %1157 = vmatpush.bf16.msra.mxu2 %v1924_v50  ;;  %v2376_v50 = vld [vmem:[%s2573_s28 + $0x24c] sm:$0xf]  ;;  %v1925_v11 = vld [vmem:[%s2573_s28 + $0x218] sm:$0xf0] }
  0x76   : > { %1170 = vmatpush.bf16.msra.mxu3 %v2052_v53  ;;  %1132 = vmatmul.bf16.vlgmr.msra.gmra.mxu0 %v2679_v15  ;;  %v2085_v53 = vld [vmem:[%s2573_s28 + $0x358] sm:$0xf0]  ;;  %v2368_v10 = vld [vmem:[%s2573_s28 + $0x20c] sm:$0xf] }
  0x77   : > { %1176 = vmatpush.bf16.msrb.mxu0 %v1784_v54  ;;  %1145 = vmatmul.bf16.vlgmr.msra.gmra.mxu1 %v2684_v18  ;;  %v1704_v54 = vor.u32 %v2312_v45, %v1701_v46  ;;  %v2400_v12 = vld [vmem:[%s2573_s28 + $0x30c] sm:$0xf]  ;;  %v2053_v13 = vld [vmem:[%s2573_s28 + $0x318] sm:$0xf0] }
  0x78   : > { %1189 = vmatpush.bf16.msrb.mxu1 %v1912_v55  ;;  %1158 = vmatmul.bf16.vlgmr.msra.gmra.mxu2 %v2677_v14  ;;  %v1832_v55 = vor.u32 %v2344_v47, %v1829_v49  ;;  %v2056_v21 = vor.u32 %v2400_v12, %v2053_v13 }
  0x79   : > { %1202 = vmatpush.bf16.msrb.mxu2 %v2040_v56  ;;  %1171 = vmatmul.bf16.vlgmr.msra.gmra.mxu3 %v2682_v17  ;;  %v1960_v56 = vor.u32 %v2376_v50, %v1957_v51 }
  0x7a   : > { %1215 = vmatpush.bf16.msrb.mxu3 %v2168_v60  ;;  %v2088_v60 = vor.u32 %v2408_v52, %v2085_v53 }
  0x7b   : > { %1177 = vmatpush.bf16.msrb.mxu0 %v1768_v2  ;;  %v1688_v2 = vor.u32 %v2308_v57, %v1685_v58 }
  0x7c   : > { %1190 = vmatpush.bf16.msrb.mxu1 %v1896_v3  ;;  %v1816_v3 = vor.u32 %v2340_v59, %v1813_v61 }
  0x7d   : > { %1203 = vmatpush.bf16.msrb.mxu2 %v2024_v4  ;;  %v1944_v4 = vor.u32 %v2372_v62, %v1941_v63  ;;  %v240_v63 = vld [vmem:[#allocation2] sm:$0xff] }
  0x7e   : > { %1216 = vmatpush.bf16.msrb.mxu3 %v2152_v8  ;;  %v2072_v8 = vor.u32 %v2404_v0, %v2069_v1 }
  0x7f   : > { %1178 = vmatpush.bf16.msrb.mxu0 %v1752_v16  ;;  %v1672_v16 = vor.u32 %v2304_v5, %v1669_v6 }
  0x80   : > { %1191 = vmatpush.bf16.msrb.mxu1 %v1880_v19  ;;  %v1800_v19 = vor.u32 %v2336_v7, %v1797_v9 }
  0x81   : > { %1204 = vmatpush.bf16.msrb.mxu2 %v2008_v20  ;;  %v1928_v20 = vor.u32 %v2368_v10, %v1925_v11 }
  0x82   : > { %1217 = vmatpush.bf16.msrb.mxu3 %v2136_v24 }
  0x83   : > { %1179 = vmatpush.bf16.msrb.mxu0 %v1736_v30 }
  0x84   : > { %1192 = vmatpush.bf16.msrb.mxu1 %v1864_v31 }
  0x85   : > { %1205 = vmatpush.bf16.msrb.mxu2 %v1992_v32 }
  0x86   : > { %1218 = vmatpush.bf16.msrb.mxu3 %v2120_v36 }
  0x87   : > { %1180 = vmatpush.bf16.msrb.mxu0 %v1720_v42 }
  0x88   : > { %1193 = vmatpush.bf16.msrb.mxu1 %v1848_v43 }
  0x89   : > { %1206 = vmatpush.bf16.msrb.mxu2 %v1976_v44 }
  0x8a   : > { %1219 = vmatpush.bf16.msrb.mxu3 %v2104_v48 }
  0x8b   : > { %1181 = vmatpush.bf16.msrb.mxu0 %v1704_v54 }
  0x8c   : > { %1194 = vmatpush.bf16.msrb.mxu1 %v1832_v55 }
  0x8d   : > { %1207 = vmatpush.bf16.msrb.mxu2 %v1960_v56 }
  0x8e   : > { %1220 = vmatpush.bf16.msrb.mxu3 %v2088_v60 }
  0x8f   : > { %1182 = vmatpush.bf16.msrb.mxu0 %v1688_v2 }
  0x90   : > { %1195 = vmatpush.bf16.msrb.mxu1 %v1816_v3 }
  0x91   : > { %1208 = vmatpush.bf16.msrb.mxu2 %v1944_v4 }
  0x92   : > { %1221 = vmatpush.bf16.msrb.mxu3 %v2072_v8 }
  0x93   : > { %1183 = vmatpush.bf16.msrb.mxu0 %v1672_v16 }
  0x94   : > { %1196 = vmatpush.bf16.msrb.mxu1 %v1800_v19 }
  0x95   : > { %1209 = vmatpush.bf16.msrb.mxu2 %v1928_v20 }
  0x96   : > { %1222 = vmatpush.bf16.msrb.mxu3 %v2056_v21  ;;  %1184 = vmatmul.bf16.vlgmr.msrb.gmra.mxu0 %v2679_v15 }
  0x97   : > { %1197 = vmatmul.bf16.vlgmr.msrb.gmra.mxu1 %v2684_v18 }
  0x98   : > { %1210 = vmatmul.bf16.vlgmr.msrb.gmra.mxu2 %v2677_v14 }
  0x99   : > { %1223 = vmatmul.bf16.vlgmr.msrb.gmra.mxu3 %v2682_v17 }
  0xba   : > { %v1029_v22 = vpop.f32.mrf.mxu0 }
  0xbe   : > { %v1042_v23 = vpop.f32.mrf.mxu1 }
  0xbf   : > { %v1043_v24 = vadd.f32 %v1042_v23, %v1029_v22 }
  0xc1   : > { %v1055_v25 = vpop.f32.mrf.mxu2 }
  0xc2   : > { %v1056_v26 = vadd.f32 %v1055_v25, %v1043_v24  ;;  %v1068_v27 = vpop.f32.mrf.mxu3  ;;  %v1031_v29 = vpop.f32.mrf.mxu0 }
  0xc4   : > { %v1069_v28 = vadd.f32 %v1068_v27, %v1056_v26 }
  0xc6   : > { %v1044_v30 = vpop.f32.mrf.mxu1 }
  0xc9   : > { %v1057_v31 = vpop.f32.mrf.mxu2 }
  0xca   : > { %v1070_v32 = vpop.f32.mrf.mxu3 }
  0xd3   : > { %v1081_v33 = vpop.f32.mrf.mxu0 }
  0xd4   : > { %v1094_v34 = vpop.f32.mrf.mxu1 }
  0xd5   : > { %v1095_v45 = vadd.f32 %v1094_v34, %v1081_v33 }
  0xdb   : > { %v1107_v15 = vpop.f32.mrf.mxu2  ;;  %v1083_v18 = vpop.f32.mrf.mxu0 }
  0xdc   : > { %v1120_v35 = vpop.f32.mrf.mxu3  ;;  %v1096_v36 = vpop.f32.mrf.mxu1  ;;  %v1108_v49 = vadd.f32 %v1107_v15, %v1095_v45 }
  0xde   : > { %v1121_v52 = vadd.f32 %v1120_v35, %v1108_v49 }
  0xe0   : > { %v1232_v59 = vrot.slane %v1121_v52, 6 }
  0xe2   : > { %v1236_v0 = vsel %vm1235_vm0, %v1069_v28, %v1232_v59 }
  0xe3   : > { %v1109_v14 = vpop.f32.mrf.mxu2 }
  0xe4   : > { %v1122_v37 = vpop.f32.mrf.mxu3 }
  0xf3   : > { %v1133_v17 = vpop.f32.mrf.mxu0 }
  0xf4   : > { %v1146_v38 = vpop.f32.mrf.mxu1 }
  0xf5   : > { %v1147_v46 = vadd.f32 %v1146_v38, %v1133_v17 }
  0xfb   : > { %v1159_v39 = vpop.f32.mrf.mxu2  ;;  %v1135_v41 = vpop.f32.mrf.mxu0 }
  0xfc   : > { %v1172_v40 = vpop.f32.mrf.mxu3  ;;  %v1148_v42 = vpop.f32.mrf.mxu1  ;;  %v1160_v50 = vadd.f32 %v1159_v39, %v1147_v46 }
  0xfe   : > { %v1173_v54 = vadd.f32 %v1172_v40, %v1160_v50 }
 0x100   : > { %v1233_v61 = vrot.slane %v1173_v54, 4 }
 0x103   : > { %v1161_v43 = vpop.f32.mrf.mxu2 }
 0x104   : > { %v1174_v44 = vpop.f32.mrf.mxu3 }
 0x113   : > { %v1185_v47 = vpop.f32.mrf.mxu0 }
 0x114   : > { %v1198_v48 = vpop.f32.mrf.mxu1 }
 0x115   : > { %v1199_v51 = vadd.f32 %v1198_v48, %v1185_v47 }
 0x11b   : > { %v1211_v53 = vpop.f32.mrf.mxu2  ;;  %v1187_v57 = vpop.f32.mrf.mxu0 }
 0x11c   : > { %v1212_v55 = vadd.f32 %v1211_v53, %v1199_v51  ;;  %v1224_v56 = vpop.f32.mrf.mxu3  ;;  %v1200_v58 = vpop.f32.mrf.mxu1 }
 0x11e   : > { %v1225_v60 = vadd.f32 %v1224_v56, %v1212_v55 }
 0x120   : > { %v1234_v62 = vrot.slane %v1225_v60, 2 }
 0x122   : > { %v1238_v1 = vsel %vm1237_vm1, %v1233_v61, %v1234_v62  ;;  %1247 = sbr.rel (%p2169_p6) target bundleno = 470 (0x1d6), region = 48 }
 0x123   : > { %v1240_v2 = vsel %vm1239_vm2, %v1236_v0, %v1238_v1  ;;  %v1213_v3 = vpop.f32.mrf.mxu2 }
 0x124   : > { %v1242_v4 = vadd.f32 %v1240_v2, %v240_v63  ;;  %v1226_v5 = vpop.f32.mrf.mxu3 }
 0x126   : > { %1243 = vst [vmem:[#allocation2] sm:$0xff] %v1242_v4 }
 0x127   : > { %v2438_v6 = vld [vmem:[%s2980_s3 + $0x38] sm:$0xff]  ;;  %v2437_v10 = vld [vmem:[%s2980_s3 + $0x30] sm:$0xff]  ;;  %v2436_v16 = vld [vmem:[%s2980_s3 + $0x28] sm:$0xff] }
 0x128   : > { %v2446_v7 = vld [vmem:[%s2980_s3 + $0x78] sm:$0xff]  ;;  %1538 = vmatpush.bf16.msra.mxu0 %v2438_v6  ;;  %v2445_v11 = vld [vmem:[%s2980_s3 + $0x70] sm:$0xff]  ;;  %v2444_v19 = vld [vmem:[%s2980_s3 + $0x68] sm:$0xff] }
 0x129   : > { %v2454_v8 = vld [vmem:[%s2980_s3 + $0xb8] sm:$0xff]  ;;  %1551 = vmatpush.bf16.msra.mxu1 %v2446_v7  ;;  %v2453_v12 = vld [vmem:[%s2980_s3 + $0xb0] sm:$0xff]  ;;  %v2452_v20 = vld [vmem:[%s2980_s3 + $0xa8] sm:$0xff] }
 0x12a   : > { %v2462_v9 = vld [vmem:[%s2980_s3 + $0xf8] sm:$0xff]  ;;  %1564 = vmatpush.bf16.msra.mxu2 %v2454_v8  ;;  %v2461_v13 = vld [vmem:[%s2980_s3 + $0xf0] sm:$0xff]  ;;  %v2460_v21 = vld [vmem:[%s2980_s3 + $0xe8] sm:$0xff] }
 0x12b   : > { %1577 = vmatpush.bf16.msra.mxu3 %v2462_v9  ;;  %v2435_v22 = vld [vmem:[%s2980_s3 + $0x20] sm:$0xff]  ;;  %v2434_v31 = vld [vmem:[%s2980_s3 + $0x18] sm:$0xff]  ;;  %v2433_v38 = vld [vmem:[%s2980_s3 + $0x10] sm:$0xff] }
 0x12c   : > { %1539 = vmatpush.bf16.msra.mxu0 %v2437_v10  ;;  %v2443_v23 = vld [vmem:[%s2980_s3 + $0x60] sm:$0xff]  ;;  %v2442_v32 = vld [vmem:[%s2980_s3 + $0x58] sm:$0xff]  ;;  %v2441_v39 = vld [vmem:[%s2980_s3 + $0x50] sm:$0xff] }
 0x12d   : > { %1552 = vmatpush.bf16.msra.mxu1 %v2445_v11  ;;  %v2451_v24 = vld [vmem:[%s2980_s3 + $0xa0] sm:$0xff]  ;;  %v2450_v35 = vld [vmem:[%s2980_s3 + $0x98] sm:$0xff]  ;;  %v1248_v36 = vld [vmem:[#allocation2] sm:$0xff] }
 0x12e   : > { %1565 = vmatpush.bf16.msra.mxu2 %v2453_v12  ;;  %v2459_v25 = vld [vmem:[%s2980_s3 + $0xe0] sm:$0xff]  ;;  %v2458_v18 = vld [vmem:[%s2980_s3 + $0xd8] sm:$0xff]  ;;  %v2449_v41 = vld [vmem:[%s2980_s3 + $0x90] sm:$0xff] }
 0x12f   : > { %1578 = vmatpush.bf16.msra.mxu3 %v2461_v13  ;;  %v1249_v26 = vld [vmem:[%s2979_s2] sm:$0xf]  ;;  %v2457_v42 = vld [vmem:[%s2980_s3 + $0xd0] sm:$0xff]  ;;  %v2432_v44 = vld [vmem:[%s2980_s3 + $0x8] sm:$0xff] }
 0x130   : > { %1540 = vmatpush.bf16.msra.mxu0 %v2436_v16  ;;  %v1251_v27 = vperm.slane %v1249_v26, 0  ;;  %v1252_v28 = vperm.slane %v1249_v26, 1  ;;  %v1253_v29 = vperm.slane %v1249_v26, 2  ;;  %v1254_v30 = vperm.slane %v1249_v26, 3  ;;  %v2440_v45 = vld [vmem:[%s2980_s3 + $0x48] sm:$0xff]  ;;  %v2431_v48 = vld [vmem:[%s2980_s3] sm:$0xff] }
 0x131   : > { %1553 = vmatpush.bf16.msra.mxu1 %v2444_v19  ;;  %v2448_v46 = vld [vmem:[%s2980_s3 + $0x88] sm:$0xff]  ;;  %v2439_v49 = vld [vmem:[%s2980_s3 + $0x40] sm:$0xff] }
 0x132   : > { %1566 = vmatpush.bf16.msra.mxu2 %v2452_v20  ;;  %v1255_v33 = vrot.slane %v1252_v28, 6  ;;  %v1256_v34 = vrot.slane %v1253_v29, 4  ;;  %v1257_v15 = vrot.slane %v1254_v30, 2  ;;  %v2456_v47 = vld [vmem:[%s2980_s3 + $0xc8] sm:$0xff]  ;;  %v2447_v50 = vld [vmem:[%s2980_s3 + $0x80] sm:$0xff] }
 0x133   : > { %1579 = vmatpush.bf16.msra.mxu3 %v2460_v21  ;;  %v2455_v51 = vld [vmem:[%s2980_s3 + $0xc0] sm:$0xff] }
 0x134   : > { %1541 = vmatpush.bf16.msra.mxu0 %v2435_v22  ;;  %v1258_v14 = vsel %vm1235_vm0, %v1251_v27, %v1255_v33  ;;  %v1259_v37 = vsel %vm1237_vm1, %v1256_v34, %v1257_v15  ;;  %v2479_v60 = vld [vmem:[%s2981_s4] ss:$0 sm:$0xff] }
 0x135   : > { %1554 = vmatpush.bf16.msra.mxu1 %v2443_v23  ;;  %v1260_v17 = vsel %vm1239_vm2, %v1258_v14, %v1259_v37 }
 0x136   : > { %1567 = vmatpush.bf16.msra.mxu2 %v2451_v24  ;;  %v1262_v40 = vadd.f32 %v1260_v17, %v1248_v36 }
 0x137   : > { %1580 = vmatpush.bf16.msra.mxu3 %v2459_v25 }
 0x138   : > { %1542 = vmatpush.bf16.msra.mxu0 %v2434_v31  ;;  %v1263_v43 = vmax.f32 %v1262_v40, 0.0 }
 0x139   : > { %1555 = vmatpush.bf16.msra.mxu1 %v2442_v32 }
 0x13a   : > { %1568 = vmatpush.bf16.msra.mxu2 %v2450_v35  ;;  %1265 = vst [vmem:[#allocation1] ss:$4 sm:$0xff] %v1263_v43 }
 0x13b   : > { %1581 = vmatpush.bf16.msra.mxu3 %v2458_v18 }
 0x13c   : > { %1543 = vmatpush.bf16.msra.mxu0 %v2433_v38 }
 0x13d   : > { %1556 = vmatpush.bf16.msra.mxu1 %v2441_v39 }
 0x13e   : > { %1569 = vmatpush.bf16.msra.mxu2 %v2449_v41 }
 0x13f   : > { %1582 = vmatpush.bf16.msra.mxu3 %v2457_v42 }
 0x140   : > { %1544 = vmatpush.bf16.msra.mxu0 %v2432_v44 }
 0x141   : > { %1557 = vmatpush.bf16.msra.mxu1 %v2440_v45  ;;  %v1266_v52 = vld.sshfl [vmem:[#allocation1] sm:$0xff pattern:$0x73625140]  ;;  %v1267_v53 = vld.sshfl [vmem:[#allocation1 + $0x8] sm:$0xff pattern:$0x73625140] }
 0x142   : > { %1570 = vmatpush.bf16.msra.mxu2 %v2448_v46  ;;  %v1274_v54 = vpack.c.bf16 %v1266_v52, %v1266_v52  ;;  %v1275_v55 = vpack.c.bf16 %v1267_v53, %v1267_v53  ;;  %v1268_v56 = vld.sshfl [vmem:[#allocation1 + $0x10] sm:$0xff pattern:$0x73625140]  ;;  %v1269_v57 = vld.sshfl [vmem:[#allocation1 + $0x18] sm:$0xff pattern:$0x73625140] }
 0x143   : > { %1583 = vmatpush.bf16.msra.mxu3 %v2456_v47  ;;  %v1276_v58 = vpack.c.bf16 %v1268_v56, %v1268_v56  ;;  %v1277_v59 = vpack.c.bf16 %v1269_v57, %v1269_v57 }
 0x144   : > { %1545 = vmatpush.bf16.msra.mxu0 %v2431_v48 }
 0x145   : > { %1558 = vmatpush.bf16.msra.mxu1 %v2439_v49 }
 0x146   : > { %1571 = vmatpush.bf16.msra.mxu2 %v2447_v50 }
 0x147   : > { %1584 = vmatpush.bf16.msra.mxu3 %v2455_v51  ;;  %1546 = vmatmul.bf16.vlgmr.msra.gmra.mxu0 %v1274_v54 }
 0x148   : > { %1559 = vmatmul.bf16.vlgmr.msra.gmra.mxu1 %v1275_v55 }
 0x149   : > { %1572 = vmatmul.bf16.vlgmr.msra.gmra.mxu2 %v1276_v58 }
 0x14a   : > { %1585 = vmatmul.bf16.vlgmr.msra.gmra.mxu3 %v1277_v59 }
 0x1c4   : > { %v1547_v61 = vpop.f32.mrf.mxu0 }
 0x1c5   : > { %v1560_v62 = vpop.f32.mrf.mxu1  ;;  %v1548_v63 = vadd.f32 %v2479_v60, %v1547_v61 }
 0x1c7   : > { %v1561_v0 = vadd.f32 %v1560_v62, %v1548_v63 }
 0x1cc   : > { %v1573_v1 = vpop.f32.mrf.mxu2  ;;  %v1549_v4 = vpop.f32.mrf.mxu0 }
 0x1cd   : > { %v1586_v2 = vpop.f32.mrf.mxu3  ;;  %v1574_v3 = vadd.f32 %v1573_v1, %v1561_v0  ;;  %v1562_v5 = vpop.f32.mrf.mxu1 }
 0x1cf   : > { %v1587_v6 = vadd.f32 %v1586_v2, %v1574_v3 }
 0x1d1   : > { %1590 = vst [vmem:[#allocation3] sm:$0x3] %v1587_v6 }
 0x1d4   : > { %v1575_v7 = vpop.f32.mrf.mxu2 }
 0x1d5   : > { %v1588_v8 = vpop.f32.mrf.mxu3 }
 0x1d6 PF: > { %p2467_p7 = scmp.eq.s32.totalorder %s2558_s19, 6  ;;  %s2521_s30 = smov [#allocation3]  }
 0x1d7   : > { %s1597_s6 = sshll.u32 %s2521_s30, 4  ;;  %s1599_s9 = sshll.u32 %s2982_s5, 4  ;;  %s1598_s6 = int_to_ptr.vmem [resolvable:$true] %s1597_s6  ;;  %s1600_s9 = int_to_ptr.hbm [resolvable:$true] %s1599_s9 }
 0x1d8   : > { %2464 = dma.vmem_to_hbm [thread:$0]  (%p2467_p7), %s1598_s6, 32, %s1600_s9, [#allocation4]  }
 0x1d9   : > { %2513 = dma.done.wait (%p2467_p7), [#allocation4], 32  }
 0x1da   : > { %2515 = vsyncadd (%p2467_p7), [#allocation4], 4294967264 }
 0x1db PF: > { %s16_s18 = sadd.s32 1, %s2518_s18  }
 0x1dc   : > { %p13_p8 = scmp.ge.s32.totalorder %s16_s18, 9  }
 0x1de   :  { %15 = sbr.rel (!%p13_p8) target bundleno = 1 (0x1), region = 78 }
 0x1e3   :  { %1613 = vsyncpa [#allocation4], 1 }
 0x1e4   :  { %1615 = vsyncpa [#allocation4 + $0x1], 1 }

</bundles_post_ra>
